<compile_context>
chip_gen: v7x
topology: tpu7x:2x2x1
jax: 0.10.0
libtpu: 0.0.40
codegen_flags: <defaults>
</compile_context>

<pallas_src>
import functools

import jax
import jax.numpy as jnp
import numpy as np
from jax.experimental import pallas as pl
from jax.experimental.pallas import tpu as pltpu

EPS = 1e-5


# ------------------------- fused DownBlock kernel ---------------------------
def _downblock_kernel(*refs, N, H, W, depth, cins, cmid, cout):
    HW = H * W
    M = N * HW

    n_in = 2 + 4 * depth
    x0_ref, p_ref = refs[0], refs[1]
    blk_refs = [refs[2 + 4 * b: 2 + 4 * (b + 1)] for b in range(depth)]
    skip_refs = refs[n_in: n_in + depth]
    pool_ref = refs[n_in + depth]
    xpad_ref, col_ref = refs[n_in + depth + 1:]

    # Horizontal-boundary masks for the 3x3 taps (per-image pattern, built once).
    w_idx = jax.lax.broadcasted_iota(jnp.int32, (1, HW), 1) % W
    left_ok = w_idx > 0          # tap reads column w-1
    right_ok = w_idx < W - 1     # tap reads column w+1

    # Zero the padded scratch once; halo rows stay zero for every conv, the
    # interiors are fully overwritten per conv.
    xpad_ref[...] = jnp.zeros(xpad_ref.shape, xpad_ref.dtype)

    def im2col(xin, cb):
        # xin: (cb, M) value.  Fills col_ref[:9*cb, :] with the 3x3 im2col taps
        # (zero padding = 1).  All loads/stores are full-lane-width.
        for n in range(N):
            start = W * (n * (H + 2) + 2)                  # interior of image n
            xpad_ref[0:cb, start:start + HW] = xin[:, n * HW:(n + 1) * HW]
        for k in range(9):
            dy, dx = divmod(k, 3)
            for n in range(N):
                s = W * (1 + n * (H + 2) + dy) + dx - 1    # static slice start
                vals = xpad_ref[0:cb, s:s + HW]
                if dx == 0:
                    vals = jnp.where(left_ok, vals, 0.0)
                elif dx == 2:
                    vals = jnp.where(right_ok, vals, 0.0)
                col_ref[k * cb:(k + 1) * cb, n * HW:(n + 1) * HW] = vals

    x = x0_ref[...]                                        # (cins[0], M)
    for b in range(depth):
        gamma_ref, beta_ref, w1_ref, w2_ref = blk_refs[b]
        cb = cins[b]
        residual = (b == 0)

        # ---- BatchNorm2d (training batch stats, biased two-pass variance) ----
        inv_m = 1.0 / M
        mean = jnp.sum(x, axis=1, keepdims=True) * inv_m           # (cb, 1)
        cent = x - mean
        var = jnp.sum(cent * cent, axis=1, keepdims=True) * inv_m  # (cb, 1)
        scale = gamma_ref[...] * jax.lax.rsqrt(var + EPS)
        xbn = cent * scale + beta_ref[...]                          # (cb, M)

        # ---- conv1 (3x3): one MXU matmul (cmid, 9*cb) x (9*cb, M) ------------
        im2col(xbn, cb)
        h1 = jnp.dot(w1_ref[...], col_ref[0:9 * cb, :],
                     preferred_element_type=jnp.float32)            # (cmid, M)
        mid = h1 * jax.nn.sigmoid(h1)        # SiLU: single EUP transcendental

        # ---- conv2 (3x3); block 0 folds the 1x1 residual conv into this
        # matmul as extra K rows carrying the raw block input x. --------------
        im2col(mid, cmid)
        k2 = 9 * cmid
        if residual:
            col_ref[k2:k2 + cb, :] = x
            k2 = k2 + cb
        y = jnp.dot(w2_ref[...], col_ref[0:k2, :],
                    preferred_element_type=jnp.float32)             # (cout, M)
        if not residual:
            y = y + x                        # identity residual (cb == cout)

        skip_refs[b][...] = y
        x = y

    # ---- AvgPool2d(2): linear map -> single MXU matmul against the
    # precomputed 0.25-valued pooling matrix; output is lane-dense. -----------
    pool_ref[...] = jnp.dot(x, p_ref[...], preferred_element_type=jnp.float32)


# ------------------------------- wrapper -------------------------------------
def _make_pool_matrix(N, H, W):
    M = N * H * W
    Q = N * (H // 2) * (W // 2)
    m = np.arange(M)
    n = m // (H * W)
    r = m % (H * W)
    h = r // W
    w = r % W
    q = (n * (H // 2) + h // 2) * (W // 2) + w // 2
    P = np.zeros((M, Q), np.float32)
    P[m, q] = 0.25
    return jnp.asarray(P)


def _vmem_limit_bytes():
    # Per-generation VMEM budget (~3/4 of physical: ~96 MiB on v5e/v6e,
    # ~48 MiB on v7x), with a conservative fallback.
    try:
        cap = int(pltpu.get_tpu_info().vmem_capacity_bytes)
    except Exception:
        cap = 128 * 1024 * 1024
    return max(32 * 1024 * 1024, min((cap * 3) // 4, 100 * 1024 * 1024))


def downblock_forward(x_nchw, params):
    N, cin0, H, W = x_nchw.shape
    depth = len(params)
    cmid = params[0]["w1"].shape[1]
    cout = params[0]["w2"].shape[1]
    M = N * H * W
    Mp = (N * (H + 2) + 2) * W
    cins = [cin0] + [cout] * (depth - 1)
    cmax = max(cins + [cmid])
    col_rows = max(9 * cmax, 9 * cmid + cins[0])   # block-0 conv2 is K-augmented

    # Channels-on-sublanes / pixels-on-lanes input slab: (Cin, N*H*W).
    x_cm = jnp.transpose(x_nchw, (1, 0, 2, 3)).reshape(cin0, M).astype(jnp.float32)

    inputs = [x_cm, _make_pool_matrix(N, H, W)]
    for b, p in enumerate(params):
        cb = cins[b]
        inputs.append(p["gamma"].reshape(cb, 1).astype(jnp.float32))
        inputs.append(p["beta"].reshape(cb, 1).astype(jnp.float32))
        inputs.append(p["w1"].T)                                 # (cmid, 9*cb)
        if b == 0:
            inputs.append(jnp.concatenate([p["w2"].T, p["wres"].T], axis=1))
        else:
            inputs.append(p["w2"].T)                             # (cout, 9*cmid)

    out_shapes = tuple(
        [jax.ShapeDtypeStruct((cout, M), jnp.float32) for _ in range(depth)]
        + [jax.ShapeDtypeStruct((cout, M // 4), jnp.float32)])

    vmem = pl.BlockSpec(memory_space=pltpu.MemorySpace.VMEM)
    kernel = functools.partial(_downblock_kernel, N=N, H=H, W=W, depth=depth,
                               cins=tuple(cins), cmid=cmid, cout=cout)

    outs = pl.pallas_call(
        kernel,
        out_shape=out_shapes,
        in_specs=[vmem] * len(inputs),
        out_specs=tuple([vmem] * len(out_shapes)),
        scratch_shapes=[
            pltpu.VMEM((cmax, Mp), jnp.float32),       # lane-dense padded buffer
            pltpu.VMEM((col_rows, M), jnp.float32),    # im2col buffer (reused)
        ],
        compiler_params=pltpu.CompilerParams(vmem_limit_bytes=_vmem_limit_bytes()),
    )(*inputs)

    # Free HBM-side reshapes / transposes back to the PyTorch NCHW interface.
    skips = [jnp.transpose(outs[b].reshape(cout, N, H, W), (1, 0, 2, 3))
             for b in range(depth)]
    pooled = jnp.transpose(outs[depth].reshape(cout, N, H // 2, W // 2),
                           (1, 0, 2, 3))
    return pooled, skips


# ------------------------------- parameters ---------------------------------
def init_downblock_params(key, in_channels, out_channels, block_depth):
    params = []
    for i in range(block_depth):
        cin = in_channels if i == 0 else out_channels
        cmid = out_channels
        cout = out_channels
        key, k1, k2, k3 = jax.random.split(key, 4)
        w1 = jax.random.normal(k1, (9 * cin, cmid), jnp.float32) / np.sqrt(9 * cin)
        w2 = jax.random.normal(k2, (9 * cmid, cout), jnp.float32) / np.sqrt(9 * cmid)
        p = {"w1": w1, "w2": w2,
             "gamma": jnp.ones((cin,), jnp.float32),    # torch BN default init
             "beta": jnp.zeros((cin,), jnp.float32)}
        if i == 0:                                      # 1x1 residual conv (block 0 only)
            p["wres"] = jax.random.normal(k3, (cin, cout), jnp.float32) / np.sqrt(cin)
        params.append(p)
    return params


# --------------------------- pure-JAX reference -----------------------------
def _ref_conv3x3(h, wflat):
    cin = wflat.shape[0] // 9
    w4 = wflat.reshape(3, 3, cin, wflat.shape[1])
    return jax.lax.conv_general_dilated(
        h, w4, window_strides=(1, 1), padding="SAME",
        dimension_numbers=("NHWC", "HWIO", "NHWC"),
        precision=jax.lax.Precision.HIGHEST)


def _ref_resblock(x, p, residual):
    mean = x.mean(axis=(0, 1, 2))
    var = x.var(axis=(0, 1, 2))
    xbn = (x - mean) * p["gamma"] / jnp.sqrt(var + EPS) + p["beta"]
    h = _ref_conv3x3(xbn, p["w1"])
    h = h * jax.nn.sigmoid(h)
    h = _ref_conv3x3(h, p["w2"])
    res = jnp.einsum("nhwc,cd->nhwd", x, p["wres"]) if residual else x
    return h + res


def _ref_downblock(x_nchw, params):
    x = jnp.transpose(x_nchw, (0, 2, 3, 1)).astype(jnp.float32)
    skips = []
    for i, p in enumerate(params):
        x = _ref_resblock(x, p, residual=(i == 0))
        skips.append(jnp.transpose(x, (0, 3, 1, 2)))
    N, H, W, C = x.shape
    pooled = x.reshape(N, H // 2, 2, W // 2, 2, C).mean(axis=(2, 4))
    return jnp.transpose(pooled, (0, 3, 1, 2)), skips


if __name__ == "__main__":
    key = jax.random.PRNGKey(0)
    kx, kp = jax.random.split(key)

    N, Cin, H, W = 2, 8, 16, 16
    Cout, depth = 16, 2

    x = jax.random.normal(kx, (N, Cin, H, W), jnp.float32)   # NCHW, like PyTorch
    params = init_downblock_params(kp, Cin, Cout, depth)

    out, skips = downblock_forward(x, params)
    out = jax.block_until_ready(out)
    skips = [jax.block_until_ready(s) for s in skips]

    assert out.shape == (N, Cout, H // 2, W // 2)
    assert all(s.shape == (N, Cout, H, W) for s in skips)

    ref_out, ref_skips = _ref_downblock(x, params)
    err = max([float(jnp.max(jnp.abs(out - ref_out)))] +
              [float(jnp.max(jnp.abs(a - b))) for a, b in zip(skips, ref_skips)])
    assert err < 2e-2, f"max abs error vs reference: {err}"

    print("KERNEL_OK")
</pallas_src>

<mosaic_0001>
module attributes {stable_mosaic.version = 11 : i64} {
  func.func @_downblock_kernel(%arg0: memref<8x512xf32, #tpu.memory_space<vmem>>, %arg1: memref<512x128xf32, #tpu.memory_space<vmem>>, %arg2: memref<8x1xf32, #tpu.memory_space<vmem>>, %arg3: memref<8x1xf32, #tpu.memory_space<vmem>>, %arg4: memref<16x72xf32, #tpu.memory_space<vmem>>, %arg5: memref<16x152xf32, #tpu.memory_space<vmem>>, %arg6: memref<16x1xf32, #tpu.memory_space<vmem>>, %arg7: memref<16x1xf32, #tpu.memory_space<vmem>>, %arg8: memref<16x144xf32, #tpu.memory_space<vmem>>, %arg9: memref<16x144xf32, #tpu.memory_space<vmem>>, %arg10: memref<16x512xf32, #tpu.memory_space<vmem>>, %arg11: memref<16x512xf32, #tpu.memory_space<vmem>>, %arg12: memref<16x128xf32, #tpu.memory_space<vmem>>, %arg13: memref<16x608xf32, #tpu.memory_space<vmem>>, %arg14: memref<152x512xf32, #tpu.memory_space<vmem>>) attributes {dimension_semantics = [], scalar_prefetch = 0 : i64, scratch_operands = 2 : i64, tpu.core_type = #tpu.core_type<tc>} {
    %0 = tpu.iota {dimensions = array<i32: 1>} : vector<1x256xi32>
    %c16_i32 = arith.constant 16 : i32
    %c0_i32 = arith.constant 0 : i32
    %1 = arith.cmpi eq, %c16_i32, %c0_i32 : i32
    %c1_i32 = arith.constant 1 : i32
    %2 = arith.select %1, %c1_i32, %c16_i32 : i32
    %3 = vector.broadcast %2 : i32 to vector<1x256xi32>
    %4 = arith.remsi %0, %3 : vector<1x256xi32>
    %c0_i32_0 = arith.constant 0 : i32
    %5 = vector.broadcast %c0_i32_0 : i32 to vector<1x256xi32>
    %6 = arith.cmpi ne, %4, %5 : vector<1x256xi32>
    %c0_i32_1 = arith.constant 0 : i32
    %7 = vector.broadcast %c0_i32_1 : i32 to vector<1x256xi32>
    %8 = arith.cmpi slt, %4, %7 : vector<1x256xi32>
    %c0_i32_2 = arith.constant 0 : i32
    %9 = arith.cmpi slt, %2, %c0_i32_2 : i32
    %10 = vector.broadcast %9 : i1 to vector<1x256xi1>
    %11 = vector.broadcast %10 : vector<1x256xi1> to vector<1x256xi1>
    %12 = arith.xori %8, %11 : vector<1x256xi1>
    %13 = arith.andi %12, %6 : vector<1x256xi1>
    %14 = vector.broadcast %2 : i32 to vector<1x256xi32>
    %15 = arith.addi %4, %14 : vector<1x256xi32>
    %16 = arith.select %13, %15, %4 : vector<1x256xi1>, vector<1x256xi32>
    %c0_i32_3 = arith.constant 0 : i32
    %17 = vector.broadcast %c0_i32_3 : i32 to vector<1x256xi32>
    %18 = arith.cmpi sgt, %16, %17 : vector<1x256xi32>
    %c15_i32 = arith.constant 15 : i32
    %19 = vector.broadcast %c15_i32 : i32 to vector<1x256xi32>
    %20 = arith.cmpi slt, %16, %19 : vector<1x256xi32>
    %cst = arith.constant 0.000000e+00 : f32
    %21 = vector.broadcast %cst : f32 to vector<16x608xf32>
    %c0 = arith.constant 0 : index
    %c0_4 = arith.constant 0 : index
    %22 = vector.load %arg13[%c0, %c0_4] : memref<16x608xf32, #tpu.memory_space<vmem>>, vector<16x608xf32>
    tpu.vector_store %arg13[%c0, %c0_4], %21 {strides = array<i32>} : memref<16x608xf32, #tpu.memory_space<vmem>>, vector<16x608xf32>,
    %c0_5 = arith.constant 0 : index
    %c0_6 = arith.constant 0 : index
    %23 = vector.load %arg0[%c0_5, %c0_6] : memref<8x512xf32, #tpu.memory_space<vmem>>, vector<8x512xf32>
    %cst_7 = arith.constant dense<0.000000e+00> : vector<8xf32>
    %24 = vector.multi_reduction <add>, %23, %cst_7 [1] : vector<8x512xf32> to vector<8xf32>
    %25 = vector.shape_cast %24 : vector<8xf32> to vector<8x1xf32>
    %cst_8 = arith.constant 0.001953125 : f32
    %26 = vector.broadcast %cst_8 : f32 to vector<8x1xf32>
    %27 = arith.mulf %25, %26 : vector<8x1xf32>
    %28 = vector.broadcast %27 : vector<8x1xf32> to vector<8x512xf32>
    %29 = arith.subf %23, %28 : vector<8x512xf32>
    %30 = arith.mulf %29, %29 : vector<8x512xf32>
    %cst_9 = arith.constant dense<0.000000e+00> : vector<8xf32>
    %31 = vector.multi_reduction <add>, %30, %cst_9 [1] : vector<8x512xf32> to vector<8xf32>
    %32 = vector.shape_cast %31 : vector<8xf32> to vector<8x1xf32>
    %cst_10 = arith.constant 0.001953125 : f32
    %33 = vector.broadcast %cst_10 : f32 to vector<8x1xf32>
    %34 = arith.mulf %32, %33 : vector<8x1xf32>
    %c0_11 = arith.constant 0 : index
    %c0_12 = arith.constant 0 : index
    %35 = vector.load %arg2[%c0_11, %c0_12] : memref<8x1xf32, #tpu.memory_space<vmem>>, vector<8x1xf32>
    %cst_13 = arith.constant 9.99999974E-6 : f32
    %36 = vector.broadcast %cst_13 : f32 to vector<8x1xf32>
    %37 = arith.addf %34, %36 : vector<8x1xf32>
    %38 = math.rsqrt %37 : vector<8x1xf32>
    %39 = arith.mulf %35, %38 : vector<8x1xf32>
    %40 = vector.broadcast %39 : vector<8x1xf32> to vector<8x512xf32>
    %41 = arith.mulf %29, %40 : vector<8x512xf32>
    %c0_14 = arith.constant 0 : index
    %c0_15 = arith.constant 0 : index
    %42 = vector.load %arg3[%c0_14, %c0_15] : memref<8x1xf32, #tpu.memory_space<vmem>>, vector<8x1xf32>
    %43 = vector.broadcast %42 : vector<8x1xf32> to vector<8x512xf32>
    %44 = arith.addf %41, %43 : vector<8x512xf32>
    %45 = vector.extract_strided_slice %44 {offsets = [0, 0], sizes = [8, 256], strides = [1, 1]} : vector<8x512xf32> to vector<8x256xf32>
    %c0_16 = arith.constant 0 : index
    %c32 = arith.constant 32 : index
    %46 = vector.load %arg13[%c0_16, %c32] : memref<16x608xf32, #tpu.memory_space<vmem>>, vector<8x256xf32>
    tpu.vector_store %arg13[%c0_16, %c32], %45 {strides = array<i32>} : memref<16x608xf32, #tpu.memory_space<vmem>>, vector<8x256xf32>,
    %47 = vector.extract_strided_slice %44 {offsets = [0, 256], sizes = [8, 256], strides = [1, 1]} : vector<8x512xf32> to vector<8x256xf32>
    %c0_17 = arith.constant 0 : index
    %c320 = arith.constant 320 : index
    %48 = vector.load %arg13[%c0_17, %c320] : memref<16x608xf32, #tpu.memory_space<vmem>>, vector<8x256xf32>
    tpu.vector_store %arg13[%c0_17, %c320], %47 {strides = array<i32>} : memref<16x608xf32, #tpu.memory_space<vmem>>, vector<8x256xf32>,
    %c0_18 = arith.constant 0 : index
    %c15 = arith.constant 15 : index
    %49 = vector.load %arg13[%c0_18, %c15] : memref<16x608xf32, #tpu.memory_space<vmem>>, vector<8x256xf32>
    %cst_19 = arith.constant 0.000000e+00 : f32
    %50 = vector.shape_cast %18 : vector<1x256xi1> to vector<1x256xi1>
    %51 = vector.broadcast %50 : vector<1x256xi1> to vector<8x256xi1>
    %52 = vector.broadcast %cst_19 : f32 to vector<8x256xf32>
    %53 = arith.select %51, %49, %52 : vector<8x256xi1>, vector<8x256xf32>
    %c0_20 = arith.constant 0 : index
    %c0_21 = arith.constant 0 : index
    %54 = vector.load %arg14[%c0_20, %c0_21] : memref<152x512xf32, #tpu.memory_space<vmem>>, vector<8x256xf32>
    tpu.vector_store %arg14[%c0_20, %c0_21], %53 {strides = array<i32>} : memref<152x512xf32, #tpu.memory_space<vmem>>, vector<8x256xf32>,
    %c0_22 = arith.constant 0 : index
    %c303 = arith.constant 303 : index
    %55 = vector.load %arg13[%c0_22, %c303] : memref<16x608xf32, #tpu.memory_space<vmem>>, vector<8x256xf32>
    %cst_23 = arith.constant 0.000000e+00 : f32
    %56 = vector.shape_cast %18 : vector<1x256xi1> to vector<1x256xi1>
    %57 = vector.broadcast %56 : vector<1x256xi1> to vector<8x256xi1>
    %58 = vector.broadcast %cst_23 : f32 to vector<8x256xf32>
    %59 = arith.select %57, %55, %58 : vector<8x256xi1>, vector<8x256xf32>
    %c0_24 = arith.constant 0 : index
    %c256 = arith.constant 256 : index
    %60 = vector.load %arg14[%c0_24, %c256] : memref<152x512xf32, #tpu.memory_space<vmem>>, vector<8x256xf32>
    tpu.vector_store %arg14[%c0_24, %c256], %59 {strides = array<i32>} : memref<152x512xf32, #tpu.memory_space<vmem>>, vector<8x256xf32>,
    %c0_25 = arith.constant 0 : index
    %c16 = arith.constant 16 : index
    %61 = vector.load %arg13[%c0_25, %c16] : memref<16x608xf32, #tpu.memory_space<vmem>>, vector<8x256xf32>
    %c8 = arith.constant 8 : index
    %c0_26 = arith.constant 0 : index
    %62 = vector.load %arg14[%c8, %c0_26] : memref<152x512xf32, #tpu.memory_space<vmem>>, vector<8x256xf32>
    tpu.vector_store %arg14[%c8, %c0_26], %61 {strides = array<i32>} : memref<152x512xf32, #tpu.memory_space<vmem>>, vector<8x256xf32>,
    %c0_27 = arith.constant 0 : index
    %c304 = arith.constant 304 : index
    %63 = vector.load %arg13[%c0_27, %c304] : memref<16x608xf32, #tpu.memory_space<vmem>>, vector<8x256xf32>
    %c8_28 = arith.constant 8 : index
    %c256_29 = arith.constant 256 : index
    %64 = vector.load %arg14[%c8_28, %c256_29] : memref<152x512xf32, #tpu.memory_space<vmem>>, vector<8x256xf32>
    tpu.vector_store %arg14[%c8_28, %c256_29], %63 {strides = array<i32>} : memref<152x512xf32, #tpu.memory_space<vmem>>, vector<8x256xf32>,
    %c0_30 = arith.constant 0 : index
    %c17 = arith.constant 17 : index
    %65 = vector.load %arg13[%c0_30, %c17] : memref<16x608xf32, #tpu.memory_space<vmem>>, vector<8x256xf32>
    %cst_31 = arith.constant 0.000000e+00 : f32
    %66 = vector.shape_cast %20 : vector<1x256xi1> to vector<1x256xi1>
    %67 = vector.broadcast %66 : vector<1x256xi1> to vector<8x256xi1>
    %68 = vector.broadcast %cst_31 : f32 to vector<8x256xf32>
    %69 = arith.select %67, %65, %68 : vector<8x256xi1>, vector<8x256xf32>
    %c16_32 = arith.constant 16 : index
    %c0_33 = arith.constant 0 : index
    %70 = vector.load %arg14[%c16_32, %c0_33] : memref<152x512xf32, #tpu.memory_space<vmem>>, vector<8x256xf32>
    tpu.vector_store %arg14[%c16_32, %c0_33], %69 {strides = array<i32>} : memref<152x512xf32, #tpu.memory_space<vmem>>, vector<8x256xf32>,
    %c0_34 = arith.constant 0 : index
    %c305 = arith.constant 305 : index
    %71 = vector.load %arg13[%c0_34, %c305] : memref<16x608xf32, #tpu.memory_space<vmem>>, vector<8x256xf32>
    %cst_35 = arith.constant 0.000000e+00 : f32
    %72 = vector.shape_cast %20 : vector<1x256xi1> to vector<1x256xi1>
    %73 = vector.broadcast %72 : vector<1x256xi1> to vector<8x256xi1>
    %74 = vector.broadcast %cst_35 : f32 to vector<8x256xf32>
    %75 = arith.select %73, %71, %74 : vector<8x256xi1>, vector<8x256xf32>
    %c16_36 = arith.constant 16 : index
    %c256_37 = arith.constant 256 : index
    %76 = vector.load %arg14[%c16_36, %c256_37] : memref<152x512xf32, #tpu.memory_space<vmem>>, vector<8x256xf32>
    tpu.vector_store %arg14[%c16_36, %c256_37], %75 {strides = array<i32>} : memref<152x512xf32, #tpu.memory_space<vmem>>, vector<8x256xf32>,
    %c0_38 = arith.constant 0 : index
    %c31 = arith.constant 31 : index
    %77 = vector.load %arg13[%c0_38, %c31] : memref<16x608xf32, #tpu.memory_space<vmem>>, vector<8x256xf32>
    %cst_39 = arith.constant 0.000000e+00 : f32
    %78 = vector.shape_cast %18 : vector<1x256xi1> to vector<1x256xi1>
    %79 = vector.broadcast %78 : vector<1x256xi1> to vector<8x256xi1>
    %80 = vector.broadcast %cst_39 : f32 to vector<8x256xf32>
    %81 = arith.select %79, %77, %80 : vector<8x256xi1>, vector<8x256xf32>
    %c24 = arith.constant 24 : index
    %c0_40 = arith.constant 0 : index
    %82 = vector.load %arg14[%c24, %c0_40] : memref<152x512xf32, #tpu.memory_space<vmem>>, vector<8x256xf32>
    tpu.vector_store %arg14[%c24, %c0_40], %81 {strides = array<i32>} : memref<152x512xf32, #tpu.memory_space<vmem>>, vector<8x256xf32>,
    %c0_41 = arith.constant 0 : index
    %c319 = arith.constant 319 : index
    %83 = vector.load %arg13[%c0_41, %c319] : memref<16x608xf32, #tpu.memory_space<vmem>>, vector<8x256xf32>
    %cst_42 = arith.constant 0.000000e+00 : f32
    %84 = vector.shape_cast %18 : vector<1x256xi1> to vector<1x256xi1>
    %85 = vector.broadcast %84 : vector<1x256xi1> to vector<8x256xi1>
    %86 = vector.broadcast %cst_42 : f32 to vector<8x256xf32>
    %87 = arith.select %85, %83, %86 : vector<8x256xi1>, vector<8x256xf32>
    %c24_43 = arith.constant 24 : index
    %c256_44 = arith.constant 256 : index
    %88 = vector.load %arg14[%c24_43, %c256_44] : memref<152x512xf32, #tpu.memory_space<vmem>>, vector<8x256xf32>
    tpu.vector_store %arg14[%c24_43, %c256_44], %87 {strides = array<i32>} : memref<152x512xf32, #tpu.memory_space<vmem>>, vector<8x256xf32>,
    %c0_45 = arith.constant 0 : index
    %c32_46 = arith.constant 32 : index
    %89 = vector.load %arg13[%c0_45, %c32_46] : memref<16x608xf32, #tpu.memory_space<vmem>>, vector<8x256xf32>
    %c32_47 = arith.constant 32 : index
    %c0_48 = arith.constant 0 : index
    %90 = vector.load %arg14[%c32_47, %c0_48] : memref<152x512xf32, #tpu.memory_space<vmem>>, vector<8x256xf32>
    tpu.vector_store %arg14[%c32_47, %c0_48], %89 {strides = array<i32>} : memref<152x512xf32, #tpu.memory_space<vmem>>, vector<8x256xf32>,
    %c0_49 = arith.constant 0 : index
    %c320_50 = arith.constant 320 : index
    %91 = vector.load %arg13[%c0_49, %c320_50] : memref<16x608xf32, #tpu.memory_space<vmem>>, vector<8x256xf32>
    %c32_51 = arith.constant 32 : index
    %c256_52 = arith.constant 256 : index
    %92 = vector.load %arg14[%c32_51, %c256_52] : memref<152x512xf32, #tpu.memory_space<vmem>>, vector<8x256xf32>
    tpu.vector_store %arg14[%c32_51, %c256_52], %91 {strides = array<i32>} : memref<152x512xf32, #tpu.memory_space<vmem>>, vector<8x256xf32>,
    %c0_53 = arith.constant 0 : index
    %c33 = arith.constant 33 : index
    %93 = vector.load %arg13[%c0_53, %c33] : memref<16x608xf32, #tpu.memory_space<vmem>>, vector<8x256xf32>
    %cst_54 = arith.constant 0.000000e+00 : f32
    %94 = vector.shape_cast %20 : vector<1x256xi1> to vector<1x256xi1>
    %95 = vector.broadcast %94 : vector<1x256xi1> to vector<8x256xi1>
    %96 = vector.broadcast %cst_54 : f32 to vector<8x256xf32>
    %97 = arith.select %95, %93, %96 : vector<8x256xi1>, vector<8x256xf32>
    %c40 = arith.constant 40 : index
    %c0_55 = arith.constant 0 : index
    %98 = vector.load %arg14[%c40, %c0_55] : memref<152x512xf32, #tpu.memory_space<vmem>>, vector<8x256xf32>
    tpu.vector_store %arg14[%c40, %c0_55], %97 {strides = array<i32>} : memref<152x512xf32, #tpu.memory_space<vmem>>, vector<8x256xf32>,
    %c0_56 = arith.constant 0 : index
    %c321 = arith.constant 321 : index
    %99 = vector.load %arg13[%c0_56, %c321] : memref<16x608xf32, #tpu.memory_space<vmem>>, vector<8x256xf32>
    %cst_57 = arith.constant 0.000000e+00 : f32
    %100 = vector.shape_cast %20 : vector<1x256xi1> to vector<1x256xi1>
    %101 = vector.broadcast %100 : vector<1x256xi1> to vector<8x256xi1>
    %102 = vector.broadcast %cst_57 : f32 to vector<8x256xf32>
    %103 = arith.select %101, %99, %102 : vector<8x256xi1>, vector<8x256xf32>
    %c40_58 = arith.constant 40 : index
    %c256_59 = arith.constant 256 : index
    %104 = vector.load %arg14[%c40_58, %c256_59] : memref<152x512xf32, #tpu.memory_space<vmem>>, vector<8x256xf32>
    tpu.vector_store %arg14[%c40_58, %c256_59], %103 {strides = array<i32>} : memref<152x512xf32, #tpu.memory_space<vmem>>, vector<8x256xf32>,
    %c0_60 = arith.constant 0 : index
    %c47 = arith.constant 47 : index
    %105 = vector.load %arg13[%c0_60, %c47] : memref<16x608xf32, #tpu.memory_space<vmem>>, vector<8x256xf32>
    %cst_61 = arith.constant 0.000000e+00 : f32
    %106 = vector.shape_cast %18 : vector<1x256xi1> to vector<1x256xi1>
    %107 = vector.broadcast %106 : vector<1x256xi1> to vector<8x256xi1>
    %108 = vector.broadcast %cst_61 : f32 to vector<8x256xf32>
    %109 = arith.select %107, %105, %108 : vector<8x256xi1>, vector<8x256xf32>
    %c48 = arith.constant 48 : index
    %c0_62 = arith.constant 0 : index
    %110 = vector.load %arg14[%c48, %c0_62] : memref<152x512xf32, #tpu.memory_space<vmem>>, vector<8x256xf32>
    tpu.vector_store %arg14[%c48, %c0_62], %109 {strides = array<i32>} : memref<152x512xf32, #tpu.memory_space<vmem>>, vector<8x256xf32>,
    %c0_63 = arith.constant 0 : index
    %c335 = arith.constant 335 : index
    %111 = vector.load %arg13[%c0_63, %c335] : memref<16x608xf32, #tpu.memory_space<vmem>>, vector<8x256xf32>
    %cst_64 = arith.constant 0.000000e+00 : f32
    %112 = vector.shape_cast %18 : vector<1x256xi1> to vector<1x256xi1>
    %113 = vector.broadcast %112 : vector<1x256xi1> to vector<8x256xi1>
    %114 = vector.broadcast %cst_64 : f32 to vector<8x256xf32>
    %115 = arith.select %113, %111, %114 : vector<8x256xi1>, vector<8x256xf32>
    %c48_65 = arith.constant 48 : index
    %c256_66 = arith.constant 256 : index
    %116 = vector.load %arg14[%c48_65, %c256_66] : memref<152x512xf32, #tpu.memory_space<vmem>>, vector<8x256xf32>
    tpu.vector_store %arg14[%c48_65, %c256_66], %115 {strides = array<i32>} : memref<152x512xf32, #tpu.memory_space<vmem>>, vector<8x256xf32>,
    %c0_67 = arith.constant 0 : index
    %c48_68 = arith.constant 48 : index
    %117 = vector.load %arg13[%c0_67, %c48_68] : memref<16x608xf32, #tpu.memory_space<vmem>>, vector<8x256xf32>
    %c56 = arith.constant 56 : index
    %c0_69 = arith.constant 0 : index
    %118 = vector.load %arg14[%c56, %c0_69] : memref<152x512xf32, #tpu.memory_space<vmem>>, vector<8x256xf32>
    tpu.vector_store %arg14[%c56, %c0_69], %117 {strides = array<i32>} : memref<152x512xf32, #tpu.memory_space<vmem>>, vector<8x256xf32>,
    %c0_70 = arith.constant 0 : index
    %c336 = arith.constant 336 : index
    %119 = vector.load %arg13[%c0_70, %c336] : memref<16x608xf32, #tpu.memory_space<vmem>>, vector<8x256xf32>
    %c56_71 = arith.constant 56 : index
    %c256_72 = arith.constant 256 : index
    %120 = vector.load %arg14[%c56_71, %c256_72] : memref<152x512xf32, #tpu.memory_space<vmem>>, vector<8x256xf32>
    tpu.vector_store %arg14[%c56_71, %c256_72], %119 {strides = array<i32>} : memref<152x512xf32, #tpu.memory_space<vmem>>, vector<8x256xf32>,
    %c0_73 = arith.constant 0 : index
    %c49 = arith.constant 49 : index
    %121 = vector.load %arg13[%c0_73, %c49] : memref<16x608xf32, #tpu.memory_space<vmem>>, vector<8x256xf32>
    %cst_74 = arith.constant 0.000000e+00 : f32
    %122 = vector.shape_cast %20 : vector<1x256xi1> to vector<1x256xi1>
    %123 = vector.broadcast %122 : vector<1x256xi1> to vector<8x256xi1>
    %124 = vector.broadcast %cst_74 : f32 to vector<8x256xf32>
    %125 = arith.select %123, %121, %124 : vector<8x256xi1>, vector<8x256xf32>
    %c64 = arith.constant 64 : index
    %c0_75 = arith.constant 0 : index
    %126 = vector.load %arg14[%c64, %c0_75] : memref<152x512xf32, #tpu.memory_space<vmem>>, vector<8x256xf32>
    tpu.vector_store %arg14[%c64, %c0_75], %125 {strides = array<i32>} : memref<152x512xf32, #tpu.memory_space<vmem>>, vector<8x256xf32>,
    %c0_76 = arith.constant 0 : index
    %c337 = arith.constant 337 : index
    %127 = vector.load %arg13[%c0_76, %c337] : memref<16x608xf32, #tpu.memory_space<vmem>>, vector<8x256xf32>
    %cst_77 = arith.constant 0.000000e+00 : f32
    %128 = vector.shape_cast %20 : vector<1x256xi1> to vector<1x256xi1>
    %129 = vector.broadcast %128 : vector<1x256xi1> to vector<8x256xi1>
    %130 = vector.broadcast %cst_77 : f32 to vector<8x256xf32>
    %131 = arith.select %129, %127, %130 : vector<8x256xi1>, vector<8x256xf32>
    %c64_78 = arith.constant 64 : index
    %c256_79 = arith.constant 256 : index
    %132 = vector.load %arg14[%c64_78, %c256_79] : memref<152x512xf32, #tpu.memory_space<vmem>>, vector<8x256xf32>
    tpu.vector_store %arg14[%c64_78, %c256_79], %131 {strides = array<i32>} : memref<152x512xf32, #tpu.memory_space<vmem>>, vector<8x256xf32>,
    %c0_80 = arith.constant 0 : index
    %c0_81 = arith.constant 0 : index
    %133 = vector.load %arg4[%c0_80, %c0_81] : memref<16x72xf32, #tpu.memory_space<vmem>>, vector<16x72xf32>
    %c0_82 = arith.constant 0 : index
    %c0_83 = arith.constant 0 : index
    %134 = vector.load %arg14[%c0_82, %c0_83] : memref<152x512xf32, #tpu.memory_space<vmem>>, vector<72x512xf32>
    %cst_84 = arith.constant dense<0.000000e+00> : vector<16x512xf32>
    %135 = tpu.matmul %133, %134, %cst_84 {dimension_numbers = #tpu.dot_dimension_numbers<[1], [0], [0], [1], [0, 0, 1, 1], [], []>} : vector<16x72xf32>, vector<72x512xf32>, vector<16x512xf32> -> vector<16x512xf32>
    %136 = arith.negf %135 : vector<16x512xf32>
    %137 = math.exp %136 : vector<16x512xf32>
    %cst_85 = arith.constant 1.000000e+00 : f32
    %138 = vector.broadcast %cst_85 : f32 to vector<16x512xf32>
    %139 = arith.addf %138, %137 : vector<16x512xf32>
    %140 = arith.divf %138, %139 : vector<16x512xf32>
    %141 = arith.mulf %135, %140 : vector<16x512xf32>
    %142 = vector.extract_strided_slice %141 {offsets = [0, 0], sizes = [16, 256], strides = [1, 1]} : vector<16x512xf32> to vector<16x256xf32>
    %c0_86 = arith.constant 0 : index
    %c32_87 = arith.constant 32 : index
    %143 = vector.load %arg13[%c0_86, %c32_87] : memref<16x608xf32, #tpu.memory_space<vmem>>, vector<16x256xf32>
    tpu.vector_store %arg13[%c0_86, %c32_87], %142 {strides = array<i32>} : memref<16x608xf32, #tpu.memory_space<vmem>>, vector<16x256xf32>,
    %144 = vector.extract_strided_slice %141 {offsets = [0, 256], sizes = [16, 256], strides = [1, 1]} : vector<16x512xf32> to vector<16x256xf32>
    %c0_88 = arith.constant 0 : index
    %c320_89 = arith.constant 320 : index
    %145 = vector.load %arg13[%c0_88, %c320_89] : memref<16x608xf32, #tpu.memory_space<vmem>>, vector<16x256xf32>
    tpu.vector_store %arg13[%c0_88, %c320_89], %144 {strides = array<i32>} : memref<16x608xf32, #tpu.memory_space<vmem>>, vector<16x256xf32>,
    %c0_90 = arith.constant 0 : index
    %c15_91 = arith.constant 15 : index
    %146 = vector.load %arg13[%c0_90, %c15_91] : memref<16x608xf32, #tpu.memory_space<vmem>>, vector<16x256xf32>
    %cst_92 = arith.constant 0.000000e+00 : f32
    %147 = vector.shape_cast %18 : vector<1x256xi1> to vector<1x256xi1>
    %148 = vector.broadcast %147 : vector<1x256xi1> to vector<16x256xi1>
    %149 = vector.broadcast %cst_92 : f32 to vector<16x256xf32>
    %150 = arith.select %148, %146, %149 : vector<16x256xi1>, vector<16x256xf32>
    %c0_93 = arith.constant 0 : index
    %c0_94 = arith.constant 0 : index
    %151 = vector.load %arg14[%c0_93, %c0_94] : memref<152x512xf32, #tpu.memory_space<vmem>>, vector<16x256xf32>
    tpu.vector_store %arg14[%c0_93, %c0_94], %150 {strides = array<i32>} : memref<152x512xf32, #tpu.memory_space<vmem>>, vector<16x256xf32>,
    %c0_95 = arith.constant 0 : index
    %c303_96 = arith.constant 303 : index
    %152 = vector.load %arg13[%c0_95, %c303_96] : memref<16x608xf32, #tpu.memory_space<vmem>>, vector<16x256xf32>
    %cst_97 = arith.constant 0.000000e+00 : f32
    %153 = vector.shape_cast %18 : vector<1x256xi1> to vector<1x256xi1>
    %154 = vector.broadcast %153 : vector<1x256xi1> to vector<16x256xi1>
    %155 = vector.broadcast %cst_97 : f32 to vector<16x256xf32>
    %156 = arith.select %154, %152, %155 : vector<16x256xi1>, vector<16x256xf32>
    %c0_98 = arith.constant 0 : index
    %c256_99 = arith.constant 256 : index
    %157 = vector.load %arg14[%c0_98, %c256_99] : memref<152x512xf32, #tpu.memory_space<vmem>>, vector<16x256xf32>
    tpu.vector_store %arg14[%c0_98, %c256_99], %156 {strides = array<i32>} : memref<152x512xf32, #tpu.memory_space<vmem>>, vector<16x256xf32>,
    %c0_100 = arith.constant 0 : index
    %c16_101 = arith.constant 16 : index
    %158 = vector.load %arg13[%c0_100, %c16_101] : memref<16x608xf32, #tpu.memory_space<vmem>>, vector<16x256xf32>
    %c16_102 = arith.constant 16 : index
    %c0_103 = arith.constant 0 : index
    %159 = vector.load %arg14[%c16_102, %c0_103] : memref<152x512xf32, #tpu.memory_space<vmem>>, vector<16x256xf32>
    tpu.vector_store %arg14[%c16_102, %c0_103], %158 {strides = array<i32>} : memref<152x512xf32, #tpu.memory_space<vmem>>, vector<16x256xf32>,
    %c0_104 = arith.constant 0 : index
    %c304_105 = arith.constant 304 : index
    %160 = vector.load %arg13[%c0_104, %c304_105] : memref<16x608xf32, #tpu.memory_space<vmem>>, vector<16x256xf32>
    %c16_106 = arith.constant 16 : index
    %c256_107 = arith.constant 256 : index
    %161 = vector.load %arg14[%c16_106, %c256_107] : memref<152x512xf32, #tpu.memory_space<vmem>>, vector<16x256xf32>
    tpu.vector_store %arg14[%c16_106, %c256_107], %160 {strides = array<i32>} : memref<152x512xf32, #tpu.memory_space<vmem>>, vector<16x256xf32>,
    %c0_108 = arith.constant 0 : index
    %c17_109 = arith.constant 17 : index
    %162 = vector.load %arg13[%c0_108, %c17_109] : memref<16x608xf32, #tpu.memory_space<vmem>>, vector<16x256xf32>
    %cst_110 = arith.constant 0.000000e+00 : f32
    %163 = vector.shape_cast %20 : vector<1x256xi1> to vector<1x256xi1>
    %164 = vector.broadcast %163 : vector<1x256xi1> to vector<16x256xi1>
    %165 = vector.broadcast %cst_110 : f32 to vector<16x256xf32>
    %166 = arith.select %164, %162, %165 : vector<16x256xi1>, vector<16x256xf32>
    %c32_111 = arith.constant 32 : index
    %c0_112 = arith.constant 0 : index
    %167 = vector.load %arg14[%c32_111, %c0_112] : memref<152x512xf32, #tpu.memory_space<vmem>>, vector<16x256xf32>
    tpu.vector_store %arg14[%c32_111, %c0_112], %166 {strides = array<i32>} : memref<152x512xf32, #tpu.memory_space<vmem>>, vector<16x256xf32>,
    %c0_113 = arith.constant 0 : index
    %c305_114 = arith.constant 305 : index
    %168 = vector.load %arg13[%c0_113, %c305_114] : memref<16x608xf32, #tpu.memory_space<vmem>>, vector<16x256xf32>
    %cst_115 = arith.constant 0.000000e+00 : f32
    %169 = vector.shape_cast %20 : vector<1x256xi1> to vector<1x256xi1>
    %170 = vector.broadcast %169 : vector<1x256xi1> to vector<16x256xi1>
    %171 = vector.broadcast %cst_115 : f32 to vector<16x256xf32>
    %172 = arith.select %170, %168, %171 : vector<16x256xi1>, vector<16x256xf32>
    %c32_116 = arith.constant 32 : index
    %c256_117 = arith.constant 256 : index
    %173 = vector.load %arg14[%c32_116, %c256_117] : memref<152x512xf32, #tpu.memory_space<vmem>>, vector<16x256xf32>
    tpu.vector_store %arg14[%c32_116, %c256_117], %172 {strides = array<i32>} : memref<152x512xf32, #tpu.memory_space<vmem>>, vector<16x256xf32>,
    %c0_118 = arith.constant 0 : index
    %c31_119 = arith.constant 31 : index
    %174 = vector.load %arg13[%c0_118, %c31_119] : memref<16x608xf32, #tpu.memory_space<vmem>>, vector<16x256xf32>
    %cst_120 = arith.constant 0.000000e+00 : f32
    %175 = vector.shape_cast %18 : vector<1x256xi1> to vector<1x256xi1>
    %176 = vector.broadcast %175 : vector<1x256xi1> to vector<16x256xi1>
    %177 = vector.broadcast %cst_120 : f32 to vector<16x256xf32>
    %178 = arith.select %176, %174, %177 : vector<16x256xi1>, vector<16x256xf32>
    %c48_121 = arith.constant 48 : index
    %c0_122 = arith.constant 0 : index
    %179 = vector.load %arg14[%c48_121, %c0_122] : memref<152x512xf32, #tpu.memory_space<vmem>>, vector<16x256xf32>
    tpu.vector_store %arg14[%c48_121, %c0_122], %178 {strides = array<i32>} : memref<152x512xf32, #tpu.memory_space<vmem>>, vector<16x256xf32>,
    %c0_123 = arith.constant 0 : index
    %c319_124 = arith.constant 319 : index
    %180 = vector.load %arg13[%c0_123, %c319_124] : memref<16x608xf32, #tpu.memory_space<vmem>>, vector<16x256xf32>
    %cst_125 = arith.constant 0.000000e+00 : f32
    %181 = vector.shape_cast %18 : vector<1x256xi1> to vector<1x256xi1>
    %182 = vector.broadcast %181 : vector<1x256xi1> to vector<16x256xi1>
    %183 = vector.broadcast %cst_125 : f32 to vector<16x256xf32>
    %184 = arith.select %182, %180, %183 : vector<16x256xi1>, vector<16x256xf32>
    %c48_126 = arith.constant 48 : index
    %c256_127 = arith.constant 256 : index
    %185 = vector.load %arg14[%c48_126, %c256_127] : memref<152x512xf32, #tpu.memory_space<vmem>>, vector<16x256xf32>
    tpu.vector_store %arg14[%c48_126, %c256_127], %184 {strides = array<i32>} : memref<152x512xf32, #tpu.memory_space<vmem>>, vector<16x256xf32>,
    %c0_128 = arith.constant 0 : index
    %c32_129 = arith.constant 32 : index
    %186 = vector.load %arg13[%c0_128, %c32_129] : memref<16x608xf32, #tpu.memory_space<vmem>>, vector<16x256xf32>
    %c64_130 = arith.constant 64 : index
    %c0_131 = arith.constant 0 : index
    %187 = vector.load %arg14[%c64_130, %c0_131] : memref<152x512xf32, #tpu.memory_space<vmem>>, vector<16x256xf32>
    tpu.vector_store %arg14[%c64_130, %c0_131], %186 {strides = array<i32>} : memref<152x512xf32, #tpu.memory_space<vmem>>, vector<16x256xf32>,
    %c0_132 = arith.constant 0 : index
    %c320_133 = arith.constant 320 : index
    %188 = vector.load %arg13[%c0_132, %c320_133] : memref<16x608xf32, #tpu.memory_space<vmem>>, vector<16x256xf32>
    %c64_134 = arith.constant 64 : index
    %c256_135 = arith.constant 256 : index
    %189 = vector.load %arg14[%c64_134, %c256_135] : memref<152x512xf32, #tpu.memory_space<vmem>>, vector<16x256xf32>
    tpu.vector_store %arg14[%c64_134, %c256_135], %188 {strides = array<i32>} : memref<152x512xf32, #tpu.memory_space<vmem>>, vector<16x256xf32>,
    %c0_136 = arith.constant 0 : index
    %c33_137 = arith.constant 33 : index
    %190 = vector.load %arg13[%c0_136, %c33_137] : memref<16x608xf32, #tpu.memory_space<vmem>>, vector<16x256xf32>
    %cst_138 = arith.constant 0.000000e+00 : f32
    %191 = vector.shape_cast %20 : vector<1x256xi1> to vector<1x256xi1>
    %192 = vector.broadcast %191 : vector<1x256xi1> to vector<16x256xi1>
    %193 = vector.broadcast %cst_138 : f32 to vector<16x256xf32>
    %194 = arith.select %192, %190, %193 : vector<16x256xi1>, vector<16x256xf32>
    %c80 = arith.constant 80 : index
    %c0_139 = arith.constant 0 : index
    %195 = vector.load %arg14[%c80, %c0_139] : memref<152x512xf32, #tpu.memory_space<vmem>>, vector<16x256xf32>
    tpu.vector_store %arg14[%c80, %c0_139], %194 {strides = array<i32>} : memref<152x512xf32, #tpu.memory_space<vmem>>, vector<16x256xf32>,
    %c0_140 = arith.constant 0 : index
    %c321_141 = arith.constant 321 : index
    %196 = vector.load %arg13[%c0_140, %c321_141] : memref<16x608xf32, #tpu.memory_space<vmem>>, vector<16x256xf32>
    %cst_142 = arith.constant 0.000000e+00 : f32
    %197 = vector.shape_cast %20 : vector<1x256xi1> to vector<1x256xi1>
    %198 = vector.broadcast %197 : vector<1x256xi1> to vector<16x256xi1>
    %199 = vector.broadcast %cst_142 : f32 to vector<16x256xf32>
    %200 = arith.select %198, %196, %199 : vector<16x256xi1>, vector<16x256xf32>
    %c80_143 = arith.constant 80 : index
    %c256_144 = arith.constant 256 : index
    %201 = vector.load %arg14[%c80_143, %c256_144] : memref<152x512xf32, #tpu.memory_space<vmem>>, vector<16x256xf32>
    tpu.vector_store %arg14[%c80_143, %c256_144], %200 {strides = array<i32>} : memref<152x512xf32, #tpu.memory_space<vmem>>, vector<16x256xf32>,
    %c0_145 = arith.constant 0 : index
    %c47_146 = arith.constant 47 : index
    %202 = vector.load %arg13[%c0_145, %c47_146] : memref<16x608xf32, #tpu.memory_space<vmem>>, vector<16x256xf32>
    %cst_147 = arith.constant 0.000000e+00 : f32
    %203 = vector.shape_cast %18 : vector<1x256xi1> to vector<1x256xi1>
    %204 = vector.broadcast %203 : vector<1x256xi1> to vector<16x256xi1>
    %205 = vector.broadcast %cst_147 : f32 to vector<16x256xf32>
    %206 = arith.select %204, %202, %205 : vector<16x256xi1>, vector<16x256xf32>
    %c96 = arith.constant 96 : index
    %c0_148 = arith.constant 0 : index
    %207 = vector.load %arg14[%c96, %c0_148] : memref<152x512xf32, #tpu.memory_space<vmem>>, vector<16x256xf32>
    tpu.vector_store %arg14[%c96, %c0_148], %206 {strides = array<i32>} : memref<152x512xf32, #tpu.memory_space<vmem>>, vector<16x256xf32>,
    %c0_149 = arith.constant 0 : index
    %c335_150 = arith.constant 335 : index
    %208 = vector.load %arg13[%c0_149, %c335_150] : memref<16x608xf32, #tpu.memory_space<vmem>>, vector<16x256xf32>
    %cst_151 = arith.constant 0.000000e+00 : f32
    %209 = vector.shape_cast %18 : vector<1x256xi1> to vector<1x256xi1>
    %210 = vector.broadcast %209 : vector<1x256xi1> to vector<16x256xi1>
    %211 = vector.broadcast %cst_151 : f32 to vector<16x256xf32>
    %212 = arith.select %210, %208, %211 : vector<16x256xi1>, vector<16x256xf32>
    %c96_152 = arith.constant 96 : index
    %c256_153 = arith.constant 256 : index
    %213 = vector.load %arg14[%c96_152, %c256_153] : memref<152x512xf32, #tpu.memory_space<vmem>>, vector<16x256xf32>
    tpu.vector_store %arg14[%c96_152, %c256_153], %212 {strides = array<i32>} : memref<152x512xf32, #tpu.memory_space<vmem>>, vector<16x256xf32>,
    %c0_154 = arith.constant 0 : index
    %c48_155 = arith.constant 48 : index
    %214 = vector.load %arg13[%c0_154, %c48_155] : memref<16x608xf32, #tpu.memory_space<vmem>>, vector<16x256xf32>
    %c112 = arith.constant 112 : index
    %c0_156 = arith.constant 0 : index
    %215 = vector.load %arg14[%c112, %c0_156] : memref<152x512xf32, #tpu.memory_space<vmem>>, vector<16x256xf32>
    tpu.vector_store %arg14[%c112, %c0_156], %214 {strides = array<i32>} : memref<152x512xf32, #tpu.memory_space<vmem>>, vector<16x256xf32>,
    %c0_157 = arith.constant 0 : index
    %c336_158 = arith.constant 336 : index
    %216 = vector.load %arg13[%c0_157, %c336_158] : memref<16x608xf32, #tpu.memory_space<vmem>>, vector<16x256xf32>
    %c112_159 = arith.constant 112 : index
    %c256_160 = arith.constant 256 : index
    %217 = vector.load %arg14[%c112_159, %c256_160] : memref<152x512xf32, #tpu.memory_space<vmem>>, vector<16x256xf32>
    tpu.vector_store %arg14[%c112_159, %c256_160], %216 {strides = array<i32>} : memref<152x512xf32, #tpu.memory_space<vmem>>, vector<16x256xf32>,
    %c0_161 = arith.constant 0 : index
    %c49_162 = arith.constant 49 : index
    %218 = vector.load %arg13[%c0_161, %c49_162] : memref<16x608xf32, #tpu.memory_space<vmem>>, vector<16x256xf32>
    %cst_163 = arith.constant 0.000000e+00 : f32
    %219 = vector.shape_cast %20 : vector<1x256xi1> to vector<1x256xi1>
    %220 = vector.broadcast %219 : vector<1x256xi1> to vector<16x256xi1>
    %221 = vector.broadcast %cst_163 : f32 to vector<16x256xf32>
    %222 = arith.select %220, %218, %221 : vector<16x256xi1>, vector<16x256xf32>
    %c128 = arith.constant 128 : index
    %c0_164 = arith.constant 0 : index
    %223 = vector.load %arg14[%c128, %c0_164] : memref<152x512xf32, #tpu.memory_space<vmem>>, vector<16x256xf32>
    tpu.vector_store %arg14[%c128, %c0_164], %222 {strides = array<i32>} : memref<152x512xf32, #tpu.memory_space<vmem>>, vector<16x256xf32>,
    %c0_165 = arith.constant 0 : index
    %c337_166 = arith.constant 337 : index
    %224 = vector.load %arg13[%c0_165, %c337_166] : memref<16x608xf32, #tpu.memory_space<vmem>>, vector<16x256xf32>
    %cst_167 = arith.constant 0.000000e+00 : f32
    %225 = vector.shape_cast %20 : vector<1x256xi1> to vector<1x256xi1>
    %226 = vector.broadcast %225 : vector<1x256xi1> to vector<16x256xi1>
    %227 = vector.broadcast %cst_167 : f32 to vector<16x256xf32>
    %228 = arith.select %226, %224, %227 : vector<16x256xi1>, vector<16x256xf32>
    %c128_168 = arith.constant 128 : index
    %c256_169 = arith.constant 256 : index
    %229 = vector.load %arg14[%c128_168, %c256_169] : memref<152x512xf32, #tpu.memory_space<vmem>>, vector<16x256xf32>
    tpu.vector_store %arg14[%c128_168, %c256_169], %228 {strides = array<i32>} : memref<152x512xf32, #tpu.memory_space<vmem>>, vector<16x256xf32>,
    %c144 = arith.constant 144 : index
    %c0_170 = arith.constant 0 : index
    %230 = vector.load %arg14[%c144, %c0_170] : memref<152x512xf32, #tpu.memory_space<vmem>>, vector<8x512xf32>
    tpu.vector_store %arg14[%c144, %c0_170], %23 {strides = array<i32>} : memref<152x512xf32, #tpu.memory_space<vmem>>, vector<8x512xf32>,
    %c0_171 = arith.constant 0 : index
    %c0_172 = arith.constant 0 : index
    %231 = vector.load %arg5[%c0_171, %c0_172] : memref<16x152xf32, #tpu.memory_space<vmem>>, vector<16x152xf32>
    %c0_173 = arith.constant 0 : index
    %c0_174 = arith.constant 0 : index
    %232 = vector.load %arg14[%c0_173, %c0_174] : memref<152x512xf32, #tpu.memory_space<vmem>>, vector<152x512xf32>
    %cst_175 = arith.constant dense<0.000000e+00> : vector<16x512xf32>
    %233 = tpu.matmul %231, %232, %cst_175 {dimension_numbers = #tpu.dot_dimension_numbers<[1], [0], [0], [1], [0, 0, 1, 1], [], []>} : vector<16x152xf32>, vector<152x512xf32>, vector<16x512xf32> -> vector<16x512xf32>
    %c0_176 = arith.constant 0 : index
    %c0_177 = arith.constant 0 : index
    %234 = vector.load %arg10[%c0_176, %c0_177] : memref<16x512xf32, #tpu.memory_space<vmem>>, vector<16x512xf32>
    tpu.vector_store %arg10[%c0_176, %c0_177], %233 {strides = array<i32>} : memref<16x512xf32, #tpu.memory_space<vmem>>, vector<16x512xf32>,
    %cst_178 = arith.constant dense<0.000000e+00> : vector<16xf32>
    %235 = vector.multi_reduction <add>, %233, %cst_178 [1] : vector<16x512xf32> to vector<16xf32>
    %236 = vector.shape_cast %235 : vector<16xf32> to vector<16x1xf32>
    %cst_179 = arith.constant 0.001953125 : f32
    %237 = vector.broadcast %cst_179 : f32 to vector<16x1xf32>
    %238 = arith.mulf %236, %237 : vector<16x1xf32>
    %239 = vector.broadcast %238 : vector<16x1xf32> to vector<16x512xf32>
    %240 = arith.subf %233, %239 : vector<16x512xf32>
    %241 = arith.mulf %240, %240 : vector<16x512xf32>
    %cst_180 = arith.constant dense<0.000000e+00> : vector<16xf32>
    %242 = vector.multi_reduction <add>, %241, %cst_180 [1] : vector<16x512xf32> to vector<16xf32>
    %243 = vector.shape_cast %242 : vector<16xf32> to vector<16x1xf32>
    %cst_181 = arith.constant 0.001953125 : f32
    %244 = vector.broadcast %cst_181 : f32 to vector<16x1xf32>
    %245 = arith.mulf %243, %244 : vector<16x1xf32>
    %c0_182 = arith.constant 0 : index
    %c0_183 = arith.constant 0 : index
    %246 = vector.load %arg6[%c0_182, %c0_183] : memref<16x1xf32, #tpu.memory_space<vmem>>, vector<16x1xf32>
    %cst_184 = arith.constant 9.99999974E-6 : f32
    %247 = vector.broadcast %cst_184 : f32 to vector<16x1xf32>
    %248 = arith.addf %245, %247 : vector<16x1xf32>
    %249 = math.rsqrt %248 : vector<16x1xf32>
    %250 = arith.mulf %246, %249 : vector<16x1xf32>
    %251 = vector.broadcast %250 : vector<16x1xf32> to vector<16x512xf32>
    %252 = arith.mulf %240, %251 : vector<16x512xf32>
    %c0_185 = arith.constant 0 : index
    %c0_186 = arith.constant 0 : index
    %253 = vector.load %arg7[%c0_185, %c0_186] : memref<16x1xf32, #tpu.memory_space<vmem>>, vector<16x1xf32>
    %254 = vector.broadcast %253 : vector<16x1xf32> to vector<16x512xf32>
    %255 = arith.addf %252, %254 : vector<16x512xf32>
    %256 = vector.extract_strided_slice %255 {offsets = [0, 0], sizes = [16, 256], strides = [1, 1]} : vector<16x512xf32> to vector<16x256xf32>
    %c0_187 = arith.constant 0 : index
    %c32_188 = arith.constant 32 : index
    %257 = vector.load %arg13[%c0_187, %c32_188] : memref<16x608xf32, #tpu.memory_space<vmem>>, vector<16x256xf32>
    tpu.vector_store %arg13[%c0_187, %c32_188], %256 {strides = array<i32>} : memref<16x608xf32, #tpu.memory_space<vmem>>, vector<16x256xf32>,
    %258 = vector.extract_strided_slice %255 {offsets = [0, 256], sizes = [16, 256], strides = [1, 1]} : vector<16x512xf32> to vector<16x256xf32>
    %c0_189 = arith.constant 0 : index
    %c320_190 = arith.constant 320 : index
    %259 = vector.load %arg13[%c0_189, %c320_190] : memref<16x608xf32, #tpu.memory_space<vmem>>, vector<16x256xf32>
    tpu.vector_store %arg13[%c0_189, %c320_190], %258 {strides = array<i32>} : memref<16x608xf32, #tpu.memory_space<vmem>>, vector<16x256xf32>,
    %c0_191 = arith.constant 0 : index
    %c15_192 = arith.constant 15 : index
    %260 = vector.load %arg13[%c0_191, %c15_192] : memref<16x608xf32, #tpu.memory_space<vmem>>, vector<16x256xf32>
    %cst_193 = arith.constant 0.000000e+00 : f32
    %261 = vector.shape_cast %18 : vector<1x256xi1> to vector<1x256xi1>
    %262 = vector.broadcast %261 : vector<1x256xi1> to vector<16x256xi1>
    %263 = vector.broadcast %cst_193 : f32 to vector<16x256xf32>
    %264 = arith.select %262, %260, %263 : vector<16x256xi1>, vector<16x256xf32>
    %c0_194 = arith.constant 0 : index
    %c0_195 = arith.constant 0 : index
    %265 = vector.load %arg14[%c0_194, %c0_195] : memref<152x512xf32, #tpu.memory_space<vmem>>, vector<16x256xf32>
    tpu.vector_store %arg14[%c0_194, %c0_195], %264 {strides = array<i32>} : memref<152x512xf32, #tpu.memory_space<vmem>>, vector<16x256xf32>,
    %c0_196 = arith.constant 0 : index
    %c303_197 = arith.constant 303 : index
    %266 = vector.load %arg13[%c0_196, %c303_197] : memref<16x608xf32, #tpu.memory_space<vmem>>, vector<16x256xf32>
    %cst_198 = arith.constant 0.000000e+00 : f32
    %267 = vector.shape_cast %18 : vector<1x256xi1> to vector<1x256xi1>
    %268 = vector.broadcast %267 : vector<1x256xi1> to vector<16x256xi1>
    %269 = vector.broadcast %cst_198 : f32 to vector<16x256xf32>
    %270 = arith.select %268, %266, %269 : vector<16x256xi1>, vector<16x256xf32>
    %c0_199 = arith.constant 0 : index
    %c256_200 = arith.constant 256 : index
    %271 = vector.load %arg14[%c0_199, %c256_200] : memref<152x512xf32, #tpu.memory_space<vmem>>, vector<16x256xf32>
    tpu.vector_store %arg14[%c0_199, %c256_200], %270 {strides = array<i32>} : memref<152x512xf32, #tpu.memory_space<vmem>>, vector<16x256xf32>,
    %c0_201 = arith.constant 0 : index
    %c16_202 = arith.constant 16 : index
    %272 = vector.load %arg13[%c0_201, %c16_202] : memref<16x608xf32, #tpu.memory_space<vmem>>, vector<16x256xf32>
    %c16_203 = arith.constant 16 : index
    %c0_204 = arith.constant 0 : index
    %273 = vector.load %arg14[%c16_203, %c0_204] : memref<152x512xf32, #tpu.memory_space<vmem>>, vector<16x256xf32>
    tpu.vector_store %arg14[%c16_203, %c0_204], %272 {strides = array<i32>} : memref<152x512xf32, #tpu.memory_space<vmem>>, vector<16x256xf32>,
    %c0_205 = arith.constant 0 : index
    %c304_206 = arith.constant 304 : index
    %274 = vector.load %arg13[%c0_205, %c304_206] : memref<16x608xf32, #tpu.memory_space<vmem>>, vector<16x256xf32>
    %c16_207 = arith.constant 16 : index
    %c256_208 = arith.constant 256 : index
    %275 = vector.load %arg14[%c16_207, %c256_208] : memref<152x512xf32, #tpu.memory_space<vmem>>, vector<16x256xf32>
    tpu.vector_store %arg14[%c16_207, %c256_208], %274 {strides = array<i32>} : memref<152x512xf32, #tpu.memory_space<vmem>>, vector<16x256xf32>,
    %c0_209 = arith.constant 0 : index
    %c17_210 = arith.constant 17 : index
    %276 = vector.load %arg13[%c0_209, %c17_210] : memref<16x608xf32, #tpu.memory_space<vmem>>, vector<16x256xf32>
    %cst_211 = arith.constant 0.000000e+00 : f32
    %277 = vector.shape_cast %20 : vector<1x256xi1> to vector<1x256xi1>
    %278 = vector.broadcast %277 : vector<1x256xi1> to vector<16x256xi1>
    %279 = vector.broadcast %cst_211 : f32 to vector<16x256xf32>
    %280 = arith.select %278, %276, %279 : vector<16x256xi1>, vector<16x256xf32>
    %c32_212 = arith.constant 32 : index
    %c0_213 = arith.constant 0 : index
    %281 = vector.load %arg14[%c32_212, %c0_213] : memref<152x512xf32, #tpu.memory_space<vmem>>, vector<16x256xf32>
    tpu.vector_store %arg14[%c32_212, %c0_213], %280 {strides = array<i32>} : memref<152x512xf32, #tpu.memory_space<vmem>>, vector<16x256xf32>,
    %c0_214 = arith.constant 0 : index
    %c305_215 = arith.constant 305 : index
    %282 = vector.load %arg13[%c0_214, %c305_215] : memref<16x608xf32, #tpu.memory_space<vmem>>, vector<16x256xf32>
    %cst_216 = arith.constant 0.000000e+00 : f32
    %283 = vector.shape_cast %20 : vector<1x256xi1> to vector<1x256xi1>
    %284 = vector.broadcast %283 : vector<1x256xi1> to vector<16x256xi1>
    %285 = vector.broadcast %cst_216 : f32 to vector<16x256xf32>
    %286 = arith.select %284, %282, %285 : vector<16x256xi1>, vector<16x256xf32>
    %c32_217 = arith.constant 32 : index
    %c256_218 = arith.constant 256 : index
    %287 = vector.load %arg14[%c32_217, %c256_218] : memref<152x512xf32, #tpu.memory_space<vmem>>, vector<16x256xf32>
    tpu.vector_store %arg14[%c32_217, %c256_218], %286 {strides = array<i32>} : memref<152x512xf32, #tpu.memory_space<vmem>>, vector<16x256xf32>,
    %c0_219 = arith.constant 0 : index
    %c31_220 = arith.constant 31 : index
    %288 = vector.load %arg13[%c0_219, %c31_220] : memref<16x608xf32, #tpu.memory_space<vmem>>, vector<16x256xf32>
    %cst_221 = arith.constant 0.000000e+00 : f32
    %289 = vector.shape_cast %18 : vector<1x256xi1> to vector<1x256xi1>
    %290 = vector.broadcast %289 : vector<1x256xi1> to vector<16x256xi1>
    %291 = vector.broadcast %cst_221 : f32 to vector<16x256xf32>
    %292 = arith.select %290, %288, %291 : vector<16x256xi1>, vector<16x256xf32>
    %c48_222 = arith.constant 48 : index
    %c0_223 = arith.constant 0 : index
    %293 = vector.load %arg14[%c48_222, %c0_223] : memref<152x512xf32, #tpu.memory_space<vmem>>, vector<16x256xf32>
    tpu.vector_store %arg14[%c48_222, %c0_223], %292 {strides = array<i32>} : memref<152x512xf32, #tpu.memory_space<vmem>>, vector<16x256xf32>,
    %c0_224 = arith.constant 0 : index
    %c319_225 = arith.constant 319 : index
    %294 = vector.load %arg13[%c0_224, %c319_225] : memref<16x608xf32, #tpu.memory_space<vmem>>, vector<16x256xf32>
    %cst_226 = arith.constant 0.000000e+00 : f32
    %295 = vector.shape_cast %18 : vector<1x256xi1> to vector<1x256xi1>
    %296 = vector.broadcast %295 : vector<1x256xi1> to vector<16x256xi1>
    %297 = vector.broadcast %cst_226 : f32 to vector<16x256xf32>
    %298 = arith.select %296, %294, %297 : vector<16x256xi1>, vector<16x256xf32>
    %c48_227 = arith.constant 48 : index
    %c256_228 = arith.constant 256 : index
    %299 = vector.load %arg14[%c48_227, %c256_228] : memref<152x512xf32, #tpu.memory_space<vmem>>, vector<16x256xf32>
    tpu.vector_store %arg14[%c48_227, %c256_228], %298 {strides = array<i32>} : memref<152x512xf32, #tpu.memory_space<vmem>>, vector<16x256xf32>,
    %c0_229 = arith.constant 0 : index
    %c32_230 = arith.constant 32 : index
    %300 = vector.load %arg13[%c0_229, %c32_230] : memref<16x608xf32, #tpu.memory_space<vmem>>, vector<16x256xf32>
    %c64_231 = arith.constant 64 : index
    %c0_232 = arith.constant 0 : index
    %301 = vector.load %arg14[%c64_231, %c0_232] : memref<152x512xf32, #tpu.memory_space<vmem>>, vector<16x256xf32>
    tpu.vector_store %arg14[%c64_231, %c0_232], %300 {strides = array<i32>} : memref<152x512xf32, #tpu.memory_space<vmem>>, vector<16x256xf32>,
    %c0_233 = arith.constant 0 : index
    %c320_234 = arith.constant 320 : index
    %302 = vector.load %arg13[%c0_233, %c320_234] : memref<16x608xf32, #tpu.memory_space<vmem>>, vector<16x256xf32>
    %c64_235 = arith.constant 64 : index
    %c256_236 = arith.constant 256 : index
    %303 = vector.load %arg14[%c64_235, %c256_236] : memref<152x512xf32, #tpu.memory_space<vmem>>, vector<16x256xf32>
    tpu.vector_store %arg14[%c64_235, %c256_236], %302 {strides = array<i32>} : memref<152x512xf32, #tpu.memory_space<vmem>>, vector<16x256xf32>,
    %c0_237 = arith.constant 0 : index
    %c33_238 = arith.constant 33 : index
    %304 = vector.load %arg13[%c0_237, %c33_238] : memref<16x608xf32, #tpu.memory_space<vmem>>, vector<16x256xf32>
    %cst_239 = arith.constant 0.000000e+00 : f32
    %305 = vector.shape_cast %20 : vector<1x256xi1> to vector<1x256xi1>
    %306 = vector.broadcast %305 : vector<1x256xi1> to vector<16x256xi1>
    %307 = vector.broadcast %cst_239 : f32 to vector<16x256xf32>
    %308 = arith.select %306, %304, %307 : vector<16x256xi1>, vector<16x256xf32>
    %c80_240 = arith.constant 80 : index
    %c0_241 = arith.constant 0 : index
    %309 = vector.load %arg14[%c80_240, %c0_241] : memref<152x512xf32, #tpu.memory_space<vmem>>, vector<16x256xf32>
    tpu.vector_store %arg14[%c80_240, %c0_241], %308 {strides = array<i32>} : memref<152x512xf32, #tpu.memory_space<vmem>>, vector<16x256xf32>,
    %c0_242 = arith.constant 0 : index
    %c321_243 = arith.constant 321 : index
    %310 = vector.load %arg13[%c0_242, %c321_243] : memref<16x608xf32, #tpu.memory_space<vmem>>, vector<16x256xf32>
    %cst_244 = arith.constant 0.000000e+00 : f32
    %311 = vector.shape_cast %20 : vector<1x256xi1> to vector<1x256xi1>
    %312 = vector.broadcast %311 : vector<1x256xi1> to vector<16x256xi1>
    %313 = vector.broadcast %cst_244 : f32 to vector<16x256xf32>
    %314 = arith.select %312, %310, %313 : vector<16x256xi1>, vector<16x256xf32>
    %c80_245 = arith.constant 80 : index
    %c256_246 = arith.constant 256 : index
    %315 = vector.load %arg14[%c80_245, %c256_246] : memref<152x512xf32, #tpu.memory_space<vmem>>, vector<16x256xf32>
    tpu.vector_store %arg14[%c80_245, %c256_246], %314 {strides = array<i32>} : memref<152x512xf32, #tpu.memory_space<vmem>>, vector<16x256xf32>,
    %c0_247 = arith.constant 0 : index
    %c47_248 = arith.constant 47 : index
    %316 = vector.load %arg13[%c0_247, %c47_248] : memref<16x608xf32, #tpu.memory_space<vmem>>, vector<16x256xf32>
    %cst_249 = arith.constant 0.000000e+00 : f32
    %317 = vector.shape_cast %18 : vector<1x256xi1> to vector<1x256xi1>
    %318 = vector.broadcast %317 : vector<1x256xi1> to vector<16x256xi1>
    %319 = vector.broadcast %cst_249 : f32 to vector<16x256xf32>
    %320 = arith.select %318, %316, %319 : vector<16x256xi1>, vector<16x256xf32>
    %c96_250 = arith.constant 96 : index
    %c0_251 = arith.constant 0 : index
    %321 = vector.load %arg14[%c96_250, %c0_251] : memref<152x512xf32, #tpu.memory_space<vmem>>, vector<16x256xf32>
    tpu.vector_store %arg14[%c96_250, %c0_251], %320 {strides = array<i32>} : memref<152x512xf32, #tpu.memory_space<vmem>>, vector<16x256xf32>,
    %c0_252 = arith.constant 0 : index
    %c335_253 = arith.constant 335 : index
    %322 = vector.load %arg13[%c0_252, %c335_253] : memref<16x608xf32, #tpu.memory_space<vmem>>, vector<16x256xf32>
    %cst_254 = arith.constant 0.000000e+00 : f32
    %323 = vector.shape_cast %18 : vector<1x256xi1> to vector<1x256xi1>
    %324 = vector.broadcast %323 : vector<1x256xi1> to vector<16x256xi1>
    %325 = vector.broadcast %cst_254 : f32 to vector<16x256xf32>
    %326 = arith.select %324, %322, %325 : vector<16x256xi1>, vector<16x256xf32>
    %c96_255 = arith.constant 96 : index
    %c256_256 = arith.constant 256 : index
    %327 = vector.load %arg14[%c96_255, %c256_256] : memref<152x512xf32, #tpu.memory_space<vmem>>, vector<16x256xf32>
    tpu.vector_store %arg14[%c96_255, %c256_256], %326 {strides = array<i32>} : memref<152x512xf32, #tpu.memory_space<vmem>>, vector<16x256xf32>,
    %c0_257 = arith.constant 0 : index
    %c48_258 = arith.constant 48 : index
    %328 = vector.load %arg13[%c0_257, %c48_258] : memref<16x608xf32, #tpu.memory_space<vmem>>, vector<16x256xf32>
    %c112_259 = arith.constant 112 : index
    %c0_260 = arith.constant 0 : index
    %329 = vector.load %arg14[%c112_259, %c0_260] : memref<152x512xf32, #tpu.memory_space<vmem>>, vector<16x256xf32>
    tpu.vector_store %arg14[%c112_259, %c0_260], %328 {strides = array<i32>} : memref<152x512xf32, #tpu.memory_space<vmem>>, vector<16x256xf32>,
    %c0_261 = arith.constant 0 : index
    %c336_262 = arith.constant 336 : index
    %330 = vector.load %arg13[%c0_261, %c336_262] : memref<16x608xf32, #tpu.memory_space<vmem>>, vector<16x256xf32>
    %c112_263 = arith.constant 112 : index
    %c256_264 = arith.constant 256 : index
    %331 = vector.load %arg14[%c112_263, %c256_264] : memref<152x512xf32, #tpu.memory_space<vmem>>, vector<16x256xf32>
    tpu.vector_store %arg14[%c112_263, %c256_264], %330 {strides = array<i32>} : memref<152x512xf32, #tpu.memory_space<vmem>>, vector<16x256xf32>,
    %c0_265 = arith.constant 0 : index
    %c49_266 = arith.constant 49 : index
    %332 = vector.load %arg13[%c0_265, %c49_266] : memref<16x608xf32, #tpu.memory_space<vmem>>, vector<16x256xf32>
    %cst_267 = arith.constant 0.000000e+00 : f32
    %333 = vector.shape_cast %20 : vector<1x256xi1> to vector<1x256xi1>
    %334 = vector.broadcast %333 : vector<1x256xi1> to vector<16x256xi1>
    %335 = vector.broadcast %cst_267 : f32 to vector<16x256xf32>
    %336 = arith.select %334, %332, %335 : vector<16x256xi1>, vector<16x256xf32>
    %c128_268 = arith.constant 128 : index
    %c0_269 = arith.constant 0 : index
    %337 = vector.load %arg14[%c128_268, %c0_269] : memref<152x512xf32, #tpu.memory_space<vmem>>, vector<16x256xf32>
    tpu.vector_store %arg14[%c128_268, %c0_269], %336 {strides = array<i32>} : memref<152x512xf32, #tpu.memory_space<vmem>>, vector<16x256xf32>,
    %c0_270 = arith.constant 0 : index
    %c337_271 = arith.constant 337 : index
    %338 = vector.load %arg13[%c0_270, %c337_271] : memref<16x608xf32, #tpu.memory_space<vmem>>, vector<16x256xf32>
    %cst_272 = arith.constant 0.000000e+00 : f32
    %339 = vector.shape_cast %20 : vector<1x256xi1> to vector<1x256xi1>
    %340 = vector.broadcast %339 : vector<1x256xi1> to vector<16x256xi1>
    %341 = vector.broadcast %cst_272 : f32 to vector<16x256xf32>
    %342 = arith.select %340, %338, %341 : vector<16x256xi1>, vector<16x256xf32>
    %c128_273 = arith.constant 128 : index
    %c256_274 = arith.constant 256 : index
    %343 = vector.load %arg14[%c128_273, %c256_274] : memref<152x512xf32, #tpu.memory_space<vmem>>, vector<16x256xf32>
    tpu.vector_store %arg14[%c128_273, %c256_274], %342 {strides = array<i32>} : memref<152x512xf32, #tpu.memory_space<vmem>>, vector<16x256xf32>,
    %c0_275 = arith.constant 0 : index
    %c0_276 = arith.constant 0 : index
    %344 = vector.load %arg8[%c0_275, %c0_276] : memref<16x144xf32, #tpu.memory_space<vmem>>, vector<16x144xf32>
    %c0_277 = arith.constant 0 : index
    %c0_278 = arith.constant 0 : index
    %345 = vector.load %arg14[%c0_277, %c0_278] : memref<152x512xf32, #tpu.memory_space<vmem>>, vector<144x512xf32>
    %cst_279 = arith.constant dense<0.000000e+00> : vector<16x512xf32>
    %346 = tpu.matmul %344, %345, %cst_279 {dimension_numbers = #tpu.dot_dimension_numbers<[1], [0], [0], [1], [0, 0, 1, 1], [], []>} : vector<16x144xf32>, vector<144x512xf32>, vector<16x512xf32> -> vector<16x512xf32>
    %347 = arith.negf %346 : vector<16x512xf32>
    %348 = math.exp %347 : vector<16x512xf32>
    %cst_280 = arith.constant 1.000000e+00 : f32
    %349 = vector.broadcast %cst_280 : f32 to vector<16x512xf32>
    %350 = arith.addf %349, %348 : vector<16x512xf32>
    %351 = arith.divf %349, %350 : vector<16x512xf32>
    %352 = arith.mulf %346, %351 : vector<16x512xf32>
    %353 = vector.extract_strided_slice %352 {offsets = [0, 0], sizes = [16, 256], strides = [1, 1]} : vector<16x512xf32> to vector<16x256xf32>
    %c0_281 = arith.constant 0 : index
    %c32_282 = arith.constant 32 : index
    %354 = vector.load %arg13[%c0_281, %c32_282] : memref<16x608xf32, #tpu.memory_space<vmem>>, vector<16x256xf32>
    tpu.vector_store %arg13[%c0_281, %c32_282], %353 {strides = array<i32>} : memref<16x608xf32, #tpu.memory_space<vmem>>, vector<16x256xf32>,
    %355 = vector.extract_strided_slice %352 {offsets = [0, 256], sizes = [16, 256], strides = [1, 1]} : vector<16x512xf32> to vector<16x256xf32>
    %c0_283 = arith.constant 0 : index
    %c320_284 = arith.constant 320 : index
    %356 = vector.load %arg13[%c0_283, %c320_284] : memref<16x608xf32, #tpu.memory_space<vmem>>, vector<16x256xf32>
    tpu.vector_store %arg13[%c0_283, %c320_284], %355 {strides = array<i32>} : memref<16x608xf32, #tpu.memory_space<vmem>>, vector<16x256xf32>,
    %c0_285 = arith.constant 0 : index
    %c15_286 = arith.constant 15 : index
    %357 = vector.load %arg13[%c0_285, %c15_286] : memref<16x608xf32, #tpu.memory_space<vmem>>, vector<16x256xf32>
    %cst_287 = arith.constant 0.000000e+00 : f32
    %358 = vector.shape_cast %18 : vector<1x256xi1> to vector<1x256xi1>
    %359 = vector.broadcast %358 : vector<1x256xi1> to vector<16x256xi1>
    %360 = vector.broadcast %cst_287 : f32 to vector<16x256xf32>
    %361 = arith.select %359, %357, %360 : vector<16x256xi1>, vector<16x256xf32>
    %c0_288 = arith.constant 0 : index
    %c0_289 = arith.constant 0 : index
    %362 = vector.load %arg14[%c0_288, %c0_289] : memref<152x512xf32, #tpu.memory_space<vmem>>, vector<16x256xf32>
    tpu.vector_store %arg14[%c0_288, %c0_289], %361 {strides = array<i32>} : memref<152x512xf32, #tpu.memory_space<vmem>>, vector<16x256xf32>,
    %c0_290 = arith.constant 0 : index
    %c303_291 = arith.constant 303 : index
    %363 = vector.load %arg13[%c0_290, %c303_291] : memref<16x608xf32, #tpu.memory_space<vmem>>, vector<16x256xf32>
    %cst_292 = arith.constant 0.000000e+00 : f32
    %364 = vector.shape_cast %18 : vector<1x256xi1> to vector<1x256xi1>
    %365 = vector.broadcast %364 : vector<1x256xi1> to vector<16x256xi1>
    %366 = vector.broadcast %cst_292 : f32 to vector<16x256xf32>
    %367 = arith.select %365, %363, %366 : vector<16x256xi1>, vector<16x256xf32>
    %c0_293 = arith.constant 0 : index
    %c256_294 = arith.constant 256 : index
    %368 = vector.load %arg14[%c0_293, %c256_294] : memref<152x512xf32, #tpu.memory_space<vmem>>, vector<16x256xf32>
    tpu.vector_store %arg14[%c0_293, %c256_294], %367 {strides = array<i32>} : memref<152x512xf32, #tpu.memory_space<vmem>>, vector<16x256xf32>,
    %c0_295 = arith.constant 0 : index
    %c16_296 = arith.constant 16 : index
    %369 = vector.load %arg13[%c0_295, %c16_296] : memref<16x608xf32, #tpu.memory_space<vmem>>, vector<16x256xf32>
    %c16_297 = arith.constant 16 : index
    %c0_298 = arith.constant 0 : index
    %370 = vector.load %arg14[%c16_297, %c0_298] : memref<152x512xf32, #tpu.memory_space<vmem>>, vector<16x256xf32>
    tpu.vector_store %arg14[%c16_297, %c0_298], %369 {strides = array<i32>} : memref<152x512xf32, #tpu.memory_space<vmem>>, vector<16x256xf32>,
    %c0_299 = arith.constant 0 : index
    %c304_300 = arith.constant 304 : index
    %371 = vector.load %arg13[%c0_299, %c304_300] : memref<16x608xf32, #tpu.memory_space<vmem>>, vector<16x256xf32>
    %c16_301 = arith.constant 16 : index
    %c256_302 = arith.constant 256 : index
    %372 = vector.load %arg14[%c16_301, %c256_302] : memref<152x512xf32, #tpu.memory_space<vmem>>, vector<16x256xf32>
    tpu.vector_store %arg14[%c16_301, %c256_302], %371 {strides = array<i32>} : memref<152x512xf32, #tpu.memory_space<vmem>>, vector<16x256xf32>,
    %c0_303 = arith.constant 0 : index
    %c17_304 = arith.constant 17 : index
    %373 = vector.load %arg13[%c0_303, %c17_304] : memref<16x608xf32, #tpu.memory_space<vmem>>, vector<16x256xf32>
    %cst_305 = arith.constant 0.000000e+00 : f32
    %374 = vector.shape_cast %20 : vector<1x256xi1> to vector<1x256xi1>
    %375 = vector.broadcast %374 : vector<1x256xi1> to vector<16x256xi1>
    %376 = vector.broadcast %cst_305 : f32 to vector<16x256xf32>
    %377 = arith.select %375, %373, %376 : vector<16x256xi1>, vector<16x256xf32>
    %c32_306 = arith.constant 32 : index
    %c0_307 = arith.constant 0 : index
    %378 = vector.load %arg14[%c32_306, %c0_307] : memref<152x512xf32, #tpu.memory_space<vmem>>, vector<16x256xf32>
    tpu.vector_store %arg14[%c32_306, %c0_307], %377 {strides = array<i32>} : memref<152x512xf32, #tpu.memory_space<vmem>>, vector<16x256xf32>,
    %c0_308 = arith.constant 0 : index
    %c305_309 = arith.constant 305 : index
    %379 = vector.load %arg13[%c0_308, %c305_309] : memref<16x608xf32, #tpu.memory_space<vmem>>, vector<16x256xf32>
    %cst_310 = arith.constant 0.000000e+00 : f32
    %380 = vector.shape_cast %20 : vector<1x256xi1> to vector<1x256xi1>
    %381 = vector.broadcast %380 : vector<1x256xi1> to vector<16x256xi1>
    %382 = vector.broadcast %cst_310 : f32 to vector<16x256xf32>
    %383 = arith.select %381, %379, %382 : vector<16x256xi1>, vector<16x256xf32>
    %c32_311 = arith.constant 32 : index
    %c256_312 = arith.constant 256 : index
    %384 = vector.load %arg14[%c32_311, %c256_312] : memref<152x512xf32, #tpu.memory_space<vmem>>, vector<16x256xf32>
    tpu.vector_store %arg14[%c32_311, %c256_312], %383 {strides = array<i32>} : memref<152x512xf32, #tpu.memory_space<vmem>>, vector<16x256xf32>,
    %c0_313 = arith.constant 0 : index
    %c31_314 = arith.constant 31 : index
    %385 = vector.load %arg13[%c0_313, %c31_314] : memref<16x608xf32, #tpu.memory_space<vmem>>, vector<16x256xf32>
    %cst_315 = arith.constant 0.000000e+00 : f32
    %386 = vector.shape_cast %18 : vector<1x256xi1> to vector<1x256xi1>
    %387 = vector.broadcast %386 : vector<1x256xi1> to vector<16x256xi1>
    %388 = vector.broadcast %cst_315 : f32 to vector<16x256xf32>
    %389 = arith.select %387, %385, %388 : vector<16x256xi1>, vector<16x256xf32>
    %c48_316 = arith.constant 48 : index
    %c0_317 = arith.constant 0 : index
    %390 = vector.load %arg14[%c48_316, %c0_317] : memref<152x512xf32, #tpu.memory_space<vmem>>, vector<16x256xf32>
    tpu.vector_store %arg14[%c48_316, %c0_317], %389 {strides = array<i32>} : memref<152x512xf32, #tpu.memory_space<vmem>>, vector<16x256xf32>,
    %c0_318 = arith.constant 0 : index
    %c319_319 = arith.constant 319 : index
    %391 = vector.load %arg13[%c0_318, %c319_319] : memref<16x608xf32, #tpu.memory_space<vmem>>, vector<16x256xf32>
    %cst_320 = arith.constant 0.000000e+00 : f32
    %392 = vector.shape_cast %18 : vector<1x256xi1> to vector<1x256xi1>
    %393 = vector.broadcast %392 : vector<1x256xi1> to vector<16x256xi1>
    %394 = vector.broadcast %cst_320 : f32 to vector<16x256xf32>
    %395 = arith.select %393, %391, %394 : vector<16x256xi1>, vector<16x256xf32>
    %c48_321 = arith.constant 48 : index
    %c256_322 = arith.constant 256 : index
    %396 = vector.load %arg14[%c48_321, %c256_322] : memref<152x512xf32, #tpu.memory_space<vmem>>, vector<16x256xf32>
    tpu.vector_store %arg14[%c48_321, %c256_322], %395 {strides = array<i32>} : memref<152x512xf32, #tpu.memory_space<vmem>>, vector<16x256xf32>,
    %c0_323 = arith.constant 0 : index
    %c32_324 = arith.constant 32 : index
    %397 = vector.load %arg13[%c0_323, %c32_324] : memref<16x608xf32, #tpu.memory_space<vmem>>, vector<16x256xf32>
    %c64_325 = arith.constant 64 : index
    %c0_326 = arith.constant 0 : index
    %398 = vector.load %arg14[%c64_325, %c0_326] : memref<152x512xf32, #tpu.memory_space<vmem>>, vector<16x256xf32>
    tpu.vector_store %arg14[%c64_325, %c0_326], %397 {strides = array<i32>} : memref<152x512xf32, #tpu.memory_space<vmem>>, vector<16x256xf32>,
    %c0_327 = arith.constant 0 : index
    %c320_328 = arith.constant 320 : index
    %399 = vector.load %arg13[%c0_327, %c320_328] : memref<16x608xf32, #tpu.memory_space<vmem>>, vector<16x256xf32>
    %c64_329 = arith.constant 64 : index
    %c256_330 = arith.constant 256 : index
    %400 = vector.load %arg14[%c64_329, %c256_330] : memref<152x512xf32, #tpu.memory_space<vmem>>, vector<16x256xf32>
    tpu.vector_store %arg14[%c64_329, %c256_330], %399 {strides = array<i32>} : memref<152x512xf32, #tpu.memory_space<vmem>>, vector<16x256xf32>,
    %c0_331 = arith.constant 0 : index
    %c33_332 = arith.constant 33 : index
    %401 = vector.load %arg13[%c0_331, %c33_332] : memref<16x608xf32, #tpu.memory_space<vmem>>, vector<16x256xf32>
    %cst_333 = arith.constant 0.000000e+00 : f32
    %402 = vector.shape_cast %20 : vector<1x256xi1> to vector<1x256xi1>
    %403 = vector.broadcast %402 : vector<1x256xi1> to vector<16x256xi1>
    %404 = vector.broadcast %cst_333 : f32 to vector<16x256xf32>
    %405 = arith.select %403, %401, %404 : vector<16x256xi1>, vector<16x256xf32>
    %c80_334 = arith.constant 80 : index
    %c0_335 = arith.constant 0 : index
    %406 = vector.load %arg14[%c80_334, %c0_335] : memref<152x512xf32, #tpu.memory_space<vmem>>, vector<16x256xf32>
    tpu.vector_store %arg14[%c80_334, %c0_335], %405 {strides = array<i32>} : memref<152x512xf32, #tpu.memory_space<vmem>>, vector<16x256xf32>,
    %c0_336 = arith.constant 0 : index
    %c321_337 = arith.constant 321 : index
    %407 = vector.load %arg13[%c0_336, %c321_337] : memref<16x608xf32, #tpu.memory_space<vmem>>, vector<16x256xf32>
    %cst_338 = arith.constant 0.000000e+00 : f32
    %408 = vector.shape_cast %20 : vector<1x256xi1> to vector<1x256xi1>
    %409 = vector.broadcast %408 : vector<1x256xi1> to vector<16x256xi1>
    %410 = vector.broadcast %cst_338 : f32 to vector<16x256xf32>
    %411 = arith.select %409, %407, %410 : vector<16x256xi1>, vector<16x256xf32>
    %c80_339 = arith.constant 80 : index
    %c256_340 = arith.constant 256 : index
    %412 = vector.load %arg14[%c80_339, %c256_340] : memref<152x512xf32, #tpu.memory_space<vmem>>, vector<16x256xf32>
    tpu.vector_store %arg14[%c80_339, %c256_340], %411 {strides = array<i32>} : memref<152x512xf32, #tpu.memory_space<vmem>>, vector<16x256xf32>,
    %c0_341 = arith.constant 0 : index
    %c47_342 = arith.constant 47 : index
    %413 = vector.load %arg13[%c0_341, %c47_342] : memref<16x608xf32, #tpu.memory_space<vmem>>, vector<16x256xf32>
    %cst_343 = arith.constant 0.000000e+00 : f32
    %414 = vector.shape_cast %18 : vector<1x256xi1> to vector<1x256xi1>
    %415 = vector.broadcast %414 : vector<1x256xi1> to vector<16x256xi1>
    %416 = vector.broadcast %cst_343 : f32 to vector<16x256xf32>
    %417 = arith.select %415, %413, %416 : vector<16x256xi1>, vector<16x256xf32>
    %c96_344 = arith.constant 96 : index
    %c0_345 = arith.constant 0 : index
    %418 = vector.load %arg14[%c96_344, %c0_345] : memref<152x512xf32, #tpu.memory_space<vmem>>, vector<16x256xf32>
    tpu.vector_store %arg14[%c96_344, %c0_345], %417 {strides = array<i32>} : memref<152x512xf32, #tpu.memory_space<vmem>>, vector<16x256xf32>,
    %c0_346 = arith.constant 0 : index
    %c335_347 = arith.constant 335 : index
    %419 = vector.load %arg13[%c0_346, %c335_347] : memref<16x608xf32, #tpu.memory_space<vmem>>, vector<16x256xf32>
    %cst_348 = arith.constant 0.000000e+00 : f32
    %420 = vector.shape_cast %18 : vector<1x256xi1> to vector<1x256xi1>
    %421 = vector.broadcast %420 : vector<1x256xi1> to vector<16x256xi1>
    %422 = vector.broadcast %cst_348 : f32 to vector<16x256xf32>
    %423 = arith.select %421, %419, %422 : vector<16x256xi1>, vector<16x256xf32>
    %c96_349 = arith.constant 96 : index
    %c256_350 = arith.constant 256 : index
    %424 = vector.load %arg14[%c96_349, %c256_350] : memref<152x512xf32, #tpu.memory_space<vmem>>, vector<16x256xf32>
    tpu.vector_store %arg14[%c96_349, %c256_350], %423 {strides = array<i32>} : memref<152x512xf32, #tpu.memory_space<vmem>>, vector<16x256xf32>,
    %c0_351 = arith.constant 0 : index
    %c48_352 = arith.constant 48 : index
    %425 = vector.load %arg13[%c0_351, %c48_352] : memref<16x608xf32, #tpu.memory_space<vmem>>, vector<16x256xf32>
    %c112_353 = arith.constant 112 : index
    %c0_354 = arith.constant 0 : index
    %426 = vector.load %arg14[%c112_353, %c0_354] : memref<152x512xf32, #tpu.memory_space<vmem>>, vector<16x256xf32>
    tpu.vector_store %arg14[%c112_353, %c0_354], %425 {strides = array<i32>} : memref<152x512xf32, #tpu.memory_space<vmem>>, vector<16x256xf32>,
    %c0_355 = arith.constant 0 : index
    %c336_356 = arith.constant 336 : index
    %427 = vector.load %arg13[%c0_355, %c336_356] : memref<16x608xf32, #tpu.memory_space<vmem>>, vector<16x256xf32>
    %c112_357 = arith.constant 112 : index
    %c256_358 = arith.constant 256 : index
    %428 = vector.load %arg14[%c112_357, %c256_358] : memref<152x512xf32, #tpu.memory_space<vmem>>, vector<16x256xf32>
    tpu.vector_store %arg14[%c112_357, %c256_358], %427 {strides = array<i32>} : memref<152x512xf32, #tpu.memory_space<vmem>>, vector<16x256xf32>,
    %c0_359 = arith.constant 0 : index
    %c49_360 = arith.constant 49 : index
    %429 = vector.load %arg13[%c0_359, %c49_360] : memref<16x608xf32, #tpu.memory_space<vmem>>, vector<16x256xf32>
    %cst_361 = arith.constant 0.000000e+00 : f32
    %430 = vector.shape_cast %20 : vector<1x256xi1> to vector<1x256xi1>
    %431 = vector.broadcast %430 : vector<1x256xi1> to vector<16x256xi1>
    %432 = vector.broadcast %cst_361 : f32 to vector<16x256xf32>
    %433 = arith.select %431, %429, %432 : vector<16x256xi1>, vector<16x256xf32>
    %c128_362 = arith.constant 128 : index
    %c0_363 = arith.constant 0 : index
    %434 = vector.load %arg14[%c128_362, %c0_363] : memref<152x512xf32, #tpu.memory_space<vmem>>, vector<16x256xf32>
    tpu.vector_store %arg14[%c128_362, %c0_363], %433 {strides = array<i32>} : memref<152x512xf32, #tpu.memory_space<vmem>>, vector<16x256xf32>,
    %c0_364 = arith.constant 0 : index
    %c337_365 = arith.constant 337 : index
    %435 = vector.load %arg13[%c0_364, %c337_365] : memref<16x608xf32, #tpu.memory_space<vmem>>, vector<16x256xf32>
    %cst_366 = arith.constant 0.000000e+00 : f32
    %436 = vector.shape_cast %20 : vector<1x256xi1> to vector<1x256xi1>
    %437 = vector.broadcast %436 : vector<1x256xi1> to vector<16x256xi1>
    %438 = vector.broadcast %cst_366 : f32 to vector<16x256xf32>
    %439 = arith.select %437, %435, %438 : vector<16x256xi1>, vector<16x256xf32>
    %c128_367 = arith.constant 128 : index
    %c256_368 = arith.constant 256 : index
    %440 = vector.load %arg14[%c128_367, %c256_368] : memref<152x512xf32, #tpu.memory_space<vmem>>, vector<16x256xf32>
    tpu.vector_store %arg14[%c128_367, %c256_368], %439 {strides = array<i32>} : memref<152x512xf32, #tpu.memory_space<vmem>>, vector<16x256xf32>,
    %c0_369 = arith.constant 0 : index
    %c0_370 = arith.constant 0 : index
    %441 = vector.load %arg9[%c0_369, %c0_370] : memref<16x144xf32, #tpu.memory_space<vmem>>, vector<16x144xf32>
    %c0_371 = arith.constant 0 : index
    %c0_372 = arith.constant 0 : index
    %442 = vector.load %arg14[%c0_371, %c0_372] : memref<152x512xf32, #tpu.memory_space<vmem>>, vector<144x512xf32>
    %cst_373 = arith.constant dense<0.000000e+00> : vector<16x512xf32>
    %443 = tpu.matmul %441, %442, %cst_373 {dimension_numbers = #tpu.dot_dimension_numbers<[1], [0], [0], [1], [0, 0, 1, 1], [], []>} : vector<16x144xf32>, vector<144x512xf32>, vector<16x512xf32> -> vector<16x512xf32>
    %444 = arith.addf %443, %233 : vector<16x512xf32>
    %c0_374 = arith.constant 0 : index
    %c0_375 = arith.constant 0 : index
    %445 = vector.load %arg11[%c0_374, %c0_375] : memref<16x512xf32, #tpu.memory_space<vmem>>, vector<16x512xf32>
    tpu.vector_store %arg11[%c0_374, %c0_375], %444 {strides = array<i32>} : memref<16x512xf32, #tpu.memory_space<vmem>>, vector<16x512xf32>,
    %c0_376 = arith.constant 0 : index
    %c0_377 = arith.constant 0 : index
    %446 = vector.load %arg1[%c0_376, %c0_377] : memref<512x128xf32, #tpu.memory_space<vmem>>, vector<512x128xf32>
    %cst_378 = arith.constant dense<0.000000e+00> : vector<16x128xf32>
    %447 = tpu.matmul %444, %446, %cst_378 {dimension_numbers = #tpu.dot_dimension_numbers<[1], [0], [0], [1], [0, 0, 1, 1], [], []>} : vector<16x512xf32>, vector<512x128xf32>, vector<16x128xf32> -> vector<16x128xf32>
    %c0_379 = arith.constant 0 : index
    %c0_380 = arith.constant 0 : index
    %448 = vector.load %arg12[%c0_379, %c0_380] : memref<16x128xf32, #tpu.memory_space<vmem>>, vector<16x128xf32>
    tpu.vector_store %arg12[%c0_379, %c0_380], %447 {strides = array<i32>} : memref<16x128xf32, #tpu.memory_space<vmem>>, vector<16x128xf32>,
    return
  }
}

</mosaic_0001>

<bundles_post_ra>
// kernel: tpu_custom_call.1
= control target key start
LH: loop header
LB: loop body
LE: loop exit
PB: predicated region body
PF: predicated region fallthrough
CT: control target
= control target key end

     0   :  { %18 = vsyncpa [#allocation5], 0  ;;  %s7770_s0 = inlined_call_operand.hbm [shape: f32[8,512], index: 0, kind: input, shape index: {}]   ;;  %s7771_s1 = inlined_call_operand.hbm [shape: f32[512,128], index: 1, kind: input, shape index: {}]   ;;  %s7772_s2 = inlined_call_operand.hbm [shape: f32[8,1], index: 2, kind: input, shape index: {}]   ;;  %s7773_s3 = inlined_call_operand.hbm [shape: f32[8,1], index: 3, kind: input, shape index: {}]   ;;  %s7774_s4 = inlined_call_operand.hbm [shape: f32[16,72], index: 4, kind: input, shape index: {}]   ;;  %s7775_s5 = inlined_call_operand.hbm [shape: f32[16,152], index: 5, kind: input, shape index: {}]   ;;  %s7776_s6 = inlined_call_operand.hbm [shape: f32[16,1], index: 6, kind: input, shape index: {}]   ;;  %s7777_s7 = inlined_call_operand.hbm [shape: f32[16,1], index: 7, kind: input, shape index: {}]   ;;  %s7778_s8 = inlined_call_operand.hbm [shape: f32[16,144], index: 8, kind: input, shape index: {}]   ;;  %s7779_s9 = inlined_call_operand.hbm [shape: f32[16,144], index: 9, kind: input, shape index: {}]   ;;  %s7780_s10 = inlined_call_operand.hbm [shape: f32[16,512], index: 10, kind: output, shape index: {0}]   ;;  %s7781_s11 = inlined_call_operand.hbm [shape: f32[16,512], index: 11, kind: output, shape index: {1}]   ;;  %s7782_s12 = inlined_call_operand.hbm [shape: f32[16,128], index: 12, kind: output, shape index: {2}]  }
   0x1   :  { %19 = vsyncpa [#allocation8], 0 }
   0x2   :  { %20 = vsyncpa [#allocation11], 0 }
   0x3   :  { %21 = vsyncpa [#allocation14], 0 }
   0x4   :  { %22 = vsyncpa [#allocation17], 0 }
   0x5   :  { %23 = vsyncpa [#allocation20], 0 }
   0x6   :  { %24 = vsyncpa [#allocation6], 0 }
   0x7   :  { %25 = vsyncpa [#allocation23], 0  ;;  %s6301_s21 = smov [#allocation7]   ;;  %s5999_s25 = scalar_lea.hbm %s7771_s1, 8192 }
   0x8   :  { %s41_s22 = sshll.u32 %s6301_s21, 4  ;;  %p6000_p0 = scmp.ne.s32.totalorder %s7771_s1, %s5999_s25  ;;  %s42_s22 = int_to_ptr.vmem [resolvable:$true] %s41_s22 }
   0x9   :  { %p6003_p1 = scmp.lt.u32.totalorder %s5999_s25, %s7771_s1 }
   0xb   :  { %p6005_p2 = pnand %p6003_p1, %p6000_p0 }
   0xd   :  { %6008 = shalt.err (!%p6005_p2)
}
   0xe   :  { %s6009_s30 = scalar_lea.vmem %s42_s22, 8192  ;;  %p6014_p4 = scmp.lt.s32.totalorder %s42_s22, %s42_s22 }
   0xf   :  { %p6010_p3 = scmp.ne.s32.totalorder %s42_s22, %s6009_s30  ;;  %p6015_p5 = scmp.lt.s32.totalorder %s6009_s30, %s6009_s30 }
  0x11   :  { %p6016_p6 = por %p6015_p5, %p6014_p4 }
  0x13   :  { %p6017_p7 = pnand %p6016_p6, %p6010_p3 }
  0x15   :  { %6020 = shalt.err (!%p6017_p7)
}
  0x16   :  { %s6302_s13 = smov 128   ;;  %s6303_s14 = smov 8  }
  0x17   :  { %47 = dma.hbm_to_vmem [thread:$0]  %s7771_s1, 8192, %s42_s22, [#allocation8], %s6302_s13, %s6302_s13, %s6303_s14  }
  0x18   :  { %s6304_s17 = smov [#allocation10]   ;;  %s6305_s19 = smov [#allocation13]  }
  0x19   :  { %s64_s18 = sshll.u32 %s6304_s17, 4  ;;  %s85_s20 = sshll.u32 %s6305_s19, 4  ;;  %s65_s18 = int_to_ptr.vmem [resolvable:$true] %s64_s18  ;;  %s86_s20 = int_to_ptr.vmem [resolvable:$true] %s85_s20 }
  0x1a   :  { %s6021_s24 = scalar_lea.hbm %s7773_s3, 128 }
  0x1b   :  { %p6022_p8 = scmp.ne.s32.totalorder %s7773_s3, %s6021_s24  ;;  %p6025_p9 = scmp.lt.u32.totalorder %s6021_s24, %s7773_s3 }
  0x1d   :  { %p6027_p10 = pnand %p6025_p9, %p6022_p8 }
  0x1f   :  { %6030 = shalt.err (!%p6027_p10)
}
  0x20   :  { %s6031_s1 = scalar_lea.vmem %s65_s18, 128  ;;  %p6036_p12 = scmp.lt.s32.totalorder %s65_s18, %s65_s18 }
  0x21   :  { %p6032_p11 = scmp.ne.s32.totalorder %s65_s18, %s6031_s1  ;;  %p6037_p13 = scmp.lt.s32.totalorder %s6031_s1, %s6031_s1 }
  0x23   :  { %p6038_p0 = por %p6037_p13, %p6036_p12 }
  0x25   :  { %p6039_p1 = pnand %p6038_p0, %p6032_p11 }
  0x27   :  { %6042 = shalt.err (!%p6039_p1)
}
  0x28   :  { %67 = dma.hbm_to_vmem [thread:$0]  %s7773_s3, 128, %s65_s18, [#allocation11]  }
  0x29   :  { %s6043_s16 = scalar_lea.hbm %s7775_s5, 512 }
  0x2a   :  { %p6044_p2 = scmp.ne.s32.totalorder %s7775_s5, %s6043_s16  ;;  %p6047_p3 = scmp.lt.u32.totalorder %s6043_s16, %s7775_s5 }
  0x2c   :  { %p6049_p4 = pnand %p6047_p3, %p6044_p2 }
  0x2e   :  { %6052 = shalt.err (!%p6049_p4)
}
  0x2f   :  { %s6053_s24 = scalar_lea.vmem %s86_s20, 512  ;;  %p6058_p6 = scmp.lt.s32.totalorder %s86_s20, %s86_s20 }
  0x30   :  { %p6054_p5 = scmp.ne.s32.totalorder %s86_s20, %s6053_s24  ;;  %p6059_p7 = scmp.lt.s32.totalorder %s6053_s24, %s6053_s24 }
  0x32   :  { %p6060_p8 = por %p6059_p7, %p6058_p6 }
  0x34   :  { %p6061_p9 = pnand %p6060_p8, %p6054_p5 }
  0x36   :  { %6064 = shalt.err (!%p6061_p9)
}
  0x37   :  { %s6306_s3 = smov 256   ;;  %s6307_s18 = smov 16  }
  0x38   :  { %91 = dma.hbm_to_vmem [thread:$0]  %s7775_s5, 512, %s86_s20, [#allocation14], %s6306_s3, %s6306_s3, %s6307_s18  }
  0x39   :  { %s6308_s27 = smov [#allocation16]   ;;  %s6309_s1 = smov [#allocation4]  }
  0x3a   :  { %s109_s28 = sshll.u32 %s6308_s27, 4  ;;  %s32_s22 = sshll.u32 %s6309_s1, 4  ;;  %s110_s28 = int_to_ptr.vmem [resolvable:$true] %s109_s28  ;;  %s33_s22 = int_to_ptr.vmem [resolvable:$true] %s32_s22 }
  0x3b   :  { %s6065_s15 = scalar_lea.hbm %s7777_s7, 256 }
  0x3c   :  { %p6066_p10 = scmp.ne.s32.totalorder %s7777_s7, %s6065_s15  ;;  %p6069_p11 = scmp.lt.u32.totalorder %s6065_s15, %s7777_s7 }
  0x3e   :  { %p6071_p12 = pnand %p6069_p11, %p6066_p10 }
  0x40   :  { %6074 = shalt.err (!%p6071_p12)
}
  0x41   :  { %s6075_s5 = scalar_lea.vmem %s110_s28, 256  ;;  %p6080_p0 = scmp.lt.s32.totalorder %s110_s28, %s110_s28 }
  0x42   :  { %p6076_p13 = scmp.ne.s32.totalorder %s110_s28, %s6075_s5  ;;  %p6081_p1 = scmp.lt.s32.totalorder %s6075_s5, %s6075_s5 }
  0x44   :  { %p6082_p2 = por %p6081_p1, %p6080_p0 }
  0x46   :  { %p6083_p3 = pnand %p6082_p2, %p6076_p13 }
  0x48   :  { %6086 = shalt.err (!%p6083_p3)
}
  0x49   :  { %115 = dma.hbm_to_vmem [thread:$0]  %s7777_s7, 256, %s110_s28, [#allocation17], %s6302_s13, %s6302_s13, %s6303_s14  }
  0x4a   :  { %s6087_s26 = scalar_lea.hbm %s7770_s0, 512 }
  0x4b   :  { %p6088_p4 = scmp.ne.s32.totalorder %s7770_s0, %s6087_s26  ;;  %p6091_p5 = scmp.lt.u32.totalorder %s6087_s26, %s7770_s0 }
  0x4d   :  { %p6093_p6 = pnand %p6091_p5, %p6088_p4 }
  0x4f   :  { %6096 = shalt.err (!%p6093_p6)
}
  0x50   :  { %s6097_s15 = scalar_lea.vmem %s33_s22, 512  ;;  %p6102_p8 = scmp.lt.s32.totalorder %s33_s22, %s33_s22 }
  0x51   :  { %p6098_p7 = scmp.ne.s32.totalorder %s33_s22, %s6097_s15  ;;  %p6103_p9 = scmp.lt.s32.totalorder %s6097_s15, %s6097_s15 }
  0x53   :  { %p6104_p10 = por %p6103_p9, %p6102_p8 }
  0x55   :  { %p6105_p11 = pnand %p6104_p10, %p6098_p7 }
  0x57   :  { %6108 = shalt.err (!%p6105_p11)
}
  0x58   :  { %35 = dma.hbm_to_vmem [thread:$0]  %s7770_s0, 512, %s33_s22, [#allocation5]  }
  0x59   :  { %s6310_s16 = smov [#allocation9]   ;;  %s6311_s19 = smov [#allocation12]  }
  0x5a   :  { %s54_s17 = sshll.u32 %s6310_s16, 4  ;;  %s73_s21 = sshll.u32 %s6311_s19, 4  ;;  %s55_s17 = int_to_ptr.vmem [resolvable:$true] %s54_s17  ;;  %s74_s21 = int_to_ptr.vmem [resolvable:$true] %s73_s21 }
  0x5b   :  { %s6109_s23 = scalar_lea.hbm %s7772_s2, 128 }
  0x5c   :  { %p6110_p12 = scmp.ne.s32.totalorder %s7772_s2, %s6109_s23  ;;  %p6113_p13 = scmp.lt.u32.totalorder %s6109_s23, %s7772_s2 }
  0x5e   :  { %p6115_p0 = pnand %p6113_p13, %p6110_p12 }
  0x60   :  { %6118 = shalt.err (!%p6115_p0)
}
  0x61   :  { %s6119_s0 = scalar_lea.vmem %s55_s17, 128  ;;  %p6124_p2 = scmp.lt.s32.totalorder %s55_s17, %s55_s17 }
  0x62   :  { %p6120_p1 = scmp.ne.s32.totalorder %s55_s17, %s6119_s0  ;;  %p6125_p3 = scmp.lt.s32.totalorder %s6119_s0, %s6119_s0 }
  0x64   :  { %p6126_p4 = por %p6125_p3, %p6124_p2 }
  0x66   :  { %p6127_p5 = pnand %p6126_p4, %p6120_p1 }
  0x68   :  { %6130 = shalt.err (!%p6127_p5)
}
  0x69   :  { %57 = dma.hbm_to_vmem [thread:$0]  %s7772_s2, 128, %s55_s17, [#allocation8]  }
  0x6a   :  { %s6131_s15 = scalar_lea.hbm %s7774_s4, 256 }
  0x6b   :  { %p6132_p6 = scmp.ne.s32.totalorder %s7774_s4, %s6131_s15  ;;  %p6135_p7 = scmp.lt.u32.totalorder %s6131_s15, %s7774_s4 }
  0x6d   :  { %p6137_p8 = pnand %p6135_p7, %p6132_p6 }
  0x6f   :  { %6140 = shalt.err (!%p6137_p8)
}
  0x70   :  { %s6141_s5 = scalar_lea.vmem %s74_s21, 256  ;;  %p6146_p10 = scmp.lt.s32.totalorder %s74_s21, %s74_s21 }
  0x71   :  { %p6142_p9 = scmp.ne.s32.totalorder %s74_s21, %s6141_s5  ;;  %p6147_p11 = scmp.lt.s32.totalorder %s6141_s5, %s6141_s5 }
  0x73   :  { %p6148_p12 = por %p6147_p11, %p6146_p10 }
  0x75   :  { %p6149_p13 = pnand %p6148_p12, %p6142_p9 }
  0x77   :  { %6152 = shalt.err (!%p6149_p13)
}
  0x78   :  { %79 = dma.hbm_to_vmem [thread:$0]  %s7774_s4, 256, %s74_s21, [#allocation11], %s6302_s13, %s6302_s13, %s6303_s14  }
  0x79   :  { %s6312_s20 = smov [#allocation15]   ;;  %s6313_s24 = smov [#allocation18]  }
  0x7a   :  { %s97_s23 = sshll.u32 %s6312_s20, 4  ;;  %s121_s25 = sshll.u32 %s6313_s24, 4  ;;  %s98_s23 = int_to_ptr.vmem [resolvable:$true] %s97_s23  ;;  %s122_s25 = int_to_ptr.vmem [resolvable:$true] %s121_s25 }
  0x7b   :  { %s6153_s0 = scalar_lea.hbm %s7776_s6, 256 }
  0x7c   :  { %p6154_p0 = scmp.ne.s32.totalorder %s7776_s6, %s6153_s0  ;;  %p6157_p1 = scmp.lt.u32.totalorder %s6153_s0, %s7776_s6 }
  0x7e   :  { %p6159_p2 = pnand %p6157_p1, %p6154_p0 }
  0x80   :  { %6162 = shalt.err (!%p6159_p2)
}
  0x81   :  { %s6163_s4 = scalar_lea.vmem %s98_s23, 256  ;;  %p6168_p4 = scmp.lt.s32.totalorder %s98_s23, %s98_s23 }
  0x82   :  { %p6164_p3 = scmp.ne.s32.totalorder %s98_s23, %s6163_s4  ;;  %p6169_p5 = scmp.lt.s32.totalorder %s6163_s4, %s6163_s4 }
  0x84   :  { %p6170_p6 = por %p6169_p5, %p6168_p4 }
  0x86   :  { %p6171_p7 = pnand %p6170_p6, %p6164_p3 }
  0x88   :  { %6174 = shalt.err (!%p6171_p7)
}
  0x89   :  { %103 = dma.hbm_to_vmem [thread:$0]  %s7776_s6, 256, %s98_s23, [#allocation14], %s6302_s13, %s6302_s13, %s6303_s14  }
  0x8a   :  { %s6175_s16 = scalar_lea.hbm %s7778_s8, 512 }
  0x8b   :  { %p6176_p8 = scmp.ne.s32.totalorder %s7778_s8, %s6175_s16  ;;  %p6179_p9 = scmp.lt.u32.totalorder %s6175_s16, %s7778_s8 }
  0x8d   :  { %p6181_p10 = pnand %p6179_p9, %p6176_p8 }
  0x8f   :  { %6184 = shalt.err (!%p6181_p10)
}
  0x90   :  { %s6185_s20 = scalar_lea.vmem %s122_s25, 512  ;;  %p6190_p12 = scmp.lt.s32.totalorder %s122_s25, %s122_s25 }
  0x91   :  { %p6186_p11 = scmp.ne.s32.totalorder %s122_s25, %s6185_s20  ;;  %p6191_p13 = scmp.lt.s32.totalorder %s6185_s20, %s6185_s20 }
  0x93   :  { %p6192_p0 = por %p6191_p13, %p6190_p12 }
  0x95   :  { %p6193_p1 = pnand %p6192_p0, %p6186_p11 }
  0x97   :  { %6196 = shalt.err (!%p6193_p1)
}
  0x98   :  { %127 = dma.hbm_to_vmem [thread:$0]  %s7778_s8, 512, %s122_s25, [#allocation17], %s6306_s3, %s6306_s3, %s6307_s18  }
  0x99   :  { %s6314_s24 = smov [#allocation19]   ;;  %s6197_s22 = scalar_lea.hbm %s7779_s9, 512 }
  0x9a   :  { %s133_s26 = sshll.u32 %s6314_s24, 4  ;;  %p6198_p2 = scmp.ne.s32.totalorder %s7779_s9, %s6197_s22  ;;  %s134_s26 = int_to_ptr.vmem [resolvable:$true] %s133_s26 }
  0x9b   :  { %p6201_p3 = scmp.lt.u32.totalorder %s6197_s22, %s7779_s9 }
  0x9d   :  { %p6203_p4 = pnand %p6201_p3, %p6198_p2 }
  0x9f   :  { %6206 = shalt.err (!%p6203_p4)
}
  0xa0   :  { %s6207_s21 = scalar_lea.vmem %s134_s26, 512  ;;  %p6212_p6 = scmp.lt.s32.totalorder %s134_s26, %s134_s26 }
  0xa1   :  { %p6208_p5 = scmp.ne.s32.totalorder %s134_s26, %s6207_s21  ;;  %p6213_p7 = scmp.lt.s32.totalorder %s6207_s21, %s6207_s21 }
  0xa3   :  { %p6214_p8 = por %p6213_p7, %p6212_p6 }
  0xa5   :  { %p6215_p9 = pnand %p6214_p8, %p6208_p5 }
  0xa7   :  { %6218 = shalt.err (!%p6215_p9)
}
  0xa8   :  { %139 = dma.hbm_to_vmem [thread:$0]  %s7779_s9, 512, %s134_s26, [#allocation20], %s6306_s3, %s6306_s3, %s6307_s18  }
  0xa9   :  { %6285 = dma.done.wait [#allocation5], 512  }
  0xaa   :  { %6286 = vsyncadd [#allocation5], 4294966784 }
  0xab   :  { %6287 = dma.done.wait [#allocation8], 8320  }
  0xac   :  { %6288 = vsyncadd [#allocation8], 4294958976 }
  0xad   :  { %6289 = dma.done.wait [#allocation11], 384  }
  0xae   :  { %6290 = vsyncadd [#allocation11], 4294966912 }
  0xaf   :  { %6291 = dma.done.wait [#allocation14], 768  }
  0xb0   :  { %6292 = vsyncadd [#allocation14], 4294966528 }
  0xb1   :  { %6293 = dma.done.wait [#allocation17], 768  }
  0xb2   :  { %6294 = vsyncadd [#allocation17], 4294966528 }
  0xb3   :  { %6295 = dma.done.wait [#allocation20], 512  }
  0xb4   :  { %6296 = vsyncadd [#allocation20], 4294966784  ;;  %v212_v0 = vld [vmem:[#allocation4] sm:$0xff]  ;;  %v213_v1 = vld [vmem:[#allocation4 + $0x8] sm:$0xff]  ;;  %v6315_v20 = vmov 0   ;;  %v6316_v28 = vmov 0.0   ;;  %v170_v56 = vlaneseq }
  0xb5   :  { %v214_v2 = vld [vmem:[#allocation4 + $0x10] sm:$0xff]  ;;  %v216_v3 = vadd.f32 %v213_v1, %v212_v0  ;;  %v215_v4 = vld [vmem:[#allocation4 + $0x18] sm:$0xff]  ;;  %5015 = vset.pattern.permute.xlu1 %v6315_v20  ;;  %5376 = vset.pattern.permute.xlu0 %v6315_v20  ;;  %v236_v24 = vld [vmem:[#allocation9] sm:$0xff]  ;;  %203 = vst [vmem:[#allocation2 + $0x10] sm:$0xff] %v6316_v28  ;;  %vm7796_vm0 = vcmask 785408   ;;  %s6317_s9 = smov 32  }
  0xb6   :  { %v249_v27 = vld [vmem:[#allocation10] sm:$0xff]  ;;  %201 = vst [vmem:[#allocation2] sm:$0xff] %v6316_v28  ;;  %207 = vst [vmem:[#allocation2 + $0x28] sm:$0xff] %v6316_v28  ;;  %767 = vmatprep.mubr.f32.mxu0 %v6316_v28  ;;  %844 = vmatprep.mubr.f32.mxu1 %v6316_v28  ;;  %s6318_s3 = smov 64   ;;  %vm7786_vm1 = vcmask 261120   ;;  %vm7787_vm2 = vcmask 1047808  }
  0xb7   :  { %v217_v5 = vadd.f32 %v216_v3, %v214_v2  ;;  %209 = vst [vmem:[#allocation2 + $0x38] sm:$0xff] %v6316_v28  ;;  %206 = vst.msk [vmem:[#allocation2 + $0x20] sm:$0xff] %vm7796_vm0, %v6316_v28  ;;  %vm7785_vm3 = vcmask 1048064   ;;  %vm280_vm4 = vcmask 523264   ;;  %s6319_s18 = smov 112   ;;  %s6320_s15 = smov 113  }
  0xb8   :  { %211 = vst.msk [vmem:[#allocation2 + $0x48] sm:$0xff] %vm7796_vm0, %v6316_v28  ;;  %s6321_s7 = smov 97   ;;  %s6322_s28 = smov 111   ;;  %v171_v59 = vand.u32 127, %v170_v56  ;;  %vm7784_vm6 = vcmask 924672   ;;  %vm7783_vm7 = vcmask 916480  }
  0xb9   :  { %v218_v6 = vadd.f32 %v217_v5, %v215_v4  ;;  %s6323_s16 = smov 95   ;;  %s6324_s19 = smov 96   ;;  %vm6333_vm9 = vmmov 1   ;;  %vm326_vm12 = vcmask 662528   ;;  %vm366_vm13 = vcmask 654336  }
  0xba   :  { %s6325_s5 = smov 80   ;;  %s6326_s2 = smov 79   ;;  %v172_v62 = vadd.s32 128, %v171_v59  ;;  %vm7788_vm14 = vcmask 793600   ;;  %vm7789_vm15 = vcmask 908288  }
  0xbb   :  { %219 = vadd.xlane.f32.xlu0 %v218_v6  ;;  %s6327_s17 = smov 65   ;;  %s6328_s20 = smov 81  }
  0xbc   :  { %s6329_s6 = smov 63   ;;  %s6330_s23 = smov 48  }
  0xbd   :  { %s6331_s24 = smov 47   ;;  %s6332_s26 = smov 49  }
  0xbe   :  { %s6334_s27 = smov [#allocation22]  }
  0xbf   :  { %s4266_s0 = sshll.u32 %s6334_s27, 4  ;;  %s4267_s0 = int_to_ptr.vmem [resolvable:$true] %s4266_s0 }
  0xc0   :  { %s6219_s22 = scalar_lea.vmem %s4267_s0, 1024  ;;  %p6224_p11 = scmp.lt.s32.totalorder %s4267_s0, %s4267_s0 }
  0xc1   :  { %p6220_p10 = scmp.ne.s32.totalorder %s4267_s0, %s6219_s22  ;;  %p6225_p12 = scmp.lt.s32.totalorder %s6219_s22, %s6219_s22 }
  0xc3   :  { %p6226_p13 = por %p6225_p12, %p6224_p11 }
  0xc5   :  { %p6227_p0 = pnand %p6226_p13, %p6220_p10 }
 0x148   :  { %v220_v7 = vpop.xlane.xlu0 %219 }
 0x149   :  { %v221_v8 = vmul.f32 0.001953125, %v220_v7 }
 0x14b   :  { %v222_v9 = vsub.f32 %v212_v0, %v221_v8  ;;  %v223_v10 = vsub.f32 %v213_v1, %v221_v8  ;;  %v224_v11 = vsub.f32 %v214_v2, %v221_v8  ;;  %v225_v12 = vsub.f32 %v215_v4, %v221_v8 }
 0x14c   :  { %v184_v1 = vand.u32 15, %v172_v62  ;;  %v177_v2 = vand.u32 15, %v171_v59 }
 0x14d   :  { %v226_v13 = vmul.f32 %v222_v9, %v222_v9  ;;  %v227_v14 = vmul.f32 %v223_v10, %v223_v10  ;;  %v228_v15 = vmul.f32 %v224_v11, %v224_v11  ;;  %v229_v17 = vmul.f32 %v225_v12, %v225_v12 }
 0x14e   :  { %vm6612_vm5 = vcmp.gt.s32.totalorder %v184_v1, 0  ;;  %vm6616_vm8 = vcmp.gt.s32.totalorder %v177_v2, 0 }
 0x14f   :  { %v230_v16 = vadd.f32 %v227_v14, %v226_v13  ;;  %vm6625_vm10 = vmpackc.low %vm6333_vm9, %vm6612_vm5 }
 0x150   :  { %vm6634_vm11 = vmpackc.low %vm6333_vm9, %vm6616_vm8 }
 0x151   :  { %v231_v18 = vadd.f32 %v230_v16, %v228_v15 }
 0x153   :  { %v232_v19 = vadd.f32 %v231_v18, %v229_v17 }
 0x155   :  { %233 = vadd.xlane.f32.xlu0 %v232_v19 }
 0x1e2   :  { %v234_v21 = vpop.xlane.xlu0 %233 }
 0x1e3   :  { %v235_v22 = vmul.f32 0.001953125, %v234_v21 }
 0x1e5   :  { %v237_v23 = vadd.f32 1e-05, %v235_v22 }
 0x1e7   :  { %5917 = vrsqrt.f32 %v237_v23 }
 0x1f1   :  { %v5918_v25 = vpop.eup %5917 }
 0x1f2   :  { %v239_v26 = vmul.f32 %v5918_v25, %v236_v24 }
 0x1f4   :  { %242 = vperm.xlu1 %5015, %v239_v26  }
 0x1f8   :  { %252 = vperm.xlu1 %5015, %v249_v27  }
 0x273   :  { %v243_v29 = vpop.permute.xlu1 %242 }
 0x274   :  { %v246_v30 = vmul.f32 %v243_v29, %v223_v10  ;;  %v245_v31 = vmul.f32 %v243_v29, %v222_v9  ;;  %v247_v35 = vmul.f32 %v243_v29, %v224_v11  ;;  %v248_v37 = vmul.f32 %v243_v29, %v225_v12 }
 0x277   :  { %v253_v32 = vpop.permute.xlu1 %252 }
 0x278   :  { %v256_v33 = vadd.f32 %v253_v32, %v246_v30  ;;  %v255_v34 = vadd.f32 %v253_v32, %v245_v31  ;;  %v257_v36 = vadd.f32 %v253_v32, %v247_v35  ;;  %v258_v38 = vadd.f32 %v253_v32, %v248_v37 }
 0x27a   :  { %263 = vrot.lane.b32.xlu1 %v256_v33, %s6317_s9  ;;  %261 = vrot.lane.b32.xlu0 %v255_v34, %s6317_s9 }
 0x27e   :  { %276 = vrot.lane.b32.xlu1 %v257_v36, %s6318_s3 }
 0x282   :  { %278 = vrot.lane.b32.xlu1 %v258_v38, %s6318_s3 }
 0x2ec   :  { %v264_v39 = vpop.permute.xlu1 %263  ;;  %v262_v40 = vpop.permute.xlu0 %261 }
 0x2ed   :  { %273 = vst.msk [vmem:[#allocation2 + $0x10] sm:$0xff] %vm7786_vm1, %v264_v39  ;;  %v266_v48 = vsel %vm7786_vm1, %v262_v40, %v264_v39  ;;  %vm452_vm1 = vcmask 531456  }
 0x2ee   :  { %271 = vst.msk [vmem:[#allocation2] sm:$0xff] %vm7787_vm2, %v262_v40  ;;  %vm410_vm2 = vcmask 646144  }
 0x2f0   :  { %v277_v41 = vpop.permute.xlu1 %276 }
 0x2f1   :  { %286 = vst.msk [vmem:[#allocation2 + $0x10] sm:$0xff] %vm7785_vm3, %v277_v41 }
 0x2f4   :  { %v279_v42 = vpop.permute.xlu1 %278 }
 0x2f5   :  { %v335_v43 = vld [vmem:[#allocation2] sm:$0xff]  ;;  %288 = vst.msk [vmem:[#allocation2 + $0x20] sm:$0xff] %vm280_vm4, %v279_v42  ;;  %v281_v45 = vsel %vm280_vm4, %v277_v41, %v279_v42 }
 0x2f6   :  { %341 = vrot.lane.b32.xlu0 %v335_v43, %s6319_s18  ;;  %299 = vrot.lane.b32.xlu1 %v335_v43, %s6320_s15 }
 0x2f8   :  { %v354_v47 = vld [vmem:[#allocation2 + $0x10] sm:$0xff] }
 0x2f9   :  { %v5041_v49 = vpack.i.bf16 %v266_v48, %v354_v47  ;;  %v5016_v50 = vpack.i.bf16 %v354_v47, %v266_v48  ;;  %v5091_v51 = vpack.i.bf16 %v335_v43, %v354_v47 }
 0x2fa   :  { %425 = vrot.lane.b32.xlu0 %v335_v43, %s6321_s7  ;;  %383 = vrot.lane.b32.xlu1 %v335_v43, %s6322_s28 }
 0x2fc   :  { %v356_v44 = vld [vmem:[#allocation2 + $0x20] sm:$0xff] }
 0x2fd   :  { %v5031_v46 = vpack.i.bf16 %v356_v44, %v281_v45 }
 0x2fe   :  { %503 = vrot.lane.b32.xlu0 %v335_v43, %s6323_s16  ;;  %467 = vrot.lane.b32.xlu1 %v335_v43, %s6324_s19 }
 0x302   :  { %5032 = vrot.lane.b32.xlu0 %v5031_v46, %s6325_s5  ;;  %623 = vrot.lane.b32.xlu1 %v335_v43, %s6326_s2 }
 0x306   :  { %5042 = vrot.lane.b32.xlu0 %v5041_v49, %s6325_s5  ;;  %5017 = vrot.lane.b32.xlu1 %v5016_v50, %s6320_s15 }
 0x30a   :  { %5052 = vrot.lane.b32.xlu0 %v5016_v50, %s6321_s7  ;;  %5022 = vrot.lane.b32.xlu1 %v5016_v50, %s6319_s18 }
 0x30e   :  { %5062 = vrot.lane.b32.xlu0 %v5031_v46, %s6327_s17  ;;  %5027 = vrot.lane.b32.xlu1 %v5031_v46, %s6328_s20 }
 0x312   :  { %446 = vrot.lane.b32.xlu0 %v354_v47, %s6327_s17  ;;  %5037 = vrot.lane.b32.xlu1 %v5041_v49, %s6328_s20 }
 0x316   :  { %5072 = vrot.lane.b32.xlu0 %v5016_v50, %s6323_s16  ;;  %5047 = vrot.lane.b32.xlu1 %v5016_v50, %s6322_s28 }
 0x31a   :  { %5082 = vrot.lane.b32.xlu0 %v5031_v46, %s6329_s6  ;;  %5057 = vrot.lane.b32.xlu1 %v5031_v46, %s6326_s2 }
 0x31e   :  { %524 = vrot.lane.b32.xlu0 %v354_v47, %s6329_s6  ;;  %404 = vrot.lane.b32.xlu1 %v354_v47, %s6326_s2 }
 0x322   :  { %5092 = vrot.lane.b32.xlu0 %v5091_v51, %s6325_s5  ;;  %5067 = vrot.lane.b32.xlu1 %v5016_v50, %s6324_s19 }
 0x326   :  { %5102 = vrot.lane.b32.xlu0 %v5031_v46, %s6330_s23  ;;  %5077 = vrot.lane.b32.xlu1 %v5031_v46, %s6318_s3 }
 0x32a   :  { %604 = vrot.lane.b32.xlu0 %v354_v47, %s6330_s23  ;;  %485 = vrot.lane.b32.xlu1 %v354_v47, %s6318_s3 }
 0x32e   :  { %627 = vrot.lane.b32.xlu0 %v354_v47, %s6326_s2  ;;  %5087 = vrot.lane.b32.xlu1 %v5091_v51, %s6328_s20 }
 0x332   :  { %645 = vrot.lane.b32.xlu0 %v281_v45, %s6331_s24  ;;  %5097 = vrot.lane.b32.xlu1 %v5031_v46, %s6332_s26 }
 0x336   :  { %643 = vrot.lane.b32.xlu0 %v354_v47, %s6331_s24  ;;  %565 = vrot.lane.b32.xlu1 %v354_v47, %s6332_s26 }
 0x33a   :  { %625 = vrot.lane.b32.xlu1 %v266_v48, %s6326_s2 }
 0x33e   :  { %647 = vrot.lane.b32.xlu1 %v356_v44, %s6331_s24 }
 0x368   :  { %v342_v52 = vpop.permute.xlu0 %341  ;;  %v300_v53 = vpop.permute.xlu1 %299 }
 0x36c   :  { %v6600_v54 = vpop.permute.xlu0 %425  ;;  %v6602_v55 = vpop.permute.xlu1 %383 }
 0x370   :  { %v6604_v57 = vpop.permute.xlu0 %503  ;;  %v6606_v58 = vpop.permute.xlu1 %467 }
 0x374   :  { %v5033_v60 = vpop.permute.xlu0 %5032  ;;  %v6608_v61 = vpop.permute.xlu1 %623 }
 0x375   :  { %v5035_v11 = vunpack.i.h.bf16 %v5033_v60  ;;  %v5034_v12 = vunpack.i.l.bf16 %v5033_v60 }
 0x377   :  { %v368_v27 = vsel %vm366_vm13, %v5034_v12, %v5035_v11 }
 0x378   :  { %v6610_v63 = vpop.permute.xlu0 %5042  ;;  %v5018_v0 = vpop.permute.xlu1 %5017 }
 0x379   :  { %v5020_v3 = vunpack.i.h.bf16 %v5018_v0  ;;  %v5019_v4 = vunpack.i.l.bf16 %v5018_v0  ;;  %v5044_v25 = vunpack.i.l.bf16 %v6610_v63 }
 0x37b   :  { %v307_v13 = vsel %vm7784_vm6, %v5019_v4, %v5020_v3  ;;  %v306_v16 = vsel %vm7784_vm6, %v300_v53, %v5019_v4  ;;  %v367_v36 = vsel %vm366_vm13, %v5044_v25, %v5034_v12  ;;  %vm6656_vm6 = vcmp.lt.s32.totalorder %v177_v2, 15 }
 0x37c   :  { %v5053_v5 = vpop.permute.xlu0 %5052  ;;  %v5023_v6 = vpop.permute.xlu1 %5022 }
 0x37d   :  { %v5025_v8 = vunpack.i.h.bf16 %v5023_v6  ;;  %v5024_v9 = vunpack.i.l.bf16 %v5023_v6  ;;  %v5055_v33 = vunpack.i.h.bf16 %v5053_v5  ;;  %v5054_v34 = vunpack.i.l.bf16 %v5053_v5 }
 0x37f   :  { %v349_v14 = vsel %vm7783_vm7, %v5024_v9, %v5025_v8  ;;  %v348_v17 = vsel %vm7783_vm7, %v342_v52, %v5024_v9  ;;  %vm6652_vm7 = vcmp.lt.s32.totalorder %v184_v1, 15  ;;  %v432_v44 = vsel %vm7788_vm14, %v6600_v54, %v5054_v34 }
 0x380   :  { %v5063_v18 = vpop.permute.xlu0 %5062  ;;  %v5028_v19 = vpop.permute.xlu1 %5027  ;;  %v4578_v20 = vpack.c.bf16 %v349_v14, %v307_v13  ;;  %v4581_v21 = vpack.c.bf16 %v348_v17, %v306_v16  ;;  %v433_v45 = vsel %vm7788_vm14, %v5054_v34, %v5055_v33  ;;  %vm4585_vm3 = vmpackc.low %vm6612_vm5, %vm6652_vm7 }
 0x381   :  { %v5030_v23 = vunpack.i.h.bf16 %v5028_v19  ;;  %v5029_v24 = vunpack.i.l.bf16 %v5028_v19  ;;  %v5065_v46 = vunpack.i.h.bf16 %v5063_v18  ;;  %v5064_v47 = vunpack.i.l.bf16 %v5063_v18  ;;  %vm4588_vm14 = vmpackc.low %vm6616_vm8, %vm6656_vm6 }
 0x382   :  { %4580 = vmatprep.subr.msk.bf16.mxu0 %vm6625_vm10, %v4578_v20 }
 0x383   :  { %4583 = vmatpush1.bf16.msk.msra.mxu0 %vm6634_vm11, %v4581_v21  ;;  %v328_v26 = vsel %vm326_vm12, %v5029_v24, %v5030_v23  ;;  %v454_v56 = vsel %vm452_vm1, %v5064_v47, %v5065_v46 }
 0x384   :  { %v447_v29 = vpop.permute.xlu0 %446  ;;  %v6645_v30 = vpop.permute.xlu1 %5037  ;;  %v4602_v31 = vpack.c.bf16 %v368_v27, %v328_v26 }
 0x385   :  { %v5039_v32 = vunpack.i.l.bf16 %v6645_v30  ;;  %v453_v1 = vsel %vm452_vm1, %v447_v29, %v5064_v47 }
 0x386   :  { %4604 = vmatprep.subr.msk.bf16.mxu1 %vm6625_vm10, %v4602_v31 }
 0x387   :  { %v327_v35 = vsel %vm326_vm12, %v5039_v32, %v5029_v24 }
 0x388   :  { %v5073_v37 = vpop.permute.xlu0 %5072  ;;  %v5048_v38 = vpop.permute.xlu1 %5047  ;;  %v4605_v39 = vpack.c.bf16 %v367_v36, %v327_v35 }
 0x389   :  { %v5050_v41 = vunpack.i.h.bf16 %v5048_v38  ;;  %v5049_v42 = vunpack.i.l.bf16 %v5048_v38  ;;  %v5075_v3 = vunpack.i.h.bf16 %v5073_v37  ;;  %v5074_v4 = vunpack.i.l.bf16 %v5073_v37 }
 0x38a   :  { %4607 = vmatpush1.bf16.msk.msra.mxu1 %vm6634_vm11, %v4605_v39  ;;  %v5045_v38 = vunpack.i.h.bf16 %v6610_v63 }
 0x38b   :  { %v390_v48 = vsel %vm7789_vm15, %v6602_v55, %v5049_v42  ;;  %v391_v49 = vsel %vm7789_vm15, %v5049_v42, %v5050_v41  ;;  %vm7790_vm15 = vcmask 777216   ;;  %v5040_v41 = vunpack.i.h.bf16 %v6645_v30 }
 0x38c   :  { %v5083_v50 = vpop.permute.xlu0 %5082  ;;  %v5058_v51 = vpop.permute.xlu1 %5057  ;;  %v4584_v52 = vpack.c.bf16 %v433_v45, %v391_v49  ;;  %v4587_v53 = vpack.c.bf16 %v432_v44, %v390_v48  ;;  %v510_v12 = vsel %vm7790_vm15, %v6604_v57, %v5074_v4  ;;  %v511_v13 = vsel %vm7790_vm15, %v5074_v4, %v5075_v3  ;;  %vm6716_vm15 = vmpackc.low %vm6656_vm6, %vm6333_vm9 }
 0x38d   :  { %v5060_v54 = vunpack.i.h.bf16 %v5058_v51  ;;  %v5059_v55 = vunpack.i.l.bf16 %v5058_v51  ;;  %v5085_v14 = vunpack.i.h.bf16 %v5083_v50  ;;  %v5084_v16 = vunpack.i.l.bf16 %v5083_v50 }
 0x38e   :  { %4586 = vmatprep.subr.msk.bf16.mxu0 %vm4585_vm3, %v4584_v52 }
 0x38f   :  { %v412_v59 = vsel %vm410_vm2, %v5059_v55, %v5060_v54  ;;  %4589 = vmatpush1.bf16.msk.msra.mxu0 %vm4588_vm14, %v4587_v53 }
 0x390   :  { %v525_v60 = vpop.permute.xlu0 %524  ;;  %v405_v62 = vpop.permute.xlu1 %404  ;;  %v4608_v0 = vpack.c.bf16 %v454_v56, %v412_v59 }
 0x391   :  { %v411_v2 = vsel %vm410_vm2, %v405_v62, %v5059_v55 }
 0x392   :  { %v4611_v5 = vpack.c.bf16 %v453_v1, %v411_v2  ;;  %4610 = vmatprep.subr.msk.bf16.mxu1 %vm4585_vm3, %v4608_v0  ;;  %vm6709_vm3 = vmpackc.low %vm6652_vm7, %vm6333_vm9  ;;  %vm7791_vm9 = vcmask 392192  }
 0x394   :  { %v5093_v6 = vpop.permute.xlu0 %5092  ;;  %v5068_v8 = vpop.permute.xlu1 %5067  ;;  %4613 = vmatpush1.bf16.msk.msra.mxu1 %vm4588_vm14, %v4611_v5  ;;  %vm7794_vm14 = vcmask 515072  }
 0x395   :  { %v5070_v9 = vunpack.i.h.bf16 %v5068_v8  ;;  %v5069_v11 = vunpack.i.l.bf16 %v5068_v8  ;;  %v532_v26 = vsel %vm7794_vm14, %v5084_v16, %v5085_v14  ;;  %v531_v32 = vsel %vm7794_vm14, %v525_v60, %v5084_v16 }
 0x396   :  { %v5095_v35 = vunpack.i.h.bf16 %v5093_v6  ;;  %v5094_v36 = vunpack.i.l.bf16 %v5093_v6  ;;  %v658_v6 = vld [vmem:[#allocation12] sm:$0xff] }
 0x397   :  { %v473_v17 = vsel %vm7796_vm0, %v6606_v58, %v5069_v11  ;;  %v474_v18 = vsel %vm7796_vm0, %v5069_v11, %v5070_v9 }
 0x398   :  { %v5103_v20 = vpop.permute.xlu0 %5102  ;;  %v5078_v21 = vpop.permute.xlu1 %5077  ;;  %v4590_v57 = vpack.c.bf16 %v511_v13, %v474_v18  ;;  %v4593_v23 = vpack.c.bf16 %v510_v12, %v473_v17  ;;  %v592_v45 = vsel %vm366_vm13, %v5095_v35, %v5045_v38  ;;  %v593_v46 = vsel %vm366_vm13, %v5045_v38, %v5094_v36 }
 0x399   :  { %v5080_v58 = vunpack.i.h.bf16 %v5078_v21  ;;  %v5079_v25 = vunpack.i.l.bf16 %v5078_v21  ;;  %v5105_v47 = vunpack.i.h.bf16 %v5103_v20  ;;  %v5104_v48 = vunpack.i.l.bf16 %v5103_v20 }
 0x39a   :  { %4592 = vmatprep.subr.msk.bf16.mxu0 %vm6709_vm3, %v4590_v57 }
 0x39b   :  { %v492_v27 = vsel %vm280_vm4, %v5079_v25, %v5080_v58  ;;  %4595 = vmatpush1.bf16.msk.msra.mxu0 %vm6716_vm15, %v4593_v23  ;;  %v612_v55 = vsel %vm7791_vm9, %v5104_v48, %v5105_v47 }
 0x39c   :  { %v486_v29 = vpop.permute.xlu1 %485  ;;  %v4614_v31 = vpack.c.bf16 %v532_v26, %v492_v27  ;;  %v605_v33 = vpop.permute.xlu0 %604 }
 0x39d   :  { %v491_v34 = vsel %vm280_vm4, %v486_v29, %v5079_v25  ;;  %v611_v62 = vsel %vm7791_vm9, %v605_v33, %v5104_v48  ;;  %vm7792_vm9 = vcmask 384000  }
 0x39e   :  { %v4617_v37 = vpack.c.bf16 %v531_v32, %v491_v34  ;;  %4616 = vmatprep.subr.msk.bf16.mxu1 %vm6709_vm3, %v4614_v31  ;;  %vm7793_vm3 = vcmask 400384  }
 0x3a0   :  { %v5088_v39 = vpop.permute.xlu1 %5087  ;;  %4619 = vmatpush1.bf16.msk.msra.mxu1 %vm6716_vm15, %v4617_v37  ;;  %v628_v49 = vpop.permute.xlu0 %627  ;;  %vm696_vm15 = vcmask 588800  }
 0x3a1   :  { %v5090_v42 = vunpack.i.h.bf16 %v5088_v39  ;;  %v5089_v44 = vunpack.i.l.bf16 %v5088_v39 }
 0x3a3   :  { %v551_v50 = vsel %vm326_vm12, %v5090_v42, %v5040_v41  ;;  %v552_v51 = vsel %vm326_vm12, %v5040_v41, %v5089_v44 }
 0x3a4   :  { %v5098_v63 = vpop.permute.xlu1 %5097  ;;  %v4596_v52 = vpack.c.bf16 %v593_v46, %v552_v51  ;;  %v4599_v53 = vpack.c.bf16 %v592_v45, %v551_v50  ;;  %v646_v0 = vpop.permute.xlu0 %645 }
 0x3a5   :  { %v5100_v54 = vunpack.i.h.bf16 %v5098_v63  ;;  %v5099_v30 = vunpack.i.l.bf16 %v5098_v63 }
 0x3a6   :  { %4598 = vmatprep.subr.msk.bf16.mxu0 %vm6625_vm10, %v4596_v52 }
 0x3a7   :  { %v573_v56 = vsel %vm7793_vm3, %v5099_v30, %v5100_v54  ;;  %4601 = vmatpush1.bf16.msk.msra.mxu0 %vm6634_vm11, %v4599_v53 }
 0x3a8   :  { %v566_v59 = vpop.permute.xlu1 %565  ;;  %v4620_v60 = vpack.c.bf16 %v612_v55, %v573_v56  ;;  %v644_v8 = vpop.permute.xlu0 %643 }
 0x3a9   :  { %v572_v1 = vsel %vm7793_vm3, %v566_v59, %v5099_v30  ;;  %v650_v9 = vsel %vm7792_vm9, %v644_v8, %v646_v0 }
 0x3aa   :  { %v4623_v2 = vpack.c.bf16 %v611_v62, %v572_v1  ;;  %4622 = vmatprep.subr.msk.bf16.mxu1 %vm6625_vm10, %v4620_v60  ;;  %vm7813_vm10 = vcmask 1047808  }
 0x3ab   :  { %vm7817_vm3 = vmmov %vm7813_vm10 }
 0x3ac   :  { %v626_v3 = vpop.permute.xlu1 %625  ;;  %4625 = vmatpush1.bf16.msk.msra.mxu1 %vm6634_vm11, %v4623_v2  ;;  %vm7814_vm11 = vcmask 261120  }
 0x3ad   :  { %v630_v4 = vsel %vm410_vm2, %v626_v3, %v628_v49  ;;  %v629_v5 = vsel %vm410_vm2, %v6608_v61, %v626_v3  ;;  %v659_v61 = vld [vmem:[#allocation12 + $0x8] sm:$0xff] }
 0x3ae   :  { %4344 = vmatprep.subr.msk.mxu0 %vm6652_vm7, %v630_v4 }
 0x3af   :  { %4345 = vmatpush1.msk.msra.mxu0 %vm6656_vm6, %v629_v5 }
 0x3b0   :  { %v648_v15 = vpop.permute.xlu1 %647  ;;  %4302 = vmatmul.mubr.msk.f32.vlgmr.msra.gmra.mrb[0].mxu0 %vm696_vm15, %v658_v6 }
 0x3b1   :  { %v651_v22 = vsel %vm7792_vm9, %v646_v0, %v648_v15  ;;  %773 = vmatprep.mubr.f32.mxu0 %v6316_v28  ;;  %vm7816_vm9 = vmmov %vm7814_vm11 }
 0x3b2   :  { %4356 = vmatprep.subr.msk.mxu1 %vm6652_vm7, %v651_v22  ;;  %vm7818_vm14 = vmmov %vm7816_vm9 }
 0x3b3   :  { %4357 = vmatpush1.msk.msra.mxu1 %vm6656_vm6, %v650_v9 }
 0x3b4   :  { %4304 = vmatmul.mubr.msk.f32.vlgmr.msra.gmra.mrb[0].mxu1 %vm696_vm15, %v658_v6  ;;  %4303 = vmatmul.mubr.msk.f32.gmra.mrb[2].mxu0 %vm696_vm15, %v659_v61 }
 0x3b5   :  { %850 = vmatprep.mubr.f32.mxu1 %v6316_v28 }
 0x3b8   :  { %4305 = vmatmul.mubr.msk.f32.gmra.mrb[2].mxu1 %vm696_vm15, %v659_v61  ;;  %vm7815_vm15 = vcmask 1048064  }
 0x483   :  { %v769_v11 = vpop.f32.mrb[0].mxu0 }
 0x484   :  { %v4306_v12 = vmul.f32 -1.442695, %v769_v11  ;;  %v771_v13 = vpop.f32.mrb[1].mxu0 }
 0x485   :  { %v4307_v14 = vmul.f32 -1.442695, %v771_v13 }
 0x486   :  { %5919 = vpow2.f32 %v4306_v12 }
 0x487   :  { %5921 = vpow2.f32 %v4307_v14  ;;  %v846_v16 = vpop.f32.mrb[0].mxu1  ;;  %v775_v17 = vpop.f32.mrb[2].mxu0 }
 0x488   :  { %v4308_v18 = vmul.f32 -1.442695, %v846_v16  ;;  %v848_v19 = vpop.f32.mrb[1].mxu1  ;;  %v4310_v20 = vmul.f32 -1.442695, %v775_v17  ;;  %v777_v21 = vpop.f32.mrb[3].mxu0 }
 0x489   :  { %v4309_v57 = vmul.f32 -1.442695, %v848_v19  ;;  %v4311_v23 = vmul.f32 -1.442695, %v777_v21 }
 0x48a   :  { %5923 = vpow2.f32 %v4308_v18 }
 0x48b   :  { %5925 = vpow2.f32 %v4309_v57  ;;  %v852_v24 = vpop.f32.mrb[2].mxu1 }
 0x48c   :  { %v4312_v28 = vmul.f32 -1.442695, %v852_v24  ;;  %5927 = vpow2.f32 %v4310_v20  ;;  %v854_v58 = vpop.f32.mrb[3].mxu1 }
 0x48d   :  { %5929 = vpow2.f32 %v4311_v23  ;;  %v4313_v25 = vmul.f32 -1.442695, %v854_v58 }
 0x48e   :  { %5931 = vpow2.f32 %v4312_v28 }
 0x48f   :  { %5933 = vpow2.f32 %v4313_v25 }
 0x490   :  { %v5920_v26 = vpop.eup %5919 }
 0x491   :  { %v5922_v27 = vpop.eup %5921  ;;  %v881_v29 = vadd.f32 1.0, %v5920_v26 }
 0x492   :  { %v882_v31 = vadd.f32 1.0, %v5922_v27 }
 0x493   :  { %5935 = vrcp.f32 %v881_v29 }
 0x494   :  { %v5924_v32 = vpop.eup %5923  ;;  %5937 = vrcp.f32 %v882_v31 }
 0x495   :  { %v5926_v33 = vpop.eup %5925  ;;  %v883_v34 = vadd.f32 1.0, %v5924_v32 }
 0x496   :  { %v5928_v35 = vpop.eup %5927  ;;  %v884_v36 = vadd.f32 1.0, %v5926_v33 }
 0x497   :  { %v5930_v37 = vpop.eup %5929  ;;  %5939 = vrcp.f32 %v883_v34  ;;  %v885_v38 = vadd.f32 1.0, %v5928_v35 }
 0x498   :  { %v5932_v39 = vpop.eup %5931  ;;  %5941 = vrcp.f32 %v884_v36  ;;  %v886_v41 = vadd.f32 1.0, %v5930_v37 }
 0x499   :  { %v887_v42 = vadd.f32 1.0, %v5932_v39  ;;  %5943 = vrcp.f32 %v885_v38  ;;  %v5934_v44 = vpop.eup %5933 }
 0x49a   :  { %5945 = vrcp.f32 %v886_v41  ;;  %v888_v46 = vadd.f32 1.0, %v5934_v44 }
 0x49b   :  { %5947 = vrcp.f32 %v887_v42 }
 0x49c   :  { %5949 = vrcp.f32 %v888_v46 }
 0x49d   :  { %v5936_v45 = vpop.eup %5935 }
 0x49e   :  { %v5938_v47 = vpop.eup %5937  ;;  %v905_v48 = vmul.f32 %v5936_v45, %v769_v11 }
 0x49f   :  { %v906_v49 = vmul.f32 %v5938_v47, %v771_v13 }
 0x4a0   :  { %917 = vrot.lane.b32.xlu1 %v905_v48, %s6317_s9 }
 0x4a1   :  { %v5940_v50 = vpop.eup %5939  ;;  %919 = vrot.lane.b32.xlu0 %v906_v49, %s6317_s9 }
 0x4a2   :  { %v5942_v51 = vpop.eup %5941  ;;  %v907_v63 = vmul.f32 %v5940_v50, %v846_v16 }
 0x4a3   :  { %v5944_v52 = vpop.eup %5943  ;;  %v908_v30 = vmul.f32 %v5942_v51, %v848_v19 }
 0x4a4   :  { %v5946_v53 = vpop.eup %5945  ;;  %943 = vrot.lane.b32.xlu1 %v907_v63, %s6318_s3  ;;  %v909_v56 = vmul.f32 %v5944_v52, %v775_v17 }
 0x4a5   :  { %v5948_v54 = vpop.eup %5947  ;;  %v910_v59 = vmul.f32 %v5946_v53, %v777_v21 }
 0x4a6   :  { %v911_v55 = vmul.f32 %v5948_v54, %v852_v24  ;;  %v5950_v60 = vpop.eup %5949  ;;  %v1666_v24 = vld [vmem:[#allocation13 + $0x8] sm:$0xff] }
 0x4a7   :  { %v912_v62 = vmul.f32 %v5950_v60, %v854_v58 }
 0x4a8   :  { %945 = vrot.lane.b32.xlu1 %v908_v30, %s6318_s3  ;;  %947 = vrot.lane.b32.xlu0 %v911_v55, %s6318_s3 }
 0x4ac   :  { %921 = vrot.lane.b32.xlu1 %v909_v56, %s6317_s9  ;;  %923 = vrot.lane.b32.xlu0 %v910_v59, %s6317_s9  ;;  %v4049_v59 = vld [vmem:[#allocation7 + $0x80] sm:$0xff] }
 0x4b0   :  { %949 = vrot.lane.b32.xlu0 %v912_v62, %s6318_s3 }
 0x512   :  { %v918_v0 = vpop.permute.xlu1 %917 }
 0x513   :  { %933 = vst.msk [vmem:[#allocation2] sm:$0xff] %vm7813_vm10, %v918_v0  ;;  %v920_v1 = vpop.permute.xlu0 %919  ;;  %vm7819_vm10 = vmmov %vm7815_vm15 }
 0x514   :  { %935 = vst.msk [vmem:[#allocation2 + $0x10] sm:$0xff] %vm7814_vm11, %v920_v1  ;;  %v925_v5 = vsel %vm7816_vm9, %v918_v0, %v920_v1  ;;  %vm7823_vm11 = vcmask 924672  }
 0x516   :  { %v944_v2 = vpop.permute.xlu1 %943 }
 0x517   :  { %959 = vst.msk [vmem:[#allocation2 + $0x10] sm:$0xff] %vm7815_vm15, %v944_v2  ;;  %vm7824_vm15 = vmmov %vm7823_vm11 }
 0x51a   :  { %v946_v3 = vpop.permute.xlu1 %945  ;;  %v948_v4 = vpop.permute.xlu0 %947  ;;  %v965_v14 = vld [vmem:[#allocation2] sm:$0xff] }
 0x51b   :  { %961 = vst.msk [vmem:[#allocation2 + $0x20] sm:$0xff] %vm280_vm4, %v946_v3  ;;  %v951_v9 = vsel %vm280_vm4, %v944_v2, %v946_v3 }
 0x51e   :  { %v922_v6 = vpop.permute.xlu1 %921  ;;  %v924_v8 = vpop.permute.xlu0 %923  ;;  %v967_v15 = vld [vmem:[#allocation2 + $0x10] sm:$0xff] }
 0x51f   :  { %936 = vst.msk [vmem:[#allocation2 + $0x28] sm:$0xff] %vm7817_vm3, %v922_v6  ;;  %v5106_v22 = vpack.i.bf16 %v967_v15, %v925_v5  ;;  %vm6880_vm3 = vmpackc.low %vm6612_vm5, %vm6612_vm5  ;;  %vm7829_vm5 = vcmask 916480  }
 0x520   :  { %938 = vst.msk [vmem:[#allocation2 + $0x38] sm:$0xff] %vm7818_vm14, %v924_v8  ;;  %vm7820_vm14 = vmmov %vm7816_vm9  ;;  %vm7795_vm9 = vcmask 195584  }
 0x521   :  { %962 = vst.msk [vmem:[#allocation2 + $0x38] sm:$0xff] %vm7819_vm10, %v948_v4  ;;  %5107 = vrot.lane.b32.xlu1 %v5106_v22, %s6320_s15  ;;  %v926_v18 = vsel %vm7820_vm14, %v922_v6, %v924_v8  ;;  %4314 = vmatprep.mubr.msk.f32.mxu0 %vm7795_vm9, %v1666_v24  ;;  %vm7825_vm10 = vmmov %vm7823_vm11 }
 0x522   :  { %v950_v61 = vpop.permute.xlu0 %949  ;;  %v1007_v11 = vld [vmem:[#allocation2 + $0x20] sm:$0xff]  ;;  %4316 = vmatprep.mubr.msk.f32.mxu1 %vm7795_vm9, %v1666_v24  ;;  %vm7826_vm14 = vmmov %vm7825_vm10  ;;  %v4084_v24 = vld [vmem:[#allocation7 + $0x198] sm:$0xff] }
 0x523   :  { %964 = vst.msk [vmem:[#allocation2 + $0x48] sm:$0xff] %vm280_vm4, %v950_v61  ;;  %v5111_v12 = vpack.i.bf16 %v1007_v11, %v951_v9  ;;  %v952_v57 = vsel %vm280_vm4, %v948_v4, %v950_v61  ;;  %vm6891_vm9 = vmpackc.low %vm6616_vm8, %vm6616_vm8 }
 0x524   :  { %vm7830_vm8 = vmmov %vm7829_vm5 }
 0x525   :  { %5117 = vrot.lane.b32.xlu1 %v5106_v22, %s6319_s18  ;;  %5112 = vrot.lane.b32.xlu0 %v5111_v12, %s6328_s20 }
 0x526   :  { %v968_v13 = vld [vmem:[#allocation2 + $0x28] sm:$0xff] }
 0x527   :  { %v5196_v16 = vpack.i.bf16 %v968_v13, %v965_v14 }
 0x528   :  { %v970_v17 = vld [vmem:[#allocation2 + $0x38] sm:$0xff] }
 0x529   :  { %5127 = vrot.lane.b32.xlu1 %v5106_v22, %s6322_s28  ;;  %5122 = vrot.lane.b32.xlu0 %v5111_v12, %s6325_s5  ;;  %v5241_v19 = vpack.i.bf16 %v970_v17, %v926_v18  ;;  %v5251_v20 = vpack.i.bf16 %v970_v17, %v967_v15 }
 0x52a   :  { %v1010_v21 = vld [vmem:[#allocation2 + $0x48] sm:$0xff] }
 0x52b   :  { %v5246_v23 = vpack.i.bf16 %v1010_v21, %v952_v57 }
 0x52d   :  { %5137 = vrot.lane.b32.xlu1 %v5106_v22, %s6321_s7  ;;  %5132 = vrot.lane.b32.xlu0 %v5111_v12, %s6326_s2 }
 0x531   :  { %5147 = vrot.lane.b32.xlu1 %v5106_v22, %s6324_s19  ;;  %5142 = vrot.lane.b32.xlu0 %v5111_v12, %s6327_s17 }
 0x535   :  { %5157 = vrot.lane.b32.xlu1 %v5106_v22, %s6323_s16  ;;  %5152 = vrot.lane.b32.xlu0 %v5111_v12, %s6318_s3 }
 0x539   :  { %5167 = vrot.lane.b32.xlu1 %v5106_v22, %s6328_s20  ;;  %5162 = vrot.lane.b32.xlu0 %v5111_v12, %s6329_s6 }
 0x53d   :  { %5177 = vrot.lane.b32.xlu1 %v5106_v22, %s6325_s5  ;;  %5172 = vrot.lane.b32.xlu0 %v5111_v12, %s6332_s26 }
 0x541   :  { %5187 = vrot.lane.b32.xlu1 %v5106_v22, %s6326_s2  ;;  %5182 = vrot.lane.b32.xlu0 %v5111_v12, %s6330_s23 }
 0x545   :  { %5197 = vrot.lane.b32.xlu1 %v5196_v16, %s6320_s15  ;;  %5192 = vrot.lane.b32.xlu0 %v5111_v12, %s6331_s24 }
 0x549   :  { %5202 = vrot.lane.b32.xlu1 %v5196_v16, %s6319_s18  ;;  %5242 = vrot.lane.b32.xlu0 %v5241_v19, %s6320_s15 }
 0x54d   :  { %5207 = vrot.lane.b32.xlu1 %v5196_v16, %s6322_s28  ;;  %5252 = vrot.lane.b32.xlu0 %v5251_v20, %s6328_s20 }
 0x551   :  { %5212 = vrot.lane.b32.xlu1 %v5196_v16, %s6321_s7  ;;  %5257 = vrot.lane.b32.xlu0 %v5241_v19, %s6319_s18 }
 0x555   :  { %5217 = vrot.lane.b32.xlu1 %v5196_v16, %s6324_s19  ;;  %5267 = vrot.lane.b32.xlu0 %v5251_v20, %s6325_s5 }
 0x559   :  { %5222 = vrot.lane.b32.xlu1 %v5196_v16, %s6323_s16  ;;  %5272 = vrot.lane.b32.xlu0 %v5241_v19, %s6322_s28 }
 0x55d   :  { %5227 = vrot.lane.b32.xlu1 %v5196_v16, %s6328_s20  ;;  %5282 = vrot.lane.b32.xlu0 %v5251_v20, %s6326_s2 }
 0x561   :  { %5232 = vrot.lane.b32.xlu1 %v5196_v16, %s6325_s5  ;;  %5287 = vrot.lane.b32.xlu0 %v5241_v19, %s6321_s7 }
 0x565   :  { %5237 = vrot.lane.b32.xlu1 %v5196_v16, %s6326_s2  ;;  %5297 = vrot.lane.b32.xlu0 %v5251_v20, %s6327_s17 }
 0x569   :  { %5247 = vrot.lane.b32.xlu1 %v5246_v23, %s6328_s20  ;;  %5302 = vrot.lane.b32.xlu0 %v5241_v19, %s6324_s19 }
 0x56d   :  { %5262 = vrot.lane.b32.xlu1 %v5246_v23, %s6325_s5  ;;  %5312 = vrot.lane.b32.xlu0 %v5251_v20, %s6318_s3 }
 0x571   :  { %5277 = vrot.lane.b32.xlu1 %v5246_v23, %s6326_s2  ;;  %5317 = vrot.lane.b32.xlu0 %v5241_v19, %s6323_s16 }
 0x575   :  { %5292 = vrot.lane.b32.xlu1 %v5246_v23, %s6327_s17  ;;  %5327 = vrot.lane.b32.xlu0 %v5251_v20, %s6329_s6 }
 0x579   :  { %5307 = vrot.lane.b32.xlu1 %v5246_v23, %s6318_s3  ;;  %5332 = vrot.lane.b32.xlu0 %v5241_v19, %s6328_s20 }
 0x57d   :  { %5322 = vrot.lane.b32.xlu1 %v5246_v23, %s6329_s6  ;;  %5342 = vrot.lane.b32.xlu0 %v5251_v20, %s6332_s26 }
 0x581   :  { %5337 = vrot.lane.b32.xlu1 %v5246_v23, %s6332_s26  ;;  %5347 = vrot.lane.b32.xlu0 %v5241_v19, %s6325_s5 }
 0x585   :  { %5352 = vrot.lane.b32.xlu1 %v5246_v23, %s6330_s23  ;;  %5357 = vrot.lane.b32.xlu0 %v5251_v20, %s6330_s23 }
 0x589   :  { %5367 = vrot.lane.b32.xlu1 %v5246_v23, %s6331_s24  ;;  %5362 = vrot.lane.b32.xlu0 %v5241_v19, %s6326_s2 }
 0x58d   :  { %5372 = vrot.lane.b32.xlu0 %v5251_v20, %s6331_s24 }
 0x593   :  { %v5108_v28 = vpop.permute.xlu1 %5107 }
 0x594   :  { %v5110_v46 = vunpack.i.h.bf16 %v5108_v28  ;;  %v5109_v47 = vunpack.i.l.bf16 %v5108_v28 }
 0x596   :  { %v990_v54 = vsel %vm7823_vm11, %v5109_v47, %v5110_v46  ;;  %vm7831_vm11 = vmmov %vm7829_vm5 }
 0x597   :  { %v5118_v58 = vpop.permute.xlu1 %5117  ;;  %v6845_v25 = vpop.permute.xlu0 %5112 }
 0x598   :  { %v5120_v1 = vunpack.i.h.bf16 %v5118_v58  ;;  %v5119_v2 = vunpack.i.l.bf16 %v5118_v58  ;;  %v5115_v43 = vunpack.i.h.bf16 %v6845_v25 }
 0x59a   :  { %v1070_v9 = vsel %vm7831_vm11, %v5119_v2, %v5120_v1 }
 0x59b   :  { %v6847_v26 = vpop.permute.xlu1 %5127  ;;  %v6849_v27 = vpop.permute.xlu0 %5122 }
 0x59c   :  { %v5130_v16 = vunpack.i.h.bf16 %v6847_v26  ;;  %v5129_v17 = vunpack.i.l.bf16 %v6847_v26 }
 0x59f   :  { %v6851_v29 = vpop.permute.xlu1 %5137  ;;  %v6853_v31 = vpop.permute.xlu0 %5132 }
 0x5a3   :  { %v6855_v32 = vpop.permute.xlu1 %5147  ;;  %v6857_v33 = vpop.permute.xlu0 %5142 }
 0x5a7   :  { %v6859_v34 = vpop.permute.xlu1 %5157  ;;  %v6861_v35 = vpop.permute.xlu0 %5152 }
 0x5ab   :  { %v6863_v36 = vpop.permute.xlu1 %5167  ;;  %v6865_v37 = vpop.permute.xlu0 %5162 }
 0x5af   :  { %v6867_v38 = vpop.permute.xlu1 %5177  ;;  %v6869_v39 = vpop.permute.xlu0 %5172 }
 0x5b3   :  { %v6871_v41 = vpop.permute.xlu1 %5187  ;;  %v6873_v42 = vpop.permute.xlu0 %5182 }
 0x5b7   :  { %v5198_v44 = vpop.permute.xlu1 %5197  ;;  %v6875_v45 = vpop.permute.xlu0 %5192 }
 0x5b8   :  { %v5199_v48 = vunpack.i.l.bf16 %v5198_v44  ;;  %v5200_v51 = vunpack.i.h.bf16 %v5198_v44 }
 0x5ba   :  { %v989_v30 = vsel %vm7824_vm15, %v5199_v48, %v5109_v47  ;;  %vm7832_vm15 = vmmov %vm7829_vm5 }
 0x5bb   :  { %v5203_v49 = vpop.permute.xlu1 %5202  ;;  %v5243_v50 = vpop.permute.xlu0 %5242 }
 0x5bc   :  { %v5245_v63 = vunpack.i.h.bf16 %v5243_v50  ;;  %v5244_v52 = vunpack.i.l.bf16 %v5243_v50  ;;  %v5204_v3 = vunpack.i.l.bf16 %v5203_v49  ;;  %v5205_v5 = vunpack.i.h.bf16 %v5203_v49 }
 0x5bd   :  { %v5140_v50 = vunpack.i.h.bf16 %v6851_v29 }
 0x5be   :  { %v991_v55 = vsel %vm7825_vm10, %v5200_v51, %v5244_v52  ;;  %v992_v56 = vsel %vm7826_vm14, %v5244_v52, %v5245_v63  ;;  %v1069_v15 = vsel %vm7829_vm5, %v5204_v3, %v5119_v2  ;;  %vm6916_vm10 = vmpackc.low %vm6652_vm7, %vm6652_vm7  ;;  %vm7835_vm14 = vcmask 908288  }
 0x5bf   :  { %v4629_v7 = vpack.c.bf16 %v991_v55, %v989_v30  ;;  %v5208_v60 = vpop.permute.xlu1 %5207  ;;  %v6895_v62 = vpop.permute.xlu0 %5252  ;;  %v4626_v0 = vpack.c.bf16 %v992_v56, %v990_v54  ;;  %v1142_v28 = vsel %vm7835_vm14, %v5129_v17, %v5130_v16  ;;  %vm7836_vm5 = vmmov %vm7835_vm14  ;;  %v5139_v51 = vunpack.i.l.bf16 %v6851_v29 }
 0x5c0   :  { %v5209_v18 = vunpack.i.l.bf16 %v5208_v60  ;;  %v5210_v21 = vunpack.i.h.bf16 %v5208_v60  ;;  %vm7838_vm11 = vmmov %vm7836_vm5  ;;  %v5114_v52 = vunpack.i.l.bf16 %v6845_v25  ;;  %v5125_v54 = vunpack.i.h.bf16 %v6849_v27 }
 0x5c1   :  { %4628 = vmatprep.subr.msk.bf16.mxu0 %vm6880_vm3, %v4626_v0  ;;  %v5124_v30 = vunpack.i.l.bf16 %v6849_v27  ;;  %v5135_v55 = vunpack.i.h.bf16 %v6853_v31  ;;  %v5150_v3 = vunpack.i.h.bf16 %v6855_v32  ;;  %v5149_v25 = vunpack.i.l.bf16 %v6855_v32 }
 0x5c2   :  { %4631 = vmatpush1.bf16.msk.msra.mxu0 %vm6891_vm9, %v4629_v7  ;;  %v1141_v58 = vsel %vm7836_vm5, %v5209_v18, %v5129_v17  ;;  %v5134_v7 = vunpack.i.l.bf16 %v6853_v31  ;;  %v5160_v32 = vunpack.i.h.bf16 %v6859_v34  ;;  %v5254_v16 = vunpack.i.l.bf16 %v6895_v62 }
 0x5c3   :  { %v5213_v10 = vpop.permute.xlu1 %5212  ;;  %v5258_v4 = vpop.permute.xlu0 %5257 }
 0x5c4   :  { %v5260_v6 = vunpack.i.h.bf16 %v5258_v4  ;;  %v5259_v8 = vunpack.i.l.bf16 %v5258_v4  ;;  %v5214_v63 = vunpack.i.l.bf16 %v5213_v10  ;;  %v5215_v60 = vunpack.i.h.bf16 %v5213_v10 }
 0x5c5   :  { %v5145_v4 = vunpack.i.h.bf16 %v6857_v33  ;;  %v6971_v18 = vsel %vm410_vm2, %v5134_v7, %v5135_v55 }
 0x5c6   :  { %v1071_v22 = vsel %vm7830_vm8, %v5205_v5, %v5259_v8  ;;  %v1072_v61 = vsel %vm7832_vm15, %v5259_v8, %v5260_v6  ;;  %vm7837_vm8 = vmmov %vm7836_vm5  ;;  %v5144_v5 = vunpack.i.l.bf16 %v6857_v33 }
 0x5c7   :  { %v6905_v11 = vpop.permute.xlu1 %5217  ;;  %v6907_v12 = vpop.permute.xlu0 %5267  ;;  %v4632_v13 = vpack.c.bf16 %v1072_v61, %v1070_v9  ;;  %v4634_v14 = vpack.c.bf16 %v1071_v22, %v1069_v15  ;;  %vm6927_vm15 = vmpackc.low %vm6656_vm6, %vm6656_vm6  ;;  %vm7841_vm6 = vcmask 793600  }
 0x5c8   :  { %v1222_v2 = vsel %vm7841_vm6, %v5139_v51, %v5140_v50  ;;  %vm7842_vm7 = vmmov %vm7841_vm6  ;;  %v5219_v17 = vunpack.i.l.bf16 %v6905_v11  ;;  %v5269_v55 = vunpack.i.l.bf16 %v6907_v12 }
 0x5c9   :  { %4633 = vmatprep.subr.bf16.mxu0 %v4632_v13  ;;  %v1221_v6 = vsel %vm7842_vm7, %v5214_v63, %v5139_v51  ;;  %vm7843_vm14 = vmmov %vm7841_vm6  ;;  %v1030_v13 = vsel %vm326_vm12, %v5114_v52, %v5115_v43  ;;  %v1029_v63 = vsel %vm326_vm12, %v5254_v16, %v5114_v52  ;;  %v5270_v52 = vunpack.i.h.bf16 %v6907_v12 }
 0x5ca   :  { %4635 = vmatpush1.bf16.msra.mxu0 %v4634_v14  ;;  %vm7844_vm5 = vmmov %vm7841_vm6  ;;  %v5159_v14 = vunpack.i.l.bf16 %v6859_v34  ;;  %v1302_v34 = vsel %vm7796_vm0, %v5149_v25, %v5150_v3  ;;  %v5165_v12 = vunpack.i.h.bf16 %v6865_v37 }
 0x5cb   :  { %v6911_v19 = vpop.permute.xlu1 %5222  ;;  %v5273_v20 = vpop.permute.xlu0 %5272 }
 0x5cc   :  { %v5275_v57 = vunpack.i.h.bf16 %v5273_v20  ;;  %v5274_v23 = vunpack.i.l.bf16 %v5273_v20  ;;  %v6976_v20 = vsel %vm452_vm1, %v5144_v5, %v5145_v4 }
 0x5ce   :  { %v1143_v26 = vsel %vm7837_vm8, %v5210_v21, %v5274_v23  ;;  %v1144_v44 = vsel %vm7838_vm11, %v5274_v23, %v5275_v57  ;;  %v1106_v21 = vsel %vm366_vm13, %v5124_v30, %v5125_v54  ;;  %v5155_v57 = vunpack.i.h.bf16 %v6861_v35 }
 0x5cf   :  { %v4639_v40 = vpack.c.bf16 %v1143_v26, %v1141_v58  ;;  %v6931_v47 = vpop.permute.xlu1 %5227  ;;  %v6933_v48 = vpop.permute.xlu0 %5282  ;;  %v4636_v49 = vpack.c.bf16 %v1144_v44, %v1142_v28  ;;  %v5154_v23 = vunpack.i.l.bf16 %v6861_v35  ;;  %v5255_v28 = vunpack.i.h.bf16 %v6895_v62 }
 0x5d0   :  { %v5220_v58 = vunpack.i.h.bf16 %v6905_v11  ;;  %vm7845_vm8 = vcmask 777216   ;;  %v1301_v54 = vsel %vm7796_vm0, %v5219_v17, %v5149_v25  ;;  %v5284_v16 = vunpack.i.l.bf16 %v6933_v48 }
 0x5d1   :  { %4638 = vmatprep.subr.msk.bf16.mxu0 %vm6916_vm10, %v4636_v49  ;;  %v6989_v43 = vsel %vm7845_vm8, %v5159_v14, %v5160_v32  ;;  %v5224_v32 = vunpack.i.l.bf16 %v6911_v19  ;;  %vm7846_vm11 = vmmov %vm7845_vm8 }
 0x5d2   :  { %4641 = vmatpush1.bf16.msk.msra.mxu0 %vm6927_vm15, %v4639_v40  ;;  %vm7847_vm6 = vmmov %vm7845_vm8 }
 0x5d3   :  { %v6946_v56 = vpop.permute.xlu1 %5232  ;;  %v5288_v29 = vpop.permute.xlu0 %5287  ;;  %vm7848_vm7 = vmmov %vm7847_vm6 }
 0x5d4   :  { %v5290_v0 = vunpack.i.h.bf16 %v5288_v29  ;;  %v5289_v1 = vunpack.i.l.bf16 %v5288_v29 }
 0x5d6   :  { %v1223_v8 = vsel %vm7843_vm14, %v5215_v60, %v5289_v1  ;;  %v1224_v15 = vsel %vm7844_vm5, %v5289_v1, %v5290_v0  ;;  %vm7849_vm14 = vcmask 515072   ;;  %vm7850_vm5 = vcmask 400384  }
 0x5d7   :  { %v4645_v22 = vpack.c.bf16 %v1223_v8, %v1221_v6  ;;  %v6957_v10 = vpop.permute.xlu1 %5237  ;;  %v6959_v9 = vpop.permute.xlu0 %5297  ;;  %v4642_v61 = vpack.c.bf16 %v1224_v15, %v1222_v2  ;;  %v7004_v15 = vsel %vm280_vm4, %v5154_v23, %v5155_v57  ;;  %v5225_v57 = vunpack.i.h.bf16 %v6911_v19  ;;  %vm7851_vm8 = vmmov %vm7849_vm14 }
 0x5d8   :  { %v5299_v19 = vunpack.i.l.bf16 %v6959_v9 }
 0x5d9   :  { %4644 = vmatprep.subr.msk.bf16.mxu0 %vm6880_vm3, %v4642_v61  ;;  %v5169_v61 = vunpack.i.l.bf16 %v6863_v36 }
 0x5da   :  { %4647 = vmatpush1.bf16.msk.msra.mxu0 %vm6891_vm9, %v4645_v22  ;;  %v5170_v22 = vunpack.i.h.bf16 %v6863_v36 }
 0x5db   :  { %v5248_v26 = vpop.permute.xlu1 %5247  ;;  %v5303_v44 = vpop.permute.xlu0 %5302 }
 0x5dc   :  { %v5250_v40 = vunpack.i.h.bf16 %v5248_v26  ;;  %v5249_v49 = vunpack.i.l.bf16 %v5248_v26  ;;  %v5305_v50 = vunpack.i.h.bf16 %v5303_v44  ;;  %v5304_v51 = vunpack.i.l.bf16 %v5303_v44 }
 0x5de   :  { %v1031_v29 = vsel %vm326_vm12, %v5255_v28, %v5249_v49  ;;  %v1032_v62 = vsel %vm326_vm12, %v5249_v49, %v5250_v40  ;;  %v1303_v11 = vsel %vm7796_vm0, %v5220_v58, %v5304_v51  ;;  %v1304_v60 = vsel %vm7796_vm0, %v5304_v51, %v5305_v50 }
 0x5df   :  { %v4677_v0 = vpack.c.bf16 %v1031_v29, %v1029_v63  ;;  %v5263_v1 = vpop.permute.xlu1 %5262  ;;  %v6998_v2 = vpop.permute.xlu0 %5312  ;;  %v4674_v3 = vpack.c.bf16 %v1032_v62, %v1030_v13  ;;  %v4648_v4 = vpack.c.bf16 %v1304_v60, %v1302_v34  ;;  %v4650_v6 = vpack.c.bf16 %v1303_v11, %v1301_v54 }
 0x5e0   :  { %v5265_v25 = vunpack.i.h.bf16 %v5263_v1  ;;  %v5264_v8 = vunpack.i.l.bf16 %v5263_v1  ;;  %v1105_v13 = vsel %vm366_vm13, %v5269_v55, %v5124_v30  ;;  %v5285_v28 = vunpack.i.h.bf16 %v6933_v48 }
 0x5e1   :  { %4676 = vmatprep.subr.msk.bf16.mxu1 %vm6880_vm3, %v4674_v3  ;;  %4649 = vmatprep.subr.bf16.mxu0 %v4648_v4  ;;  %v5164_v51 = vunpack.i.l.bf16 %v6865_v37  ;;  %v1373_v63 = vsel %vm7846_vm11, %v5224_v32, %v5159_v14  ;;  %v1181_v54 = vsel %vm410_vm2, %v5284_v16, %v5134_v7  ;;  %v5300_v1 = vunpack.i.h.bf16 %v6959_v9  ;;  %vm7852_vm11 = vmmov %vm7851_vm8 }
 0x5e2   :  { %v1107_v17 = vsel %vm366_vm13, %v5270_v52, %v5264_v8  ;;  %4679 = vmatpush1.bf16.msk.msra.mxu1 %vm6891_vm9, %v4677_v0  ;;  %4651 = vmatpush1.bf16.msra.mxu0 %v4650_v6  ;;  %v1108_v34 = vsel %vm366_vm13, %v5264_v8, %v5265_v25  ;;  %v1454_v0 = vsel %vm326_vm12, %v5169_v61, %v5170_v22  ;;  %v5180_v6 = vunpack.i.h.bf16 %v6867_v38 }
 0x5e3   :  { %v5278_v58 = vpop.permute.xlu1 %5277  ;;  %v5318_v26 = vpop.permute.xlu0 %5317  ;;  %v4680_v44 = vpack.c.bf16 %v1108_v34, %v1106_v21  ;;  %v4682_v40 = vpack.c.bf16 %v1107_v17, %v1105_v13  ;;  %v5179_v52 = vunpack.i.l.bf16 %v6867_v38  ;;  %v5229_v25 = vunpack.i.l.bf16 %v6931_v47 }
 0x5e4   :  { %v5280_v49 = vunpack.i.h.bf16 %v5278_v58  ;;  %v5279_v27 = vunpack.i.l.bf16 %v5278_v58  ;;  %v5320_v50 = vunpack.i.h.bf16 %v5318_v26  ;;  %v5319_v30 = vunpack.i.l.bf16 %v5318_v26 }
 0x5e5   :  { %4681 = vmatprep.subr.bf16.mxu1 %v4680_v44  ;;  %v5314_v8 = vunpack.i.l.bf16 %v6998_v2  ;;  %v1261_v9 = vsel %vm452_vm1, %v5299_v19, %v5144_v5  ;;  %v5230_v32 = vunpack.i.h.bf16 %v6931_v47  ;;  %v5315_v16 = vunpack.i.h.bf16 %v6998_v2 }
 0x5e6   :  { %v1183_v48 = vsel %vm410_vm2, %v5285_v28, %v5279_v27  ;;  %v1184_v21 = vsel %vm410_vm2, %v5279_v27, %v5280_v49  ;;  %v1375_v55 = vsel %vm7847_vm6, %v5225_v57, %v5319_v30  ;;  %v1376_v29 = vsel %vm7848_vm7, %v5319_v30, %v5320_v50  ;;  %4683 = vmatpush1.bf16.msra.mxu1 %v4682_v40  ;;  %vm7853_vm6 = vmmov %vm7851_vm8 }
 0x5e7   :  { %v4687_v62 = vpack.c.bf16 %v1183_v48, %v1181_v54  ;;  %v4655_v11 = vpack.c.bf16 %v1375_v55, %v1373_v63  ;;  %v5293_v60 = vpop.permute.xlu1 %5292  ;;  %v5328_v14 = vpop.permute.xlu0 %5327  ;;  %v4684_v31 = vpack.c.bf16 %v1184_v21, %v6971_v18  ;;  %v4652_v7 = vpack.c.bf16 %v1376_v29, %v6989_v43  ;;  %vm7854_vm7 = vmmov %vm7850_vm5 }
 0x5e8   :  { %v5295_v3 = vunpack.i.h.bf16 %v5293_v60  ;;  %v5294_v4 = vunpack.i.l.bf16 %v5293_v60  ;;  %v5175_v18 = vunpack.i.h.bf16 %v6869_v39  ;;  %v5174_v26 = vunpack.i.l.bf16 %v6869_v39 }
 0x5e9   :  { %4686 = vmatprep.subr.msk.bf16.mxu1 %vm6916_vm10, %v4684_v31  ;;  %4654 = vmatprep.subr.msk.bf16.mxu0 %vm6916_vm10, %v4652_v7  ;;  %v1453_v44 = vsel %vm326_vm12, %v5229_v25, %v5169_v61  ;;  %v1337_v47 = vsel %vm280_vm4, %v5314_v8, %v5154_v23  ;;  %v5329_v2 = vunpack.i.l.bf16 %v5328_v14  ;;  %v1414_v30 = vsel %vm7849_vm14, %v5164_v51, %v5165_v12  ;;  %vm7855_vm14 = vmmov %vm7850_vm5 }
 0x5ea   :  { %v1263_v43 = vsel %vm452_vm1, %v5300_v1, %v5294_v4  ;;  %v1264_v22 = vsel %vm452_vm1, %v5294_v4, %v5295_v3  ;;  %4689 = vmatpush1.bf16.msk.msra.mxu1 %vm6927_vm15, %v4687_v62  ;;  %4657 = vmatpush1.bf16.msk.msra.mxu0 %vm6927_vm15, %v4655_v11  ;;  %v5330_v63 = vunpack.i.h.bf16 %v5328_v14  ;;  %v1494_v48 = vsel %vm7850_vm5, %v5174_v26, %v5175_v18 }
 0x5eb   :  { %v4693_v13 = vpack.c.bf16 %v1263_v43, %v1261_v9  ;;  %v5308_v17 = vpop.permute.xlu1 %5307  ;;  %v5333_v34 = vpop.permute.xlu0 %5332  ;;  %v4690_v33 = vpack.c.bf16 %v1264_v22, %v6976_v20  ;;  %v5234_v21 = vunpack.i.l.bf16 %v6946_v56  ;;  %v5190_v29 = vunpack.i.h.bf16 %v6871_v41 }
 0x5ec   :  { %v5310_v5 = vunpack.i.h.bf16 %v5308_v17  ;;  %v5309_v57 = vunpack.i.l.bf16 %v5308_v17  ;;  %v5335_v28 = vunpack.i.h.bf16 %v5333_v34  ;;  %v5334_v58 = vunpack.i.l.bf16 %v5333_v34 }
 0x5ed   :  { %4692 = vmatprep.subr.msk.bf16.mxu1 %vm6880_vm3, %v4690_v33  ;;  %v1413_v12 = vsel %vm7851_vm8, %v5329_v2, %v5164_v51  ;;  %v5235_v60 = vunpack.i.h.bf16 %v6946_v56  ;;  %v5185_v51 = vunpack.i.h.bf16 %v6873_v42  ;;  %v5184_v25 = vunpack.i.l.bf16 %v6873_v42 }
 0x5ee   :  { %v1339_v20 = vsel %vm280_vm4, %v5315_v16, %v5309_v57  ;;  %v1455_v40 = vsel %vm326_vm12, %v5230_v32, %v5334_v58  ;;  %v1456_v49 = vsel %vm326_vm12, %v5334_v58, %v5335_v28  ;;  %4695 = vmatpush1.bf16.msk.msra.mxu1 %vm6891_vm9, %v4693_v13  ;;  %v1340_v36 = vsel %vm280_vm4, %v5309_v57, %v5310_v5 }
 0x5ef   :  { %v4661_v39 = vpack.c.bf16 %v1455_v40, %v1453_v44  ;;  %v5323_v61 = vpop.permute.xlu1 %5322  ;;  %v5343_v35 = vpop.permute.xlu0 %5342  ;;  %v4696_v23 = vpack.c.bf16 %v1340_v36, %v7004_v15  ;;  %v4658_v27 = vpack.c.bf16 %v1456_v49, %v1454_v0  ;;  %v4698_v50 = vpack.c.bf16 %v1339_v20, %v1337_v47 }
 0x5f0   :  { %v5325_v54 = vunpack.i.h.bf16 %v5323_v61  ;;  %v5324_v19 = vunpack.i.l.bf16 %v5323_v61  ;;  %v5344_v55 = vunpack.i.l.bf16 %v5343_v35  ;;  %v1534_v15 = vsel %vm366_vm13, %v5179_v52, %v5180_v6 }
 0x5f1   :  { %4697 = vmatprep.subr.bf16.mxu1 %v4696_v23  ;;  %4660 = vmatprep.subr.msk.bf16.mxu0 %vm6880_vm3, %v4658_v27  ;;  %v5345_v31 = vunpack.i.h.bf16 %v5343_v35  ;;  %v1533_v8 = vsel %vm366_vm13, %v5234_v21, %v5179_v52  ;;  %v5189_v57 = vunpack.i.l.bf16 %v6871_v41  ;;  %v5195_v28 = vunpack.i.h.bf16 %v6875_v45 }
 0x5f2   :  { %v1415_v62 = vsel %vm7852_vm11, %v5330_v63, %v5324_v19  ;;  %v1416_v11 = vsel %vm7853_vm6, %v5324_v19, %v5325_v54  ;;  %4699 = vmatpush1.bf16.msra.mxu1 %v4698_v50  ;;  %4663 = vmatpush1.bf16.msk.msra.mxu0 %vm6891_vm9, %v4661_v39  ;;  %v1493_v18 = vsel %vm7854_vm7, %v5344_v55, %v5174_v26  ;;  %v5194_v58 = vunpack.i.l.bf16 %v6875_v45 }
 0x5f3   :  { %v4703_v14 = vpack.c.bf16 %v1415_v62, %v1413_v12  ;;  %v5338_v7 = vpop.permute.xlu1 %5337  ;;  %v5348_v0 = vpop.permute.xlu0 %5347  ;;  %v4700_v1 = vpack.c.bf16 %v1416_v11, %v1414_v30  ;;  %vm7856_vm8 = vcmask 392192   ;;  %v5239_v44 = vunpack.i.l.bf16 %v6957_v10 }
 0x5f4   :  { %v5340_v3 = vunpack.i.h.bf16 %v5338_v7  ;;  %v5339_v4 = vunpack.i.l.bf16 %v5338_v7  ;;  %v5350_v37 = vunpack.i.h.bf16 %v5348_v0  ;;  %v5349_v6 = vunpack.i.l.bf16 %v5348_v0  ;;  %vm7857_vm11 = vmmov %vm7856_vm8  ;;  %v5988_v7 = vld [vmem:[#allocation4] sm:$0xff]  ;;  %v5989_v0 = vld [vmem:[#allocation4 + $0x18] sm:$0xff] }
 0x5f5   :  { %4702 = vmatprep.subr.msk.bf16.mxu1 %vm6916_vm10, %v4700_v1  ;;  %v1570_v26 = vsel %vm7856_vm8, %v5184_v25, %v5185_v51  ;;  %vm7858_vm6 = vmmov %vm7856_vm8  ;;  %v5240_v45 = vunpack.i.h.bf16 %v6957_v10  ;;  %v1606_v27 = vsel %vm410_vm2, %v5189_v57, %v5190_v29  ;;  %v1605_v30 = vsel %vm410_vm2, %v5239_v44, %v5189_v57  ;;  %v1667_v1 = vld [vmem:[#allocation13 + $0x10] sm:$0xff] }
 0x5f6   :  { %v1495_v56 = vsel %vm7855_vm14, %v5345_v31, %v5339_v4  ;;  %v1496_v9 = vsel %vm7850_vm5, %v5339_v4, %v5340_v3  ;;  %v1535_v43 = vsel %vm366_vm13, %v5235_v60, %v5349_v6  ;;  %4705 = vmatpush1.bf16.msk.msra.mxu1 %vm6927_vm15, %v4703_v14  ;;  %v1536_v42 = vsel %vm366_vm13, %v5349_v6, %v5350_v37  ;;  %vm7859_vm7 = vmmov %vm7858_vm6  ;;  %v5987_v60 = vld [vmem:[#allocation4 + $0x8] sm:$0xff]  ;;  %v1665_v14 = vld [vmem:[#allocation13] sm:$0xff] }
 0x5f7   :  { %v4709_v22 = vpack.c.bf16 %v1495_v56, %v1493_v18  ;;  %v5353_v38 = vpop.permute.xlu1 %5352  ;;  %v5358_v32 = vpop.permute.xlu0 %5357  ;;  %v4706_v52 = vpack.c.bf16 %v1496_v9, %v1494_v48  ;;  %v4664_v16 = vpack.c.bf16 %v1536_v42, %v1534_v15  ;;  %v4666_v13 = vpack.c.bf16 %v1535_v43, %v1533_v8  ;;  %v1668_v31 = vld [vmem:[#allocation13 + $0x18] sm:$0xff]  ;;  %v5990_v3 = vld [vmem:[#allocation4 + $0x10] sm:$0xff] }
 0x5f8   :  { %v5355_v17 = vunpack.i.h.bf16 %v5353_v38  ;;  %v5354_v34 = vunpack.i.l.bf16 %v5353_v38  ;;  %v5360_v33 = vunpack.i.h.bf16 %v5358_v32  ;;  %v5359_v5 = vunpack.i.l.bf16 %v5358_v32 }
 0x5f9   :  { %4708 = vmatprep.subr.msk.bf16.mxu1 %vm6880_vm3, %v4706_v52  ;;  %4665 = vmatprep.subr.bf16.mxu0 %v4664_v16  ;;  %vm7860_vm14 = vcmask 384000  }
 0x5fa   :  { %v1571_v47 = vsel %vm7857_vm11, %v5360_v33, %v5354_v34  ;;  %v1569_v2 = vsel %vm7858_vm6, %v5359_v5, %v5184_v25  ;;  %4711 = vmatpush1.bf16.msk.msra.mxu1 %vm6891_vm9, %v4709_v22  ;;  %4667 = vmatpush1.bf16.msra.mxu0 %v4666_v13  ;;  %v1572_v41 = vsel %vm7859_vm7, %v5354_v34, %v5355_v17  ;;  %vm7861_vm5 = vmmov %vm7860_vm14  ;;  %vm7864_vm6 = vcmask 195584  }
 0x5fb   :  { %v5368_v20 = vpop.permute.xlu1 %5367  ;;  %v5363_v40 = vpop.permute.xlu0 %5362  ;;  %v4712_v49 = vpack.c.bf16 %v1572_v41, %v1570_v26  ;;  %v4714_v36 = vpack.c.bf16 %v1571_v47, %v1569_v2  ;;  %v1646_v50 = vsel %vm7860_vm14, %v5194_v58, %v5195_v28  ;;  %vm7862_vm8 = vmmov %vm7861_vm5  ;;  %vm7866_vm14 = vcmask 1047808  }
 0x5fc   :  { %v5370_v39 = vunpack.i.h.bf16 %v5368_v20  ;;  %v5369_v61 = vunpack.i.l.bf16 %v5368_v20  ;;  %v5365_v35 = vunpack.i.h.bf16 %v5363_v40  ;;  %v5364_v23 = vunpack.i.l.bf16 %v5363_v40  ;;  %vm7863_vm11 = vmmov %vm7861_vm5 }
 0x5fd   :  { %4713 = vmatprep.subr.bf16.mxu1 %v4712_v49  ;;  %vm7865_vm7 = vmmov %vm7864_vm6 }
 0x5fe   :  { %v1648_v63 = vsel %vm7861_vm5, %v5369_v61, %v5370_v39  ;;  %v1607_v54 = vsel %vm410_vm2, %v5240_v45, %v5364_v23  ;;  %v1608_v10 = vsel %vm410_vm2, %v5364_v23, %v5365_v35  ;;  %4715 = vmatpush1.bf16.msra.mxu1 %v4714_v36  ;;  %vm7867_vm5 = vcmask 261120  }
 0x5ff   :  { %v4671_v19 = vpack.c.bf16 %v1607_v54, %v1605_v30  ;;  %v5373_v48 = vpop.permute.xlu0 %5372  ;;  %v4716_v21 = vpack.c.bf16 %v1648_v63, %v1646_v50  ;;  %v4668_v55 = vpack.c.bf16 %v1608_v10, %v1606_v27  ;;  %v1980_v30 = vld [vmem:[#allocation16] sm:$0xff] }
 0x600   :  { %v5375_v15 = vunpack.i.h.bf16 %v5373_v48  ;;  %v5374_v12 = vunpack.i.l.bf16 %v5373_v48 }
 0x601   :  { %4718 = vmatprep.subr.msk.bf16.mxu1 %vm6916_vm10, %v4716_v21  ;;  %4670 = vmatprep.subr.msk.bf16.mxu0 %vm6916_vm10, %v4668_v55  ;;  %v1954_v55 = vld [vmem:[#allocation15] sm:$0xff] }
 0x602   :  { %v1647_v29 = vsel %vm7862_vm8, %v5375_v15, %v5369_v61  ;;  %v1645_v62 = vsel %vm7863_vm11, %v5374_v12, %v5194_v58  ;;  %4673 = vmatpush1.bf16.msk.msra.mxu0 %vm6927_vm15, %v4671_v19  ;;  %vm7868_vm8 = vcmask 1048064   ;;  %vm7869_vm11 = vmmov %vm7867_vm5 }
 0x603   :  { %v4719_v11 = vpack.c.bf16 %v1647_v29, %v1645_v62  ;;  %1788 = vmatprep.subr.mxu0 %v5987_v60  ;;  %v1955_v29 = vld [vmem:[#allocation15 + $0x8] sm:$0xff]  ;;  %v1981_v60 = vld [vmem:[#allocation16 + $0x8] sm:$0xff] }
 0x605   :  { %4721 = vmatpush1.bf16.msk.msra.mxu1 %vm6927_vm15, %v4719_v11 }
 0x606   :  { %1789 = vmatpush1.msra.mxu0 %v5988_v7  ;;  %1865 = vmatprep.subr.mxu1 %v5989_v0 }
 0x607   :  { %1817 = vmatmul.mubr.f32.vlgmr.msra.gmra.mrb[4].mxu0 %v1665_v14 }
 0x608   :  { %4315 = vmatprep.mubr.msk.f32.mxu0 %vm7864_vm6, %v1668_v31  ;;  %vm7870_vm6 = vmmov %vm7866_vm14 }
 0x609   :  { %1866 = vmatpush1.msra.mxu1 %v5990_v3 }
 0x60a   :  { %1894 = vmatmul.mubr.f32.vlgmr.msra.gmra.mrb[4].mxu1 %v1665_v14 }
 0x60b   :  { %1823 = vmatmul.mubr.f32.gmra.mrb[6].mxu0 %v1667_v1  ;;  %4317 = vmatprep.mubr.msk.f32.mxu1 %vm7865_vm7, %v1668_v31  ;;  %vm7871_vm7 = vmmov %vm7867_vm5 }
 0x60e   :  { %1900 = vmatmul.mubr.f32.gmra.mrb[6].mxu1 %v1667_v1 }
 0x6da   :  { %v1818_v4 = vpop.f32.mrb[4].mxu0 }
 0x6db   :  { %1906 = vst [vmem:[#allocation21] sm:$0xff] %v1818_v4  ;;  %v1820_v37 = vpop.f32.mrb[5].mxu0 }
 0x6dc   :  { %1907 = vst [vmem:[#allocation21 + $0x8] sm:$0xff] %v1820_v37  ;;  %v1914_v6 = vadd.f32 %v1820_v37, %v1818_v4 }
 0x6dd   :  { %v1895_v51 = vpop.f32.mrb[4].mxu1 }
 0x6de   :  { %1908 = vst [vmem:[#allocation21 + $0x10] sm:$0xff] %v1895_v51  ;;  %v1915_v25 = vadd.f32 %v1914_v6, %v1895_v51  ;;  %v1824_v8 = vpop.f32.mrb[6].mxu0  ;;  %v1897_v18 = vpop.f32.mrb[5].mxu1 }
 0x6df   :  { %1910 = vst [vmem:[#allocation21 + $0x20] sm:$0xff] %v1824_v8  ;;  %1909 = vst [vmem:[#allocation21 + $0x18] sm:$0xff] %v1897_v18  ;;  %v1826_v56 = vpop.f32.mrb[7].mxu0 }
 0x6e0   :  { %1911 = vst [vmem:[#allocation21 + $0x28] sm:$0xff] %v1826_v56  ;;  %v1919_v9 = vadd.f32 %v1826_v56, %v1824_v8  ;;  %v1916_v43 = vadd.f32 %v1915_v25, %v1897_v18 }
 0x6e1   :  { %v1901_v42 = vpop.f32.mrb[6].mxu1 }
 0x6e2   :  { %1912 = vst [vmem:[#allocation21 + $0x30] sm:$0xff] %v1901_v42  ;;  %v1920_v22 = vadd.f32 %v1919_v9, %v1901_v42  ;;  %1917 = vadd.xlane.f32.xlu1 %v1916_v43  ;;  %v1903_v38 = vpop.f32.mrb[7].mxu1 }
 0x6e3   :  { %1913 = vst [vmem:[#allocation21 + $0x38] sm:$0xff] %v1903_v38 }
 0x6e4   :  { %v1921_v32 = vadd.f32 %v1920_v22, %v1903_v38 }
 0x6e6   :  { %1922 = vadd.xlane.f32.xlu0 %v1921_v32 }
 0x76f   :  { %v1918_v52 = vpop.xlane.xlu1 %1917 }
 0x770   :  { %v1924_v16 = vmul.f32 0.001953125, %v1918_v52 }
 0x772   :  { %v1926_v13 = vsub.f32 %v1818_v4, %v1924_v16  ;;  %v1927_v17 = vsub.f32 %v1820_v37, %v1924_v16  ;;  %v1928_v34 = vsub.f32 %v1895_v51, %v1924_v16  ;;  %v1929_v5 = vsub.f32 %v1897_v18, %v1924_v16 }
 0x773   :  { %v1923_v33 = vpop.xlane.xlu0 %1922 }
 0x774   :  { %v1925_v57 = vmul.f32 0.001953125, %v1923_v33  ;;  %v1934_v28 = vmul.f32 %v1926_v13, %v1926_v13  ;;  %v1935_v58 = vmul.f32 %v1927_v17, %v1927_v17  ;;  %v1936_v26 = vmul.f32 %v1928_v34, %v1928_v34 }
 0x775   :  { %v1937_v45 = vmul.f32 %v1929_v5, %v1929_v5 }
 0x776   :  { %v1930_v44 = vsub.f32 %v1824_v8, %v1925_v57  ;;  %v1931_v47 = vsub.f32 %v1826_v56, %v1925_v57  ;;  %v1932_v2 = vsub.f32 %v1901_v42, %v1925_v57  ;;  %v1942_v41 = vadd.f32 %v1935_v58, %v1934_v28 }
 0x777   :  { %v1933_v40 = vsub.f32 %v1903_v38, %v1925_v57 }
 0x778   :  { %v1943_v20 = vadd.f32 %v1942_v41, %v1936_v26  ;;  %v1938_v49 = vmul.f32 %v1930_v44, %v1930_v44  ;;  %v1939_v36 = vmul.f32 %v1931_v47, %v1931_v47  ;;  %v1940_v61 = vmul.f32 %v1932_v2, %v1932_v2 }
 0x779   :  { %v1941_v23 = vmul.f32 %v1933_v40, %v1933_v40 }
 0x77a   :  { %v1944_v39 = vadd.f32 %v1943_v20, %v1937_v45  ;;  %v1947_v35 = vadd.f32 %v1939_v36, %v1938_v49 }
 0x77c   :  { %1945 = vadd.xlane.f32.xlu0 %v1944_v39  ;;  %v1948_v27 = vadd.f32 %v1947_v35, %v1940_v61 }
 0x77e   :  { %v1949_v50 = vadd.f32 %v1948_v27, %v1941_v23  ;;  %v2749_v27 = vld [vmem:[#allocation18 + $0x8] sm:$0xff] }
 0x780   :  { %1950 = vadd.xlane.f32.xlu1 %v1949_v50 }
 0x791   :  { %1984 = vperm.xlu1 %5015, %v1980_v30  }
 0x809   :  { %v1946_v63 = vpop.xlane.xlu0 %1945 }
 0x80a   :  { %v1952_v54 = vmul.f32 0.001953125, %v1946_v63 }
 0x80c   :  { %v1956_v10 = vadd.f32 1e-05, %v1952_v54 }
 0x80d   :  { %v1951_v19 = vpop.xlane.xlu1 %1950 }
 0x80e   :  { %5951 = vrsqrt.f32 %v1956_v10  ;;  %v1953_v48 = vmul.f32 0.001953125, %v1951_v19 }
 0x810   :  { %v1957_v21 = vadd.f32 1e-05, %v1953_v48 }
 0x811   :  { %v1985_v14 = vpop.permute.xlu1 %1984 }
 0x812   :  { %5953 = vrsqrt.f32 %v1957_v21 }
 0x818   :  { %v5952_v15 = vpop.eup %5951 }
 0x819   :  { %v1960_v12 = vmul.f32 %v5952_v15, %v1954_v55 }
 0x81b   :  { %1964 = vperm.xlu0 %5376, %v1960_v12  }
 0x81c   :  { %v5954_v62 = vpop.eup %5953 }
 0x81d   :  { %v1961_v11 = vmul.f32 %v5954_v62, %v1955_v29 }
 0x81f   :  { %1969 = vperm.xlu1 %5015, %v1961_v11  }
 0x823   :  { %1989 = vperm.xlu1 %5015, %v1981_v60  }
 0x89a   :  { %v1965_v31 = vpop.permute.xlu0 %1964 }
 0x89b   :  { %v1972_v7 = vmul.f32 %v1965_v31, %v1926_v13  ;;  %v1974_v0 = vmul.f32 %v1965_v31, %v1928_v34  ;;  %v1973_v4 = vmul.f32 %v1965_v31, %v1927_v17  ;;  %v1975_v51 = vmul.f32 %v1965_v31, %v1929_v5 }
 0x89d   :  { %v1994_v1 = vadd.f32 %v1985_v14, %v1974_v0  ;;  %v1992_v3 = vadd.f32 %v1985_v14, %v1972_v7  ;;  %v1993_v8 = vadd.f32 %v1985_v14, %v1973_v4  ;;  %v1995_v56 = vadd.f32 %v1985_v14, %v1975_v51 }
 0x89e   :  { %v1970_v37 = vpop.permute.xlu1 %1969 }
 0x89f   :  { %2030 = vrot.lane.b32.xlu0 %v1994_v1, %s6318_s3  ;;  %2004 = vrot.lane.b32.xlu1 %v1992_v3, %s6317_s9  ;;  %v1978_v6 = vmul.f32 %v1970_v37, %v1932_v2  ;;  %v1976_v9 = vmul.f32 %v1970_v37, %v1930_v44  ;;  %v1977_v42 = vmul.f32 %v1970_v37, %v1931_v47 }
 0x8a0   :  { %v1979_v38 = vmul.f32 %v1970_v37, %v1933_v40 }
 0x8a2   :  { %v1990_v25 = vpop.permute.xlu1 %1989 }
 0x8a3   :  { %v1998_v18 = vadd.f32 %v1990_v25, %v1978_v6  ;;  %2006 = vrot.lane.b32.xlu1 %v1993_v8, %s6317_s9  ;;  %v1996_v43 = vadd.f32 %v1990_v25, %v1976_v9  ;;  %v1997_v22 = vadd.f32 %v1990_v25, %v1977_v42  ;;  %v1999_v32 = vadd.f32 %v1990_v25, %v1979_v38 }
 0x8a5   :  { %2034 = vrot.lane.b32.xlu0 %v1998_v18, %s6318_s3 }
 0x8a7   :  { %2032 = vrot.lane.b32.xlu1 %v1995_v56, %s6318_s3 }
 0x8ab   :  { %2008 = vrot.lane.b32.xlu1 %v1996_v43, %s6317_s9 }
 0x8af   :  { %2010 = vrot.lane.b32.xlu1 %v1997_v22, %s6317_s9 }
 0x8b3   :  { %2036 = vrot.lane.b32.xlu1 %v1999_v32, %s6318_s3 }
 0x911   :  { %v2005_v52 = vpop.permute.xlu1 %2004  ;;  %v2031_v13 = vpop.permute.xlu0 %2030 }
 0x912   :  { %2020 = vst.msk [vmem:[#allocation2] sm:$0xff] %vm7866_vm14, %v2005_v52  ;;  %vm7872_vm14 = vmmov %vm7868_vm8 }
 0x915   :  { %v2007_v16 = vpop.permute.xlu1 %2006 }
 0x916   :  { %2022 = vst.msk [vmem:[#allocation2 + $0x10] sm:$0xff] %vm7867_vm5, %v2007_v16  ;;  %v2012_v33 = vsel %vm7869_vm11, %v2005_v52, %v2007_v16  ;;  %vm7873_vm11 = vcmask 924672  }
 0x917   :  { %2046 = vst.msk [vmem:[#allocation2 + $0x10] sm:$0xff] %vm7868_vm8, %v2031_v13  ;;  %v2035_v44 = vpop.permute.xlu0 %2034  ;;  %vm2824_vm8 = vcmask 130048  }
 0x918   :  { %4318 = vmatprep.mubr.msk.f32.mxu0 %vm2824_vm8, %v2749_v27  ;;  %4320 = vmatprep.mubr.msk.f32.mxu1 %vm2824_vm8, %v2749_v27 }
 0x919   :  { %v2033_v17 = vpop.permute.xlu1 %2032  ;;  %v2052_v35 = vld [vmem:[#allocation2] sm:$0xff] }
 0x91a   :  { %2048 = vst.msk [vmem:[#allocation2 + $0x20] sm:$0xff] %vm280_vm4, %v2033_v17  ;;  %v2038_v28 = vsel %vm280_vm4, %v2031_v13, %v2033_v17 }
 0x91d   :  { %v2009_v34 = vpop.permute.xlu1 %2008 }
 0x91e   :  { %2023 = vst.msk [vmem:[#allocation2 + $0x28] sm:$0xff] %vm7870_vm6, %v2009_v34  ;;  %v2054_v5 = vld [vmem:[#allocation2 + $0x10] sm:$0xff]  ;;  %vm7874_vm6 = vmmov %vm7873_vm11 }
 0x91f   :  { %v5377_v57 = vpack.i.bf16 %v2054_v5, %v2012_v33 }
 0x921   :  { %5378 = vrot.lane.b32.xlu0 %v5377_v57, %s6320_s15  ;;  %v2011_v58 = vpop.permute.xlu1 %2010  ;;  %v2094_v26 = vld [vmem:[#allocation2 + $0x20] sm:$0xff] }
 0x922   :  { %2025 = vst.msk [vmem:[#allocation2 + $0x38] sm:$0xff] %vm7871_vm7, %v2011_v58  ;;  %v5382_v47 = vpack.i.bf16 %v2094_v26, %v2038_v28  ;;  %v2013_v41 = vsel %vm7867_vm5, %v2009_v34, %v2011_v58  ;;  %vm7875_vm7 = vcmask 916480  }
 0x923   :  { %2049 = vst.msk [vmem:[#allocation2 + $0x38] sm:$0xff] %vm7872_vm14, %v2035_v44  ;;  %vm7876_vm14 = vcmask 908288   ;;  %vm7877_vm5 = vmmov %vm7875_vm7 }
 0x925   :  { %5383 = vrot.lane.b32.xlu0 %v5382_v47, %s6328_s20  ;;  %v2037_v2 = vpop.permute.xlu1 %2036  ;;  %v2055_v61 = vld [vmem:[#allocation2 + $0x28] sm:$0xff] }
 0x926   :  { %2051 = vst.msk [vmem:[#allocation2 + $0x48] sm:$0xff] %vm280_vm4, %v2037_v2  ;;  %v2039_v40 = vsel %vm280_vm4, %v2035_v44, %v2037_v2  ;;  %v5467_v23 = vpack.i.bf16 %v2055_v61, %v2052_v35 }
 0x929   :  { %5388 = vrot.lane.b32.xlu0 %v5377_v57, %s6319_s18 }
 0x92a   :  { %v2057_v45 = vld [vmem:[#allocation2 + $0x38] sm:$0xff] }
 0x92b   :  { %v5512_v20 = vpack.i.bf16 %v2057_v45, %v2013_v41  ;;  %v5522_v39 = vpack.i.bf16 %v2057_v45, %v2054_v5 }
 0x92d   :  { %5393 = vrot.lane.b32.xlu0 %v5382_v47, %s6325_s5  ;;  %5513 = vrot.lane.b32.xlu1 %v5512_v20, %s6320_s15  ;;  %v2097_v49 = vld [vmem:[#allocation2 + $0x48] sm:$0xff] }
 0x92e   :  { %v5517_v36 = vpack.i.bf16 %v2097_v49, %v2039_v40 }
 0x931   :  { %5398 = vrot.lane.b32.xlu0 %v5377_v57, %s6322_s28  ;;  %5518 = vrot.lane.b32.xlu1 %v5517_v36, %s6328_s20 }
 0x935   :  { %5403 = vrot.lane.b32.xlu0 %v5382_v47, %s6326_s2  ;;  %5523 = vrot.lane.b32.xlu1 %v5522_v39, %s6328_s20 }
 0x939   :  { %5408 = vrot.lane.b32.xlu0 %v5377_v57, %s6321_s7  ;;  %5528 = vrot.lane.b32.xlu1 %v5512_v20, %s6319_s18 }
 0x93d   :  { %5413 = vrot.lane.b32.xlu0 %v5382_v47, %s6327_s17  ;;  %5533 = vrot.lane.b32.xlu1 %v5517_v36, %s6325_s5 }
 0x941   :  { %5418 = vrot.lane.b32.xlu0 %v5377_v57, %s6324_s19  ;;  %5538 = vrot.lane.b32.xlu1 %v5522_v39, %s6325_s5 }
 0x945   :  { %5423 = vrot.lane.b32.xlu0 %v5382_v47, %s6318_s3  ;;  %5543 = vrot.lane.b32.xlu1 %v5512_v20, %s6322_s28 }
 0x949   :  { %5428 = vrot.lane.b32.xlu0 %v5377_v57, %s6323_s16  ;;  %5548 = vrot.lane.b32.xlu1 %v5517_v36, %s6326_s2 }
 0x94d   :  { %5433 = vrot.lane.b32.xlu0 %v5382_v47, %s6329_s6  ;;  %5553 = vrot.lane.b32.xlu1 %v5522_v39, %s6326_s2 }
 0x951   :  { %5438 = vrot.lane.b32.xlu0 %v5377_v57, %s6328_s20  ;;  %5558 = vrot.lane.b32.xlu1 %v5512_v20, %s6321_s7 }
 0x955   :  { %5443 = vrot.lane.b32.xlu0 %v5382_v47, %s6332_s26  ;;  %5563 = vrot.lane.b32.xlu1 %v5517_v36, %s6327_s17 }
 0x959   :  { %5448 = vrot.lane.b32.xlu0 %v5377_v57, %s6325_s5  ;;  %5568 = vrot.lane.b32.xlu1 %v5522_v39, %s6327_s17 }
 0x95d   :  { %5453 = vrot.lane.b32.xlu0 %v5382_v47, %s6330_s23  ;;  %5573 = vrot.lane.b32.xlu1 %v5512_v20, %s6324_s19 }
 0x961   :  { %5458 = vrot.lane.b32.xlu0 %v5377_v57, %s6326_s2  ;;  %5578 = vrot.lane.b32.xlu1 %v5517_v36, %s6318_s3 }
 0x965   :  { %5463 = vrot.lane.b32.xlu0 %v5382_v47, %s6331_s24  ;;  %5583 = vrot.lane.b32.xlu1 %v5522_v39, %s6318_s3 }
 0x969   :  { %5468 = vrot.lane.b32.xlu0 %v5467_v23, %s6320_s15  ;;  %5588 = vrot.lane.b32.xlu1 %v5512_v20, %s6323_s16 }
 0x96d   :  { %5473 = vrot.lane.b32.xlu0 %v5467_v23, %s6319_s18  ;;  %5593 = vrot.lane.b32.xlu1 %v5517_v36, %s6329_s6 }
 0x971   :  { %5478 = vrot.lane.b32.xlu0 %v5467_v23, %s6322_s28  ;;  %5598 = vrot.lane.b32.xlu1 %v5522_v39, %s6329_s6 }
 0x975   :  { %5483 = vrot.lane.b32.xlu0 %v5467_v23, %s6321_s7  ;;  %5603 = vrot.lane.b32.xlu1 %v5512_v20, %s6328_s20 }
 0x979   :  { %5488 = vrot.lane.b32.xlu0 %v5467_v23, %s6324_s19  ;;  %5608 = vrot.lane.b32.xlu1 %v5517_v36, %s6332_s26 }
 0x97d   :  { %5493 = vrot.lane.b32.xlu0 %v5467_v23, %s6323_s16  ;;  %5613 = vrot.lane.b32.xlu1 %v5522_v39, %s6332_s26 }
 0x981   :  { %5498 = vrot.lane.b32.xlu0 %v5467_v23, %s6328_s20  ;;  %5618 = vrot.lane.b32.xlu1 %v5512_v20, %s6325_s5 }
 0x985   :  { %5503 = vrot.lane.b32.xlu0 %v5467_v23, %s6325_s5  ;;  %5623 = vrot.lane.b32.xlu1 %v5517_v36, %s6330_s23 }
 0x989   :  { %5508 = vrot.lane.b32.xlu0 %v5467_v23, %s6326_s2  ;;  %5628 = vrot.lane.b32.xlu1 %v5522_v39, %s6330_s23 }
 0x98d   :  { %5633 = vrot.lane.b32.xlu1 %v5512_v20, %s6326_s2 }
 0x991   :  { %5638 = vrot.lane.b32.xlu1 %v5517_v36, %s6331_s24 }
 0x993   :  { %v7216_v50 = vpop.permute.xlu0 %5378 }
 0x994   :  { %v5381_v54 = vunpack.i.h.bf16 %v7216_v50  ;;  %v5380_v10 = vunpack.i.l.bf16 %v7216_v50 }
 0x995   :  { %5643 = vrot.lane.b32.xlu1 %v5522_v39, %s6331_s24 }
 0x996   :  { %v2077_v15 = vsel %vm7873_vm11, %v5380_v10, %v5381_v54  ;;  %vm7878_vm11 = vmmov %vm7874_vm6 }
 0x997   :  { %v5384_v30 = vpop.permute.xlu0 %5383 }
 0x998   :  { %v5386_v12 = vunpack.i.h.bf16 %v5384_v30  ;;  %v5385_v29 = vunpack.i.l.bf16 %v5384_v30 }
 0x99a   :  { %v2117_v0 = vsel %vm326_vm12, %v5385_v29, %v5386_v12 }
 0x99b   :  { %v7219_v63 = vpop.permute.xlu0 %5388 }
 0x99f   :  { %v5394_v19 = vpop.permute.xlu0 %5393  ;;  %v7223_v48 = vpop.permute.xlu1 %5513 }
 0x9a0   :  { %v5516_v21 = vunpack.i.h.bf16 %v7223_v48  ;;  %v5515_v55 = vunpack.i.l.bf16 %v7223_v48  ;;  %v5396_v43 = vunpack.i.h.bf16 %v5394_v19  ;;  %v5395_v42 = vunpack.i.l.bf16 %v5394_v19 }
 0x9a2   :  { %v2079_v62 = vsel %vm7874_vm6, %v5515_v55, %v5516_v21  ;;  %v2193_v16 = vsel %vm366_vm13, %v5395_v42, %v5396_v43 }
 0x9a3   :  { %v7233_v11 = vpop.permute.xlu0 %5398  ;;  %v5519_v60 = vpop.permute.xlu1 %5518  ;;  %v4722_v14 = vpack.c.bf16 %v2079_v62, %v2077_v15 }
 0x9a4   :  { %v5521_v31 = vunpack.i.h.bf16 %v5519_v60  ;;  %v5520_v7 = vunpack.i.l.bf16 %v5519_v60 }
 0x9a5   :  { %4724 = vmatprep.subr.msk.bf16.mxu0 %vm6880_vm3, %v4722_v14 }
 0x9a6   :  { %v2119_v1 = vsel %vm326_vm12, %v5520_v7, %v5521_v31 }
 0x9a7   :  { %v5404_v3 = vpop.permute.xlu0 %5403  ;;  %v5524_v4 = vpop.permute.xlu1 %5523  ;;  %v4770_v37 = vpack.c.bf16 %v2119_v1, %v2117_v0 }
 0x9a8   :  { %v5526_v6 = vunpack.i.h.bf16 %v5524_v4  ;;  %v5525_v51 = vunpack.i.l.bf16 %v5524_v4  ;;  %v5406_v2 = vunpack.i.h.bf16 %v5404_v3  ;;  %v5405_v41 = vunpack.i.l.bf16 %v5404_v3 }
 0x9a9   :  { %4772 = vmatprep.subr.msk.bf16.mxu1 %vm6880_vm3, %v4770_v37 }
 0x9aa   :  { %v2116_v25 = vsel %vm326_vm12, %v5525_v51, %v5385_v29  ;;  %v2118_v8 = vsel %vm326_vm12, %v5526_v6, %v5520_v7  ;;  %v2269_v36 = vsel %vm410_vm2, %v5405_v41, %v5406_v2 }
 0x9ab   :  { %v4773_v18 = vpack.c.bf16 %v2118_v8, %v2116_v25  ;;  %v7243_v56 = vpop.permute.xlu0 %5408  ;;  %v7245_v9 = vpop.permute.xlu1 %5528 }
 0x9ad   :  { %4775 = vmatpush1.bf16.msk.msra.mxu1 %vm6891_vm9, %v4773_v18 }
 0x9af   :  { %v5414_v22 = vpop.permute.xlu0 %5413  ;;  %v5534_v38 = vpop.permute.xlu1 %5533 }
 0x9b0   :  { %v5536_v32 = vunpack.i.h.bf16 %v5534_v38  ;;  %v5535_v52 = vunpack.i.l.bf16 %v5534_v38  ;;  %v5416_v29 = vunpack.i.h.bf16 %v5414_v22  ;;  %v5415_v62 = vunpack.i.l.bf16 %v5414_v22 }
 0x9b2   :  { %v2195_v13 = vsel %vm366_vm13, %v5535_v52, %v5536_v32  ;;  %v2349_v0 = vsel %vm452_vm1, %v5415_v62, %v5416_v29 }
 0x9b3   :  { %v7251_v17 = vpop.permute.xlu0 %5418  ;;  %v5539_v34 = vpop.permute.xlu1 %5538  ;;  %v4776_v33 = vpack.c.bf16 %v2195_v13, %v2193_v16 }
 0x9b4   :  { %v5541_v5 = vunpack.i.h.bf16 %v5539_v34  ;;  %v5540_v57 = vunpack.i.l.bf16 %v5539_v34 }
 0x9b5   :  { %4777 = vmatprep.subr.bf16.mxu1 %v4776_v33 }
 0x9b6   :  { %v2192_v28 = vsel %vm366_vm13, %v5540_v57, %v5395_v42  ;;  %v2194_v58 = vsel %vm366_vm13, %v5541_v5, %v5535_v52 }
 0x9b7   :  { %v7255_v26 = vpop.permute.xlu0 %5423  ;;  %v7257_v44 = vpop.permute.xlu1 %5543  ;;  %v4778_v47 = vpack.c.bf16 %v2194_v58, %v2192_v28  ;;  %v5531_v58 = vunpack.i.h.bf16 %v7245_v9 }
 0x9b8   :  { %v5426_v22 = vunpack.i.h.bf16 %v7255_v26  ;;  %v5425_v38 = vunpack.i.l.bf16 %v7255_v26  ;;  %v5391_v26 = vunpack.i.h.bf16 %v7219_v63 }
 0x9b9   :  { %4779 = vmatpush1.bf16.msra.mxu1 %v4778_v47  ;;  %v5530_v47 = vunpack.i.l.bf16 %v7245_v9 }
 0x9ba   :  { %v2425_v34 = vsel %vm280_vm4, %v5425_v38, %v5426_v22 }
 0x9bb   :  { %v7259_v45 = vpop.permute.xlu0 %5428  ;;  %v5549_v20 = vpop.permute.xlu1 %5548 }
 0x9bc   :  { %v5551_v40 = vunpack.i.h.bf16 %v5549_v20  ;;  %v5550_v49 = vunpack.i.l.bf16 %v5549_v20  ;;  %v5390_v20 = vunpack.i.l.bf16 %v7219_v63  ;;  %v2159_v63 = vsel %vm7875_vm7, %v5530_v47, %v5531_v58  ;;  %vm7879_vm7 = vmmov %vm7876_vm14 }
 0x9be   :  { %v2271_v39 = vsel %vm410_vm2, %v5550_v49, %v5551_v40  ;;  %v5401_v40 = vunpack.i.h.bf16 %v7233_v11  ;;  %v2157_v29 = vsel %vm7877_vm5, %v5390_v20, %v5391_v26  ;;  %v5420_v26 = vunpack.i.l.bf16 %v7251_v17 }
 0x9bf   :  { %v7263_v61 = vpop.permute.xlu0 %5433  ;;  %v5554_v35 = vpop.permute.xlu1 %5553  ;;  %v4780_v23 = vpack.c.bf16 %v2271_v39, %v2269_v36 }
 0x9c0   :  { %v5556_v27 = vunpack.i.h.bf16 %v5554_v35  ;;  %v5555_v30 = vunpack.i.l.bf16 %v5554_v35  ;;  %v5546_v35 = vunpack.i.h.bf16 %v7257_v44 }
 0x9c1   :  { %4782 = vmatprep.subr.msk.bf16.mxu1 %vm6916_vm10, %v4780_v23  ;;  %v5545_v23 = vunpack.i.l.bf16 %v7257_v44 }
 0x9c2   :  { %v2268_v54 = vsel %vm410_vm2, %v5555_v30, %v5405_v41  ;;  %v2270_v19 = vsel %vm410_vm2, %v5556_v27, %v5550_v49  ;;  %v5400_v49 = vunpack.i.l.bf16 %v7233_v11  ;;  %v5411_v11 = vunpack.i.h.bf16 %v7243_v56 }
 0x9c3   :  { %v4783_v21 = vpack.c.bf16 %v2270_v19, %v2268_v54  ;;  %v7269_v15 = vpop.permute.xlu0 %5438  ;;  %v7271_v12 = vpop.permute.xlu1 %5558 }
 0x9c4   :  { %v5561_v50 = vunpack.i.h.bf16 %v7271_v12 }
 0x9c5   :  { %4785 = vmatpush1.bf16.msk.msra.mxu1 %vm6927_vm15, %v4783_v21  ;;  %v2229_v21 = vsel %vm7876_vm14, %v5400_v49, %v5401_v40  ;;  %vm7880_vm14 = vcmask 515072  }
 0x9c7   :  { %v7275_v60 = vpop.permute.xlu0 %5443  ;;  %v5564_v14 = vpop.permute.xlu1 %5563 }
 0x9c8   :  { %v5566_v31 = vunpack.i.h.bf16 %v5564_v14  ;;  %v5565_v7 = vunpack.i.l.bf16 %v5564_v14  ;;  %v5435_v14 = vunpack.i.l.bf16 %v7263_v61 }
 0x9ca   :  { %v2351_v1 = vsel %vm452_vm1, %v5565_v7, %v5566_v31 }
 0x9cb   :  { %v4786_v3 = vpack.c.bf16 %v2351_v1, %v2349_v0  ;;  %v7279_v4 = vpop.permute.xlu0 %5448  ;;  %v5569_v37 = vpop.permute.xlu1 %5568  ;;  %v2231_v0 = vsel %vm7879_vm7, %v5545_v23, %v5546_v35  ;;  %vm7883_vm7 = vcmask 793600  }
 0x9cc   :  { %v5571_v6 = vunpack.i.h.bf16 %v5569_v37  ;;  %v5570_v51 = vunpack.i.l.bf16 %v5569_v37 }
 0x9cd   :  { %4788 = vmatprep.subr.msk.bf16.mxu1 %vm6880_vm3, %v4786_v3 }
 0x9ce   :  { %v2348_v25 = vsel %vm452_vm1, %v5570_v51, %v5415_v62  ;;  %v2350_v8 = vsel %vm452_vm1, %v5571_v6, %v5565_v7  ;;  %v5436_v62 = vunpack.i.h.bf16 %v7263_v61  ;;  %v5410_v7 = vunpack.i.l.bf16 %v7243_v56 }
 0x9cf   :  { %v4789_v18 = vpack.c.bf16 %v2350_v8, %v2348_v25  ;;  %v7285_v43 = vpop.permute.xlu0 %5453  ;;  %v7287_v42 = vpop.permute.xlu1 %5573  ;;  %v4728_v6 = vpack.c.bf16 %v2159_v63, %v2157_v29  ;;  %v5430_v29 = vunpack.i.l.bf16 %v7259_v45 }
 0x9d0   :  { %v5576_v48 = vunpack.i.h.bf16 %v7287_v42  ;;  %v2501_v56 = vsel %vm7880_vm14, %v5435_v14, %v5436_v62  ;;  %v5446_v62 = vunpack.i.h.bf16 %v7275_v60 }
 0x9d1   :  { %4791 = vmatpush1.bf16.msk.msra.mxu1 %vm6891_vm9, %v4789_v18 }
 0x9d3   :  { %v7293_v32 = vpop.permute.xlu0 %5458  ;;  %v5579_v52 = vpop.permute.xlu1 %5578 }
 0x9d4   :  { %v5581_v16 = vunpack.i.h.bf16 %v5579_v52  ;;  %v5580_v13 = vunpack.i.l.bf16 %v5579_v52  ;;  %v2309_v52 = vsel %vm7883_vm7, %v5410_v7, %v5411_v11 }
 0x9d6   :  { %v2427_v33 = vsel %vm280_vm4, %v5580_v13, %v5581_v16 }
 0x9d7   :  { %v7297_v5 = vpop.permute.xlu0 %5463  ;;  %v5584_v57 = vpop.permute.xlu1 %5583  ;;  %v4792_v28 = vpack.c.bf16 %v2427_v33, %v2425_v34  ;;  %v4732_v33 = vpack.c.bf16 %v2231_v0, %v2229_v21 }
 0x9d8   :  { %v5586_v2 = vunpack.i.h.bf16 %v5584_v57  ;;  %v5585_v41 = vunpack.i.l.bf16 %v5584_v57 }
 0x9d9   :  { %4793 = vmatprep.subr.bf16.mxu1 %v4792_v28 }
 0x9da   :  { %v2424_v36 = vsel %vm280_vm4, %v5585_v41, %v5425_v38  ;;  %v2426_v39 = vsel %vm280_vm4, %v5586_v2, %v5580_v13  ;;  %v5421_v41 = vunpack.i.h.bf16 %v7251_v17 }
 0x9db   :  { %v4794_v9 = vpack.c.bf16 %v2426_v39, %v2424_v36  ;;  %v5469_v27 = vpop.permute.xlu0 %5468  ;;  %v7309_v30 = vpop.permute.xlu1 %5588 }
 0x9dc   :  { %v5471_v54 = vunpack.i.h.bf16 %v5469_v27  ;;  %v5470_v19 = vunpack.i.l.bf16 %v5469_v27  ;;  %v5591_v17 = vunpack.i.h.bf16 %v7309_v30 }
 0x9dd   :  { %4795 = vmatpush1.bf16.msra.mxu1 %v4794_v9  ;;  %v5590_v9 = vunpack.i.l.bf16 %v7309_v30  ;;  %v2389_v30 = vsel %vm7796_vm0, %v5420_v26, %v5421_v41 }
 0x9de   :  { %v2076_v44 = vsel %vm7878_vm11, %v5470_v19, %v5380_v10  ;;  %v2078_v31 = vsel %vm7874_vm6, %v5471_v54, %v5515_v55  ;;  %v5560_v10 = vunpack.i.l.bf16 %v7271_v12  ;;  %v5575_v55 = vunpack.i.l.bf16 %v7287_v42  ;;  %vm7881_vm11 = vmmov %vm7877_vm5 }
 0x9df   :  { %v4725_v1 = vpack.c.bf16 %v2078_v31, %v2076_v44  ;;  %v5474_v3 = vpop.permute.xlu0 %5473  ;;  %v5594_v37 = vpop.permute.xlu1 %5593  ;;  %vm7882_vm6 = vmmov %vm7880_vm14  ;;  %v5451_v42 = vunpack.i.h.bf16 %v7279_v4 }
 0x9e0   :  { %v5476_v51 = vunpack.i.h.bf16 %v5474_v3  ;;  %v5475_v25 = vunpack.i.l.bf16 %v5474_v3  ;;  %v5596_v8 = vunpack.i.h.bf16 %v5594_v37  ;;  %v5595_v61 = vunpack.i.l.bf16 %v5594_v37  ;;  %vm7884_vm14 = vmmov %vm7883_vm7 }
 0x9e1   :  { %4727 = vmatpush1.bf16.msk.msra.mxu0 %vm6891_vm9, %v4725_v1  ;;  %vm7887_vm7 = vmmov %vm7882_vm6 }
 0x9e2   :  { %v2156_v18 = vsel %vm7877_vm5, %v5475_v25, %v5390_v20  ;;  %v2158_v22 = vsel %vm7881_vm11, %v5476_v51, %v5530_v47  ;;  %v2503_v38 = vsel %vm7882_vm6, %v5595_v61, %v5596_v8  ;;  %4729 = vmatprep.subr.bf16.mxu0 %v4728_v6  ;;  %v2311_v47 = vsel %vm7884_vm14, %v5560_v10, %v5561_v50 }
 0x9e3   :  { %v4730_v16 = vpack.c.bf16 %v2158_v22, %v2156_v18  ;;  %v4796_v12 = vpack.c.bf16 %v2503_v38, %v2501_v56  ;;  %v5479_v13 = vpop.permute.xlu0 %5478  ;;  %v5599_v34 = vpop.permute.xlu1 %5598  ;;  %v2391_v20 = vsel %vm7796_vm0, %v5575_v55, %v5576_v48  ;;  %vm7885_vm5 = vcmask 908288  }
 0x9e4   :  { %v5481_v57 = vunpack.i.h.bf16 %v5479_v13  ;;  %v5480_v28 = vunpack.i.l.bf16 %v5479_v13  ;;  %v5601_v58 = vunpack.i.h.bf16 %v5599_v34  ;;  %v5600_v2 = vunpack.i.l.bf16 %v5599_v34  ;;  %vm7886_vm11 = vmmov %vm7885_vm5 }
 0x9e5   :  { %4731 = vmatpush1.bf16.msra.mxu0 %v4730_v16  ;;  %4798 = vmatprep.subr.msk.bf16.mxu1 %vm6916_vm10, %v4796_v12  ;;  %v4738_v21 = vpack.c.bf16 %v2311_v47, %v2309_v52  ;;  %v5441_v50 = vunpack.i.h.bf16 %v7269_v15 }
 0x9e6   :  { %v2228_v40 = vsel %vm7885_vm5, %v5480_v28, %v5400_v49  ;;  %v2230_v36 = vsel %vm7886_vm11, %v5481_v57, %v5545_v23  ;;  %v2500_v39 = vsel %vm7882_vm6, %v5600_v2, %v5435_v14  ;;  %v2502_v35 = vsel %vm7887_vm7, %v5601_v58, %v5595_v61  ;;  %4734 = vmatprep.subr.msk.bf16.mxu0 %vm6916_vm10, %v4732_v33  ;;  %vm7888_vm5 = vmmov %vm7884_vm14 }
 0x9e7   :  { %v4735_v27 = vpack.c.bf16 %v2230_v36, %v2228_v40  ;;  %v4799_v54 = vpack.c.bf16 %v2502_v35, %v2500_v39  ;;  %v5484_v19 = vpop.permute.xlu0 %5483  ;;  %v7352_v63 = vpop.permute.xlu1 %5603  ;;  %v5431_v23 = vunpack.i.h.bf16 %v7259_v45  ;;  %v5445_v14 = vunpack.i.l.bf16 %v7275_v60 }
 0x9e8   :  { %v5486_v49 = vunpack.i.h.bf16 %v5484_v19  ;;  %v5485_v11 = vunpack.i.l.bf16 %v5484_v19  ;;  %v4744_v45 = vpack.c.bf16 %v2391_v20, %v2389_v30  ;;  %vm7889_vm11 = vcmask 777216  }
 0x9e9   :  { %4737 = vmatpush1.bf16.msk.msra.mxu0 %vm6927_vm15, %v4735_v27  ;;  %4801 = vmatpush1.bf16.msk.msra.mxu1 %vm6927_vm15, %v4799_v54  ;;  %v2463_v0 = vsel %vm7889_vm11, %v5590_v9, %v5591_v17  ;;  %v5606_v3 = vunpack.i.h.bf16 %v7352_v63  ;;  %v5605_v37 = vunpack.i.l.bf16 %v7352_v63  ;;  %vm7890_vm6 = vmmov %vm7889_vm11  ;;  %vm7891_vm7 = vcmask 400384  }
 0x9ea   :  { %v2308_v44 = vsel %vm7884_vm14, %v5485_v11, %v5410_v7  ;;  %v2310_v31 = vsel %vm7888_vm5, %v5486_v49, %v5560_v10  ;;  %4740 = vmatprep.subr.msk.bf16.mxu0 %vm6880_vm3, %v4738_v21  ;;  %v2461_v7 = vsel %vm7890_vm6, %v5430_v29, %v5431_v23  ;;  %v5440_v10 = vunpack.i.l.bf16 %v7269_v15  ;;  %vm7892_vm14 = vmmov %vm7891_vm7 }
 0x9eb   :  { %v4741_v1 = vpack.c.bf16 %v2310_v31, %v2308_v44  ;;  %v5489_v6 = vpop.permute.xlu0 %5488  ;;  %v5609_v51 = vpop.permute.xlu1 %5608  ;;  %v2581_v48 = vsel %vm7891_vm7, %v5445_v14, %v5446_v62  ;;  %v4748_v38 = vpack.c.bf16 %v2463_v0, %v2461_v7  ;;  %v2543_v52 = vsel %vm326_vm12, %v5605_v37, %v5606_v3  ;;  %vm7893_vm5 = vmmov %vm7890_vm6 }
 0x9ec   :  { %v5491_v25 = vunpack.i.h.bf16 %v5489_v6  ;;  %v5490_v8 = vunpack.i.l.bf16 %v5489_v6  ;;  %v5611_v60 = vunpack.i.h.bf16 %v5609_v51  ;;  %v5610_v61 = vunpack.i.l.bf16 %v5609_v51  ;;  %vm7894_vm11 = vmmov %vm7893_vm5 }
 0x9ed   :  { %4743 = vmatpush1.bf16.msk.msra.mxu0 %vm6891_vm9, %v4741_v1  ;;  %v2541_v58 = vsel %vm326_vm12, %v5440_v10, %v5441_v50  ;;  %vm7895_vm6 = vmmov %vm7891_vm7  ;;  %v5456_v19 = vunpack.i.h.bf16 %v7285_v43  ;;  %v5455_v63 = vunpack.i.l.bf16 %v7285_v43  ;;  %v5460_v7 = vunpack.i.l.bf16 %v7293_v32 }
 0x9ee   :  { %v2388_v56 = vsel %vm7796_vm0, %v5490_v8, %v5420_v26  ;;  %v2390_v18 = vsel %vm7796_vm0, %v5491_v25, %v5575_v55  ;;  %v2583_v22 = vsel %vm7892_vm14, %v5610_v61, %v5611_v60  ;;  %4745 = vmatprep.subr.bf16.mxu0 %v4744_v45  ;;  %v5450_v55 = vunpack.i.l.bf16 %v7279_v4  ;;  %vm7896_vm7 = vmmov %vm7895_vm6 }
 0x9ef   :  { %v4746_v16 = vpack.c.bf16 %v2390_v18, %v2388_v56  ;;  %v4802_v12 = vpack.c.bf16 %v2583_v22, %v2581_v48  ;;  %v5494_v15 = vpop.permute.xlu0 %5493  ;;  %v5614_v13 = vpop.permute.xlu1 %5613  ;;  %v4754_v20 = vpack.c.bf16 %v2543_v52, %v2541_v58  ;;  %vm7897_vm14 = vcmask 392192  }
 0x9f0   :  { %v5496_v34 = vunpack.i.h.bf16 %v5494_v15  ;;  %v5495_v33 = vunpack.i.l.bf16 %v5494_v15  ;;  %v5616_v57 = vunpack.i.h.bf16 %v5614_v13  ;;  %v5615_v28 = vunpack.i.l.bf16 %v5614_v13 }
 0x9f1   :  { %4747 = vmatpush1.bf16.msra.mxu0 %v4746_v16  ;;  %4804 = vmatprep.subr.msk.bf16.mxu1 %vm6880_vm3, %v4802_v12  ;;  %v2657_v1 = vsel %vm7897_vm14, %v5455_v63, %v5456_v19  ;;  %v5466_v12 = vunpack.i.h.bf16 %v7297_v5  ;;  %v5465_v15 = vunpack.i.l.bf16 %v7297_v5  ;;  %v2748_v5 = vld [vmem:[#allocation18] sm:$0xff] }
 0x9f2   :  { %v2460_v2 = vsel %vm7893_vm5, %v5495_v33, %v5430_v29  ;;  %v2462_v41 = vsel %vm7894_vm11, %v5496_v34, %v5590_v9  ;;  %v2580_v26 = vsel %vm7895_vm6, %v5615_v28, %v5445_v14  ;;  %v2582_v47 = vsel %vm7896_vm7, %v5616_v57, %v5610_v61  ;;  %4750 = vmatprep.subr.msk.bf16.mxu0 %vm6916_vm10, %v4748_v38  ;;  %vm7898_vm5 = vmmov %vm7897_vm14 }
 0x9f3   :  { %v4751_v40 = vpack.c.bf16 %v2462_v41, %v2460_v2  ;;  %v4805_v36 = vpack.c.bf16 %v2582_v47, %v2580_v26  ;;  %v5499_v39 = vpop.permute.xlu0 %5498  ;;  %v5619_v4 = vpop.permute.xlu1 %5618  ;;  %v2621_v9 = vsel %vm366_vm13, %v5450_v55, %v5451_v42  ;;  %v5461_v61 = vunpack.i.h.bf16 %v7293_v32  ;;  %vm7899_vm11 = vmmov %vm7898_vm5  ;;  %v2751_v47 = vld [vmem:[#allocation18 + $0x18] sm:$0xff] }
 0x9f4   :  { %v5501_v35 = vunpack.i.h.bf16 %v5499_v39  ;;  %v5500_v17 = vunpack.i.l.bf16 %v5499_v39  ;;  %v5621_v27 = vunpack.i.h.bf16 %v5619_v4  ;;  %v5620_v54 = vunpack.i.l.bf16 %v5619_v4  ;;  %vm7900_vm6 = vmmov %vm7898_vm5  ;;  %v2750_v4 = vld [vmem:[#allocation18 + $0x10] sm:$0xff] }
 0x9f5   :  { %4753 = vmatpush1.bf16.msk.msra.mxu0 %vm6927_vm15, %v4751_v40  ;;  %4807 = vmatpush1.bf16.msk.msra.mxu1 %vm6891_vm9, %v4805_v36  ;;  %v2693_v16 = vsel %vm410_vm2, %v5460_v7, %v5461_v61  ;;  %vm7901_vm7 = vcmask 384000  }
 0x9f6   :  { %v2540_v21 = vsel %vm326_vm12, %v5500_v17, %v5440_v10  ;;  %v2542_v49 = vsel %vm326_vm12, %v5501_v35, %v5605_v37  ;;  %4756 = vmatprep.subr.msk.bf16.mxu0 %vm6880_vm3, %v4754_v20  ;;  %v2623_v11 = vsel %vm366_vm13, %v5620_v54, %v5621_v27  ;;  %vm7902_vm14 = vmmov %vm7901_vm7 }
 0x9f7   :  { %v4757_v23 = vpack.c.bf16 %v2542_v49, %v2540_v21  ;;  %v5504_v29 = vpop.permute.xlu0 %5503  ;;  %v5624_v62 = vpop.permute.xlu1 %5623  ;;  %v4760_v30 = vpack.c.bf16 %v2623_v11, %v2621_v9 }
 0x9f8   :  { %v5506_v14 = vunpack.i.h.bf16 %v5504_v29  ;;  %v5505_v44 = vunpack.i.l.bf16 %v5504_v29  ;;  %v5626_v31 = vunpack.i.h.bf16 %v5624_v62  ;;  %v5625_v45 = vunpack.i.l.bf16 %v5624_v62 }
 0x9f9   :  { %4759 = vmatpush1.bf16.msk.msra.mxu0 %vm6891_vm9, %v4757_v23 }
 0x9fa   :  { %v2620_v43 = vsel %vm366_vm13, %v5505_v44, %v5450_v55  ;;  %v2622_v0 = vsel %vm366_vm13, %v5506_v14, %v5620_v54  ;;  %4761 = vmatprep.subr.bf16.mxu0 %v4760_v30  ;;  %v2659_v3 = vsel %vm7898_vm5, %v5625_v45, %v5626_v31  ;;  %v2733_v55 = vsel %vm7901_vm7, %v5465_v15, %v5466_v12  ;;  %vm7903_vm5 = vmmov %vm7901_vm7 }
 0x9fb   :  { %v4762_v37 = vpack.c.bf16 %v2622_v0, %v2620_v43  ;;  %v5509_v6 = vpop.permute.xlu0 %5508  ;;  %v5629_v51 = vpop.permute.xlu1 %5628  ;;  %v4808_v25 = vpack.c.bf16 %v2659_v3, %v2657_v1  ;;  %vm7906_vm7 = vcmask 261120  }
 0x9fc   :  { %v5631_v8 = vunpack.i.h.bf16 %v5629_v51  ;;  %v5630_v60 = vunpack.i.l.bf16 %v5629_v51  ;;  %v5510_v50 = vunpack.i.l.bf16 %v5509_v6  ;;  %v5511_v22 = vunpack.i.h.bf16 %v5509_v6  ;;  %vm7910_vm0 = vmmov %vm7906_vm7 }
 0x9fd   :  { %4763 = vmatpush1.bf16.msra.mxu0 %v4762_v37  ;;  %4809 = vmatprep.subr.bf16.mxu1 %v4808_v25 }
 0x9fe   :  { %v2656_v10 = vsel %vm7899_vm11, %v5630_v60, %v5455_v63  ;;  %v2658_v48 = vsel %vm7900_vm6, %v5631_v8, %v5625_v45  ;;  %v2692_v32 = vsel %vm410_vm2, %v5510_v50, %v5460_v7  ;;  %vm7904_vm11 = vmmov %vm7903_vm5  ;;  %vm7905_vm6 = vcmask 1047808  }
 0x9ff   :  { %v4810_v56 = vpack.c.bf16 %v2658_v48, %v2656_v10  ;;  %v5634_v18 = vpop.permute.xlu1 %5633 }
 0xa00   :  { %v5636_v38 = vunpack.i.h.bf16 %v5634_v18  ;;  %v5635_v52 = vunpack.i.l.bf16 %v5634_v18 }
 0xa01   :  { %4811 = vmatpush1.bf16.msra.mxu1 %v4810_v56 }
 0xa02   :  { %v2694_v13 = vsel %vm410_vm2, %v5511_v22, %v5635_v52  ;;  %v2695_v34 = vsel %vm410_vm2, %v5635_v52, %v5636_v38 }
 0xa03   :  { %v4764_v33 = vpack.c.bf16 %v2695_v34, %v2693_v16  ;;  %v4767_v57 = vpack.c.bf16 %v2694_v13, %v2692_v32  ;;  %v5639_v28 = vpop.permute.xlu1 %5638 }
 0xa04   :  { %v5641_v58 = vunpack.i.h.bf16 %v5639_v28  ;;  %v5640_v42 = vunpack.i.l.bf16 %v5639_v28 }
 0xa05   :  { %4766 = vmatprep.subr.msk.bf16.mxu0 %vm6916_vm10, %v4764_v33 }
 0xa06   :  { %v2735_v2 = vsel %vm7902_vm14, %v5640_v42, %v5641_v58  ;;  %4769 = vmatpush1.bf16.msk.msra.mxu0 %vm6927_vm15, %v4767_v57  ;;  %vm7907_vm14 = vmmov %vm7906_vm7 }
 0xa07   :  { %v4812_v41 = vpack.c.bf16 %v2735_v2, %v2733_v55  ;;  %v5644_v26 = vpop.permute.xlu1 %5643 }
 0xa08   :  { %v5646_v20 = vunpack.i.h.bf16 %v5644_v26  ;;  %v5645_v40 = vunpack.i.l.bf16 %v5644_v26 }
 0xa09   :  { %2896 = vmatmul.mubr.f32.vlgmr.msra.gmra.mrb[8].mxu0 %v2748_v5  ;;  %4814 = vmatprep.subr.msk.bf16.mxu1 %vm6916_vm10, %v4812_v41 }
 0xa0a   :  { %v2732_v36 = vsel %vm7903_vm5, %v5645_v40, %v5465_v15  ;;  %v2734_v39 = vsel %vm7904_vm11, %v5646_v20, %v5640_v42  ;;  %4319 = vmatprep.mubr.msk.f32.mxu0 %vm2824_vm8, %v2751_v47  ;;  %vm7908_vm5 = vcmask 1048064   ;;  %vm7909_vm11 = vmmov %vm7905_vm6 }
 0xa0b   :  { %v4815_v35 = vpack.c.bf16 %v2734_v39, %v2732_v36 }
 0xa0d   :  { %2902 = vmatmul.mubr.f32.gmra.mrb[10].mxu0 %v2750_v4  ;;  %4817 = vmatpush1.bf16.msk.msra.mxu1 %vm6927_vm15, %v4815_v35 }
 0xa10   :  { %2973 = vmatmul.mubr.f32.vlgmr.msra.gmra.mrb[8].mxu1 %v2748_v5 }
 0xa11   :  { %4321 = vmatprep.mubr.msk.f32.mxu1 %vm2824_vm8, %v2751_v47 }
 0xa14   :  { %2979 = vmatmul.mubr.f32.gmra.mrb[10].mxu1 %v2750_v4 }
 0xadc   :  { %v2897_v17 = vpop.f32.mrb[8].mxu0 }
 0xadd   :  { %v4322_v27 = vmul.f32 -1.442695, %v2897_v17  ;;  %v2899_v54 = vpop.f32.mrb[9].mxu0 }
 0xade   :  { %v4323_v19 = vmul.f32 -1.442695, %v2899_v54 }
 0xadf   :  { %5955 = vpow2.f32 %v4322_v27 }
 0xae0   :  { %5957 = vpow2.f32 %v4323_v19  ;;  %v2903_v9 = vpop.f32.mrb[10].mxu0 }
 0xae1   :  { %v4326_v63 = vmul.f32 -1.442695, %v2903_v9  ;;  %v2905_v21 = vpop.f32.mrb[11].mxu0 }
 0xae2   :  { %v4327_v49 = vmul.f32 -1.442695, %v2905_v21 }
 0xae3   :  { %v2974_v11 = vpop.f32.mrb[8].mxu1  ;;  %5959 = vpow2.f32 %v4326_v63 }
 0xae4   :  { %v4324_v23 = vmul.f32 -1.442695, %v2974_v11  ;;  %v2976_v29 = vpop.f32.mrb[9].mxu1  ;;  %5961 = vpow2.f32 %v4327_v49 }
 0xae5   :  { %v4325_v62 = vmul.f32 -1.442695, %v2976_v29 }
 0xae6   :  { %5963 = vpow2.f32 %v4324_v23 }
 0xae7   :  { %5965 = vpow2.f32 %v4325_v62  ;;  %v2980_v30 = vpop.f32.mrb[10].mxu1 }
 0xae8   :  { %v4328_v14 = vmul.f32 -1.442695, %v2980_v30  ;;  %v2982_v44 = vpop.f32.mrb[11].mxu1 }
 0xae9   :  { %v5956_v31 = vpop.eup %5955  ;;  %v4329_v45 = vmul.f32 -1.442695, %v2982_v44 }
 0xaea   :  { %v5958_v43 = vpop.eup %5957  ;;  %v3009_v0 = vadd.f32 1.0, %v5956_v31  ;;  %5967 = vpow2.f32 %v4328_v14 }
 0xaeb   :  { %v3010_v1 = vadd.f32 1.0, %v5958_v43  ;;  %5969 = vpow2.f32 %v4329_v45 }
 0xaec   :  { %5971 = vrcp.f32 %v3009_v0 }
 0xaed   :  { %5973 = vrcp.f32 %v3010_v1  ;;  %v5960_v3 = vpop.eup %5959 }
 0xaee   :  { %v5962_v37 = vpop.eup %5961  ;;  %v3013_v25 = vadd.f32 1.0, %v5960_v3 }
 0xaef   :  { %v3014_v60 = vadd.f32 1.0, %v5962_v37 }
 0xaf0   :  { %v5964_v6 = vpop.eup %5963 }
 0xaf1   :  { %v5966_v51 = vpop.eup %5965  ;;  %v3011_v8 = vadd.f32 1.0, %v5964_v6 }
 0xaf2   :  { %v3012_v61 = vadd.f32 1.0, %v5966_v51 }
 0xaf3   :  { %5975 = vrcp.f32 %v3011_v8 }
 0xaf4   :  { %v5968_v7 = vpop.eup %5967  ;;  %5977 = vrcp.f32 %v3012_v61 }
 0xaf5   :  { %v5970_v50 = vpop.eup %5969  ;;  %5979 = vrcp.f32 %v3013_v25  ;;  %v3015_v10 = vadd.f32 1.0, %v5968_v7 }
 0xaf6   :  { %v5972_v48 = vpop.eup %5971  ;;  %5981 = vrcp.f32 %v3014_v60  ;;  %v3016_v56 = vadd.f32 1.0, %v5970_v50 }
 0xaf7   :  { %v5974_v18 = vpop.eup %5973  ;;  %v3033_v22 = vmul.f32 %v5972_v48, %v2897_v17  ;;  %5983 = vrcp.f32 %v3015_v10 }
 0xaf8   :  { %v3034_v38 = vmul.f32 %v5974_v18, %v2899_v54  ;;  %5985 = vrcp.f32 %v3016_v56 }
 0xaf9   :  { %3045 = vrot.lane.b32.xlu0 %v3033_v22, %s6317_s9 }
 0xafa   :  { %3047 = vrot.lane.b32.xlu1 %v3034_v38, %s6317_s9 }
 0xafd   :  { %v5976_v52 = vpop.eup %5975 }
 0xafe   :  { %v5978_v16 = vpop.eup %5977  ;;  %v3035_v12 = vmul.f32 %v5976_v52, %v2974_v11 }
 0xaff   :  { %v5980_v15 = vpop.eup %5979  ;;  %v3036_v32 = vmul.f32 %v5978_v16, %v2976_v29 }
 0xb00   :  { %v5982_v13 = vpop.eup %5981  ;;  %3071 = vrot.lane.b32.xlu0 %v3035_v12, %s6318_s3  ;;  %v3037_v34 = vmul.f32 %v5980_v15, %v2903_v9 }
 0xb01   :  { %3073 = vrot.lane.b32.xlu1 %v3036_v32, %s6318_s3  ;;  %v5984_v33 = vpop.eup %5983  ;;  %v3038_v57 = vmul.f32 %v5982_v13, %v2905_v21 }
 0xb02   :  { %v5986_v28 = vpop.eup %5985  ;;  %v3039_v58 = vmul.f32 %v5984_v33, %v2980_v30  ;;  %v3790_v30 = vld [vmem:[#allocation19 + $0x8] sm:$0xff] }
 0xb03   :  { %v3040_v42 = vmul.f32 %v5986_v28, %v2982_v44  ;;  %4330 = vmatprep.mubr.msk.f32.mxu0 %vm2824_vm8, %v3790_v30  ;;  %4332 = vmatprep.mubr.msk.f32.mxu1 %vm2824_vm8, %v3790_v30 }
 0xb04   :  { %3049 = vrot.lane.b32.xlu0 %v3037_v34, %s6317_s9 }
 0xb05   :  { %3051 = vrot.lane.b32.xlu1 %v3038_v57, %s6317_s9 }
 0xb08   :  { %3075 = vrot.lane.b32.xlu0 %v3039_v58, %s6318_s3 }
 0xb09   :  { %3077 = vrot.lane.b32.xlu1 %v3040_v42, %s6318_s3 }
 0xb6b   :  { %v3046_v55 = vpop.permute.xlu0 %3045 }
 0xb6c   :  { %3061 = vst.msk [vmem:[#allocation2] sm:$0xff] %vm7905_vm6, %v3046_v55  ;;  %v3048_v2 = vpop.permute.xlu1 %3047  ;;  %vm7911_vm6 = vmmov %vm7910_vm0 }
 0xb6d   :  { %v3053_v5 = vsel %vm7906_vm7, %v3046_v55, %v3048_v2  ;;  %3063 = vst.msk [vmem:[#allocation2 + $0x10] sm:$0xff] %vm7907_vm14, %v3048_v2  ;;  %vm7912_vm7 = vmmov %vm7908_vm5 }
 0xb72   :  { %v3072_v41 = vpop.permute.xlu0 %3071 }
 0xb73   :  { %3087 = vst.msk [vmem:[#allocation2 + $0x10] sm:$0xff] %vm7908_vm5, %v3072_v41  ;;  %v3074_v26 = vpop.permute.xlu1 %3073  ;;  %v3093_v29 = vld [vmem:[#allocation2] sm:$0xff] }
 0xb74   :  { %v3079_v47 = vsel %vm280_vm4, %v3072_v41, %v3074_v26  ;;  %3089 = vst.msk [vmem:[#allocation2 + $0x20] sm:$0xff] %vm280_vm4, %v3074_v26 }
 0xb76   :  { %v3050_v20 = vpop.permute.xlu0 %3049 }
 0xb77   :  { %3064 = vst.msk [vmem:[#allocation2 + $0x28] sm:$0xff] %vm7909_vm11, %v3050_v20  ;;  %v3052_v40 = vpop.permute.xlu1 %3051  ;;  %vm7918_vm11 = vcmask 515072  }
 0xb78   :  { %v3054_v36 = vsel %vm7910_vm0, %v3050_v20, %v3052_v40  ;;  %3066 = vst.msk [vmem:[#allocation2 + $0x38] sm:$0xff] %vm7911_vm6, %v3052_v40  ;;  %vm7913_vm0 = vcmask 924672  }
 0xb79   :  { %vm7914_vm14 = vmmov %vm7913_vm0 }
 0xb7a   :  { %v3076_v39 = vpop.permute.xlu0 %3075  ;;  %v3095_v4 = vld [vmem:[#allocation2 + $0x10] sm:$0xff]  ;;  %vm7919_vm6 = vmmov %vm7913_vm0 }
 0xb7b   :  { %3090 = vst.msk [vmem:[#allocation2 + $0x38] sm:$0xff] %vm7912_vm7, %v3076_v39  ;;  %v3078_v35 = vpop.permute.xlu1 %3077  ;;  %v5647_v17 = vpack.i.bf16 %v3095_v4, %v3053_v5  ;;  %v3135_v54 = vld [vmem:[#allocation2 + $0x20] sm:$0xff]  ;;  %vm7920_vm7 = vmmov %vm7913_vm0 }
 0xb7c   :  { %v3080_v27 = vsel %vm280_vm4, %v3076_v39, %v3078_v35  ;;  %3092 = vst.msk [vmem:[#allocation2 + $0x48] sm:$0xff] %vm280_vm4, %v3078_v35  ;;  %v5652_v19 = vpack.i.bf16 %v3135_v54, %v3079_v47 }
 0xb7d   :  { %5648 = vrot.lane.b32.xlu0 %v5647_v17, %s6320_s15 }
 0xb7e   :  { %v3096_v23 = vld [vmem:[#allocation2 + $0x28] sm:$0xff] }
 0xb7f   :  { %v5737_v62 = vpack.i.bf16 %v3096_v23, %v3093_v29 }
 0xb81   :  { %5653 = vrot.lane.b32.xlu0 %v5652_v19, %s6328_s20 }
 0xb82   :  { %v3098_v9 = vld [vmem:[#allocation2 + $0x38] sm:$0xff] }
 0xb83   :  { %v5777_v63 = vpack.i.bf16 %v3098_v9, %v3054_v36  ;;  %v3138_v21 = vld [vmem:[#allocation2 + $0x48] sm:$0xff]  ;;  %v5787_v11 = vpack.i.bf16 %v3098_v9, %v3095_v4 }
 0xb84   :  { %v5782_v49 = vpack.i.bf16 %v3138_v21, %v3080_v27 }
 0xb85   :  { %5658 = vrot.lane.b32.xlu0 %v5647_v17, %s6319_s18  ;;  %5778 = vrot.lane.b32.xlu1 %v5777_v63, %s6320_s15 }
 0xb89   :  { %5663 = vrot.lane.b32.xlu0 %v5652_v19, %s6325_s5  ;;  %5783 = vrot.lane.b32.xlu1 %v5782_v49, %s6328_s20 }
 0xb8d   :  { %5668 = vrot.lane.b32.xlu0 %v5647_v17, %s6322_s28  ;;  %5788 = vrot.lane.b32.xlu1 %v5787_v11, %s6328_s20 }
 0xb91   :  { %5673 = vrot.lane.b32.xlu0 %v5652_v19, %s6326_s2  ;;  %5793 = vrot.lane.b32.xlu1 %v5777_v63, %s6319_s18 }
 0xb95   :  { %5678 = vrot.lane.b32.xlu0 %v5647_v17, %s6321_s7  ;;  %5798 = vrot.lane.b32.xlu1 %v5782_v49, %s6325_s5 }
 0xb99   :  { %5683 = vrot.lane.b32.xlu0 %v5652_v19, %s6327_s17  ;;  %5803 = vrot.lane.b32.xlu1 %v5787_v11, %s6325_s5 }
 0xb9d   :  { %5688 = vrot.lane.b32.xlu0 %v5647_v17, %s6324_s19  ;;  %5808 = vrot.lane.b32.xlu1 %v5777_v63, %s6322_s28 }
 0xba1   :  { %5693 = vrot.lane.b32.xlu0 %v5652_v19, %s6318_s3  ;;  %5813 = vrot.lane.b32.xlu1 %v5782_v49, %s6326_s2 }
 0xba5   :  { %5698 = vrot.lane.b32.xlu0 %v5647_v17, %s6323_s16  ;;  %5818 = vrot.lane.b32.xlu1 %v5787_v11, %s6326_s2 }
 0xba9   :  { %5703 = vrot.lane.b32.xlu0 %v5652_v19, %s6329_s6  ;;  %5823 = vrot.lane.b32.xlu1 %v5777_v63, %s6321_s7 }
 0xbad   :  { %5708 = vrot.lane.b32.xlu0 %v5647_v17, %s6328_s20  ;;  %5828 = vrot.lane.b32.xlu1 %v5782_v49, %s6327_s17 }
 0xbb1   :  { %5713 = vrot.lane.b32.xlu0 %v5652_v19, %s6332_s26  ;;  %5833 = vrot.lane.b32.xlu1 %v5787_v11, %s6327_s17 }
 0xbb5   :  { %5718 = vrot.lane.b32.xlu0 %v5647_v17, %s6325_s5  ;;  %5838 = vrot.lane.b32.xlu1 %v5777_v63, %s6324_s19 }
 0xbb9   :  { %5723 = vrot.lane.b32.xlu0 %v5652_v19, %s6330_s23  ;;  %5843 = vrot.lane.b32.xlu1 %v5782_v49, %s6318_s3 }
 0xbbd   :  { %5728 = vrot.lane.b32.xlu0 %v5647_v17, %s6326_s2  ;;  %5848 = vrot.lane.b32.xlu1 %v5787_v11, %s6318_s3 }
 0xbc1   :  { %5733 = vrot.lane.b32.xlu0 %v5652_v19, %s6331_s24  ;;  %5853 = vrot.lane.b32.xlu1 %v5777_v63, %s6323_s16 }
 0xbc5   :  { %5738 = vrot.lane.b32.xlu0 %v5737_v62, %s6320_s15  ;;  %5858 = vrot.lane.b32.xlu1 %v5782_v49, %s6329_s6 }
 0xbc9   :  { %5743 = vrot.lane.b32.xlu0 %v5737_v62, %s6319_s18  ;;  %5863 = vrot.lane.b32.xlu1 %v5787_v11, %s6329_s6 }
 0xbcd   :  { %5748 = vrot.lane.b32.xlu0 %v5737_v62, %s6322_s28  ;;  %5868 = vrot.lane.b32.xlu1 %v5777_v63, %s6328_s20 }
 0xbd1   :  { %5753 = vrot.lane.b32.xlu0 %v5737_v62, %s6321_s7  ;;  %5873 = vrot.lane.b32.xlu1 %v5782_v49, %s6332_s26 }
 0xbd5   :  { %5758 = vrot.lane.b32.xlu0 %v5737_v62, %s6324_s19  ;;  %5878 = vrot.lane.b32.xlu1 %v5787_v11, %s6332_s26 }
 0xbd9   :  { %5763 = vrot.lane.b32.xlu0 %v5737_v62, %s6323_s16  ;;  %5883 = vrot.lane.b32.xlu1 %v5777_v63, %s6325_s5 }
 0xbdd   :  { %5768 = vrot.lane.b32.xlu0 %v5737_v62, %s6328_s20  ;;  %5888 = vrot.lane.b32.xlu1 %v5782_v49, %s6330_s23 }
 0xbe1   :  { %5773 = vrot.lane.b32.xlu0 %v5737_v62, %s6325_s5  ;;  %5893 = vrot.lane.b32.xlu1 %v5787_v11, %s6330_s23 }
 0xbe5   :  { %5908 = vrot.lane.b32.xlu0 %v5737_v62, %s6326_s2  ;;  %5898 = vrot.lane.b32.xlu1 %v5777_v63, %s6326_s2 }
 0xbe9   :  { %5903 = vrot.lane.b32.xlu1 %v5782_v49, %s6331_s24 }
 0xbed   :  { %5913 = vrot.lane.b32.xlu1 %v5787_v11, %s6331_s24 }
 0xbef   :  { %v7511_v14 = vpop.permute.xlu0 %5648 }
 0xbf0   :  { %v5651_v31 = vunpack.i.h.bf16 %v7511_v14  ;;  %v5650_v45 = vunpack.i.l.bf16 %v7511_v14 }
 0xbf2   :  { %v3118_v37 = vsel %vm7913_vm0, %v5650_v45, %v5651_v31  ;;  %vm7921_vm0 = vmmov %vm7918_vm11 }
 0xbf3   :  { %v5654_v44 = vpop.permute.xlu0 %5653 }
 0xbf4   :  { %v5656_v6 = vunpack.i.h.bf16 %v5654_v44  ;;  %v5655_v51 = vunpack.i.l.bf16 %v5654_v44 }
 0xbf6   :  { %v3158_v10 = vsel %vm326_vm12, %v5655_v51, %v5656_v6 }
 0xbf7   :  { %v7515_v43 = vpop.permute.xlu0 %5658  ;;  %v7517_v0 = vpop.permute.xlu1 %5778 }
 0xbf8   :  { %v5781_v1 = vunpack.i.h.bf16 %v7517_v0  ;;  %v5780_v3 = vunpack.i.l.bf16 %v7517_v0 }
 0xbfa   :  { %v3120_v25 = vsel %vm7914_vm14, %v5780_v3, %v5781_v1 }
 0xbfb   :  { %v4818_v8 = vpack.c.bf16 %v3120_v25, %v3118_v37  ;;  %v5664_v60 = vpop.permute.xlu0 %5663  ;;  %v5784_v61 = vpop.permute.xlu1 %5783 }
 0xbfc   :  { %v5786_v7 = vunpack.i.h.bf16 %v5784_v61  ;;  %v5785_v50 = vunpack.i.l.bf16 %v5784_v61  ;;  %v5666_v34 = vunpack.i.h.bf16 %v5664_v60  ;;  %v5665_v33 = vunpack.i.l.bf16 %v5664_v60 }
 0xbfd   :  { %4820 = vmatprep.subr.msk.bf16.mxu0 %vm6880_vm3, %v4818_v8 }
 0xbfe   :  { %v3160_v48 = vsel %vm326_vm12, %v5785_v50, %v5786_v7  ;;  %v3234_v55 = vsel %vm366_vm13, %v5665_v33, %v5666_v34 }
 0xbff   :  { %v4866_v56 = vpack.c.bf16 %v3160_v48, %v3158_v10  ;;  %v7531_v18 = vpop.permute.xlu0 %5668  ;;  %v5789_v22 = vpop.permute.xlu1 %5788 }
 0xc00   :  { %v5791_v38 = vunpack.i.h.bf16 %v5789_v22  ;;  %v5790_v52 = vunpack.i.l.bf16 %v5789_v22 }
 0xc01   :  { %4868 = vmatprep.subr.msk.bf16.mxu1 %vm6880_vm3, %v4866_v56 }
 0xc02   :  { %v3157_v16 = vsel %vm326_vm12, %v5790_v52, %v5655_v51  ;;  %v3159_v12 = vsel %vm326_vm12, %v5791_v38, %v5785_v50 }
 0xc03   :  { %v4869_v15 = vpack.c.bf16 %v3159_v12, %v3157_v16  ;;  %v5674_v32 = vpop.permute.xlu0 %5673  ;;  %v7537_v13 = vpop.permute.xlu1 %5793 }
 0xc04   :  { %v5676_v17 = vunpack.i.h.bf16 %v5674_v32  ;;  %v5675_v27 = vunpack.i.l.bf16 %v5674_v32 }
 0xc05   :  { %4871 = vmatpush1.bf16.msk.msra.mxu1 %vm6891_vm9, %v4869_v15 }
 0xc06   :  { %v3310_v21 = vsel %vm410_vm2, %v5675_v27, %v5676_v17  ;;  %v5796_v17 = vunpack.i.h.bf16 %v7537_v13 }
 0xc07   :  { %v7541_v57 = vpop.permute.xlu0 %5678  ;;  %v5799_v28 = vpop.permute.xlu1 %5798 }
 0xc08   :  { %v5801_v58 = vunpack.i.h.bf16 %v5799_v28  ;;  %v5800_v42 = vunpack.i.l.bf16 %v5799_v28 }
 0xc0a   :  { %v3236_v2 = vsel %vm366_vm13, %v5800_v42, %v5801_v58 }
 0xc0b   :  { %v5684_v5 = vpop.permute.xlu0 %5683  ;;  %v5804_v41 = vpop.permute.xlu1 %5803  ;;  %v4872_v26 = vpack.c.bf16 %v3236_v2, %v3234_v55 }
 0xc0c   :  { %v5806_v47 = vunpack.i.h.bf16 %v5804_v41  ;;  %v5805_v20 = vunpack.i.l.bf16 %v5804_v41  ;;  %v5686_v51 = vunpack.i.h.bf16 %v5684_v5  ;;  %v5685_v25 = vunpack.i.l.bf16 %v5684_v5 }
 0xc0d   :  { %4873 = vmatprep.subr.bf16.mxu1 %v4872_v26 }
 0xc0e   :  { %v3233_v40 = vsel %vm366_vm13, %v5805_v20, %v5665_v33  ;;  %v3235_v36 = vsel %vm366_vm13, %v5806_v47, %v5800_v42  ;;  %v3390_v50 = vsel %vm452_vm1, %v5685_v25, %v5686_v51 }
 0xc0f   :  { %v4874_v39 = vpack.c.bf16 %v3235_v36, %v3233_v40  ;;  %v7547_v4 = vpop.permute.xlu0 %5688  ;;  %v7549_v35 = vpop.permute.xlu1 %5808 }
 0xc11   :  { %4875 = vmatpush1.bf16.msra.mxu1 %v4874_v39  ;;  %v5661_v39 = vunpack.i.h.bf16 %v7515_v43 }
 0xc13   :  { %v5694_v54 = vpop.permute.xlu0 %5693  ;;  %v5814_v19 = vpop.permute.xlu1 %5813 }
 0xc14   :  { %v5816_v9 = vunpack.i.h.bf16 %v5814_v19  ;;  %v5815_v63 = vunpack.i.l.bf16 %v5814_v19  ;;  %v5696_v33 = vunpack.i.h.bf16 %v5694_v54  ;;  %v5695_v28 = vunpack.i.l.bf16 %v5694_v54 }
 0xc16   :  { %v3312_v49 = vsel %vm410_vm2, %v5815_v63, %v5816_v9  ;;  %v3466_v5 = vsel %vm280_vm4, %v5695_v28, %v5696_v33  ;;  %v5660_v9 = vunpack.i.l.bf16 %v7515_v43 }
 0xc17   :  { %v4876_v11 = vpack.c.bf16 %v3312_v49, %v3310_v21  ;;  %v7553_v23 = vpop.permute.xlu0 %5698  ;;  %v5819_v29 = vpop.permute.xlu1 %5818  ;;  %v5670_v21 = vunpack.i.l.bf16 %v7531_v18 }
 0xc18   :  { %v5821_v62 = vunpack.i.h.bf16 %v5819_v29  ;;  %v5820_v30 = vunpack.i.l.bf16 %v5819_v29 }
 0xc19   :  { %4878 = vmatprep.subr.msk.bf16.mxu1 %vm6916_vm10, %v4876_v11 }
 0xc1a   :  { %v3309_v44 = vsel %vm410_vm2, %v5820_v30, %v5675_v27  ;;  %v3311_v31 = vsel %vm410_vm2, %v5821_v62, %v5815_v63  ;;  %v5795_v27 = vunpack.i.l.bf16 %v7537_v13  ;;  %v5671_v63 = vunpack.i.h.bf16 %v7531_v18 }
 0xc1b   :  { %v4879_v1 = vpack.c.bf16 %v3311_v31, %v3309_v44  ;;  %v7559_v37 = vpop.permute.xlu0 %5703  ;;  %v7561_v6 = vpop.permute.xlu1 %5823  ;;  %v5700_v18 = vunpack.i.l.bf16 %v7553_v23 }
 0xc1c   :  { %v5706_v62 = vunpack.i.h.bf16 %v7559_v37  ;;  %v5705_v13 = vunpack.i.l.bf16 %v7559_v37  ;;  %v5810_v37 = vunpack.i.l.bf16 %v7549_v35 }
 0xc1d   :  { %4881 = vmatpush1.bf16.msk.msra.mxu1 %vm6927_vm15, %v4879_v1 }
 0xc1f   :  { %v7565_v8 = vpop.permute.xlu0 %5708  ;;  %v5829_v60 = vpop.permute.xlu1 %5828 }
 0xc20   :  { %v5831_v61 = vunpack.i.h.bf16 %v5829_v60  ;;  %v5830_v7 = vunpack.i.l.bf16 %v5829_v60 }
 0xc22   :  { %v3392_v10 = vsel %vm452_vm1, %v5830_v7, %v5831_v61 }
 0xc23   :  { %v4882_v48 = vpack.c.bf16 %v3392_v10, %v3390_v50  ;;  %v7569_v56 = vpop.permute.xlu0 %5713  ;;  %v5834_v22 = vpop.permute.xlu1 %5833  ;;  %v5811_v50 = vunpack.i.h.bf16 %v7549_v35 }
 0xc24   :  { %v5836_v38 = vunpack.i.h.bf16 %v5834_v22  ;;  %v5835_v52 = vunpack.i.l.bf16 %v5834_v22 }
 0xc25   :  { %4884 = vmatprep.subr.msk.bf16.mxu1 %vm6880_vm3, %v4882_v48  ;;  %v3542_v48 = vsel %vm7918_vm11, %v5705_v13, %v5706_v62  ;;  %vm7925_vm11 = vmmov %vm7921_vm0  ;;  %v5716_v62 = vunpack.i.h.bf16 %v7569_v56 }
 0xc26   :  { %v3389_v16 = vsel %vm452_vm1, %v5835_v52, %v5685_v25  ;;  %v3391_v12 = vsel %vm452_vm1, %v5836_v38, %v5830_v7  ;;  %vm7915_vm1 = vcmask 916480   ;;  %v5681_v7 = vunpack.i.h.bf16 %v7541_v57 }
 0xc27   :  { %v4885_v15 = vpack.c.bf16 %v3391_v12, %v3389_v16  ;;  %v7575_v32 = vpop.permute.xlu0 %5718  ;;  %v7577_v34 = vpop.permute.xlu1 %5838  ;;  %v3200_v30 = vsel %vm7915_vm1, %v5795_v27, %v5796_v17  ;;  %vm7917_vm5 = vmmov %vm7915_vm1  ;;  %v5826_v16 = vunpack.i.h.bf16 %v7561_v6  ;;  %v5825_v12 = vunpack.i.l.bf16 %v7561_v6 }
 0xc28   :  { %v3198_v1 = vsel %vm7917_vm5, %v5660_v9, %v5661_v39  ;;  %vm7924_vm5 = vmmov %vm7921_vm0 }
 0xc29   :  { %4887 = vmatpush1.bf16.msk.msra.mxu1 %vm6891_vm9, %v4885_v15  ;;  %v4824_v10 = vpack.c.bf16 %v3200_v30, %v3198_v1 }
 0xc2b   :  { %v7581_v58 = vpop.permute.xlu0 %5723  ;;  %v5844_v42 = vpop.permute.xlu1 %5843 }
 0xc2c   :  { %v5846_v55 = vunpack.i.h.bf16 %v5844_v42  ;;  %v5845_v2 = vunpack.i.l.bf16 %v5844_v42 }
 0xc2e   :  { %v3468_v41 = vsel %vm280_vm4, %v5845_v2, %v5846_v55 }
 0xc2f   :  { %v7585_v26 = vpop.permute.xlu0 %5728  ;;  %v5849_v47 = vpop.permute.xlu1 %5848  ;;  %v4888_v20 = vpack.c.bf16 %v3468_v41, %v3466_v5  ;;  %v5840_v5 = vunpack.i.l.bf16 %v7577_v34 }
 0xc30   :  { %v5851_v40 = vunpack.i.h.bf16 %v5849_v47  ;;  %v5850_v36 = vunpack.i.l.bf16 %v5849_v47 }
 0xc31   :  { %4889 = vmatprep.subr.bf16.mxu1 %v4888_v20  ;;  %v5691_v20 = vunpack.i.h.bf16 %v7547_v4 }
 0xc32   :  { %v3465_v54 = vsel %vm280_vm4, %v5850_v36, %v5695_v28  ;;  %v3467_v19 = vsel %vm280_vm4, %v5851_v40, %v5845_v2  ;;  %vm7916_vm4 = vcmask 908288   ;;  %v5690_v40 = vunpack.i.l.bf16 %v7547_v4 }
 0xc33   :  { %v4890_v49 = vpack.c.bf16 %v3467_v19, %v3465_v54  ;;  %v7595_v11 = vpop.permute.xlu0 %5733  ;;  %v7597_v29 = vpop.permute.xlu1 %5853  ;;  %v3270_v43 = vsel %vm7916_vm4, %v5670_v21, %v5671_v63  ;;  %vm7922_vm14 = vmmov %vm7916_vm4 }
 0xc34   :  { %v3272_v0 = vsel %vm7922_vm14, %v5810_v37, %v5811_v50  ;;  %vm7923_vm4 = vmmov %vm7915_vm1  ;;  %v5856_v30 = vunpack.i.h.bf16 %v7597_v29 }
 0xc35   :  { %4891 = vmatpush1.bf16.msra.mxu1 %v4890_v49  ;;  %v4828_v19 = vpack.c.bf16 %v3272_v0, %v3270_v43  ;;  %v5855_v43 = vunpack.i.l.bf16 %v7597_v29  ;;  %v5701_v29 = vunpack.i.h.bf16 %v7553_v23  ;;  %v5710_v0 = vunpack.i.l.bf16 %v7565_v8 }
 0xc37   :  { %v5739_v44 = vpop.permute.xlu0 %5738  ;;  %v5859_v31 = vpop.permute.xlu1 %5858 }
 0xc38   :  { %v5741_v51 = vunpack.i.h.bf16 %v5739_v44  ;;  %v5740_v25 = vunpack.i.l.bf16 %v5739_v44  ;;  %v5861_v60 = vunpack.i.h.bf16 %v5859_v31  ;;  %v5860_v61 = vunpack.i.l.bf16 %v5859_v31 }
 0xc3a   :  { %v3117_v22 = vsel %vm7919_vm6, %v5740_v25, %v5650_v45  ;;  %v3119_v38 = vsel %vm7920_vm7, %v5741_v51, %v5780_v3  ;;  %v3544_v52 = vsel %vm7921_vm0, %v5860_v61, %v5861_v60  ;;  %v5680_v45 = vunpack.i.l.bf16 %v7541_v57 }
 0xc3b   :  { %v4821_v15 = vpack.c.bf16 %v3119_v38, %v3117_v22  ;;  %v4892_v33 = vpack.c.bf16 %v3544_v52, %v3542_v48  ;;  %v5744_v35 = vpop.permute.xlu0 %5743  ;;  %v5864_v28 = vpop.permute.xlu1 %5863  ;;  %v5841_v3 = vunpack.i.h.bf16 %v7577_v34  ;;  %vm7926_vm6 = vcmask 793600  }
 0xc3c   :  { %v5746_v42 = vunpack.i.h.bf16 %v5744_v35  ;;  %v5745_v55 = vunpack.i.l.bf16 %v5744_v35  ;;  %v5866_v2 = vunpack.i.h.bf16 %v5864_v28  ;;  %v5865_v14 = vunpack.i.l.bf16 %v5864_v28  ;;  %vm7927_vm7 = vmmov %vm7926_vm6 }
 0xc3d   :  { %4823 = vmatpush1.bf16.msk.msra.mxu0 %vm6891_vm9, %v4821_v15  ;;  %4894 = vmatprep.subr.msk.bf16.mxu1 %vm6916_vm10, %v4892_v33  ;;  %v3352_v63 = vsel %vm7926_vm6, %v5825_v12, %v5826_v16  ;;  %vm7928_vm0 = vcmask 785408  }
 0xc3e   :  { %v3197_v6 = vsel %vm7915_vm1, %v5745_v55, %v5660_v9  ;;  %v3199_v41 = vsel %vm7923_vm4, %v5746_v42, %v5795_v27  ;;  %v3541_v47 = vsel %vm7924_vm5, %v5865_v14, %v5705_v13  ;;  %v3543_v57 = vsel %vm7925_vm11, %v5866_v2, %v5860_v61  ;;  %4825 = vmatprep.subr.bf16.mxu0 %v4824_v10  ;;  %vm7929_vm1 = vmmov %vm7922_vm14 }
 0xc3f   :  { %v4826_v36 = vpack.c.bf16 %v3199_v41, %v3197_v6  ;;  %v4895_v39 = vpack.c.bf16 %v3543_v57, %v3541_v47  ;;  %v5749_v17 = vpop.permute.xlu0 %5748  ;;  %v7633_v54 = vpop.permute.xlu1 %5868  ;;  %v3350_v27 = vsel %vm7927_vm7, %v5680_v45, %v5681_v7  ;;  %v5715_v13 = vunpack.i.l.bf16 %v7569_v56  ;;  %vm7930_vm4 = vmmov %vm7928_vm0 }
 0xc40   :  { %v5751_v9 = vunpack.i.h.bf16 %v5749_v17  ;;  %v5750_v49 = vunpack.i.l.bf16 %v5749_v17  ;;  %v3432_v4 = vsel %vm7928_vm0, %v5840_v5, %v5841_v3  ;;  %v4834_v56 = vpack.c.bf16 %v3352_v63, %v3350_v27  ;;  %vm7933_vm7 = vmmov %vm7926_vm6 }
 0xc41   :  { %4827 = vmatpush1.bf16.msra.mxu0 %v4826_v36  ;;  %4897 = vmatpush1.bf16.msk.msra.mxu1 %vm6927_vm15, %v4895_v39  ;;  %v3430_v60 = vsel %vm7930_vm4, %v5690_v40, %v5691_v20  ;;  %vm7931_vm5 = vcmask 400384   ;;  %vm7932_vm11 = vcmask 777216   ;;  %v5871_v16 = vunpack.i.h.bf16 %v7633_v54 }
 0xc42   :  { %v3269_v44 = vsel %vm7922_vm14, %v5750_v49, %v5670_v21  ;;  %v3271_v31 = vsel %vm7929_vm1, %v5751_v9, %v5810_v37  ;;  %4830 = vmatprep.subr.msk.bf16.mxu0 %vm6916_vm10, %v4828_v19  ;;  %v3622_v21 = vsel %vm7931_vm5, %v5715_v13, %v5716_v62  ;;  %v4840_v37 = vpack.c.bf16 %v3432_v4, %v3430_v60  ;;  %vm7934_vm0 = vmmov %vm7931_vm5 }
 0xc43   :  { %v4831_v1 = vpack.c.bf16 %v3271_v31, %v3269_v44  ;;  %v5754_v51 = vpop.permute.xlu0 %5753  ;;  %v5874_v25 = vpop.permute.xlu1 %5873  ;;  %v3504_v48 = vsel %vm7932_vm11, %v5855_v43, %v5856_v30  ;;  %v5870_v23 = vunpack.i.l.bf16 %v7633_v54  ;;  %vm7935_vm14 = vmmov %vm7932_vm11  ;;  %v5720_v9 = vunpack.i.l.bf16 %v7575_v32 }
 0xc44   :  { %v5756_v61 = vunpack.i.h.bf16 %v5754_v51  ;;  %v5755_v7 = vunpack.i.l.bf16 %v5754_v51  ;;  %v5876_v50 = vunpack.i.h.bf16 %v5874_v25  ;;  %v5875_v10 = vunpack.i.l.bf16 %v5874_v25  ;;  %vm7936_vm1 = vmmov %vm7930_vm4 }
 0xc45   :  { %4833 = vmatpush1.bf16.msk.msra.mxu0 %vm6927_vm15, %v4831_v1  ;;  %vm7937_vm4 = vmmov %vm7936_vm1  ;;  %v5726_v49 = vunpack.i.h.bf16 %v7581_v58  ;;  %v5725_v27 = vunpack.i.l.bf16 %v7581_v58 }
 0xc46   :  { %v3349_v22 = vsel %vm7926_vm6, %v5755_v7, %v5680_v45  ;;  %v3351_v38 = vsel %vm7933_vm7, %v5756_v61, %v5825_v12  ;;  %v3624_v52 = vsel %vm7934_vm0, %v5875_v10, %v5876_v50  ;;  %4836 = vmatprep.subr.msk.bf16.mxu0 %vm6880_vm3, %v4834_v56  ;;  %v3502_v45 = vsel %vm7935_vm14, %v5700_v18, %v5701_v29  ;;  %vm7938_vm5 = vmmov %vm7934_vm0 }
 0xc47   :  { %v4837_v15 = vpack.c.bf16 %v3351_v38, %v3349_v22  ;;  %v4898_v33 = vpack.c.bf16 %v3624_v52, %v3622_v21  ;;  %v5759_v35 = vpop.permute.xlu0 %5758  ;;  %v5879_v28 = vpop.permute.xlu1 %5878  ;;  %v5711_v12 = vunpack.i.h.bf16 %v7565_v8  ;;  %vm7939_vm11 = vmmov %vm7934_vm0  ;;  %v4844_v57 = vpack.c.bf16 %v3504_v48, %v3502_v45 }
 0xc48   :  { %v5761_v42 = vunpack.i.h.bf16 %v5759_v35  ;;  %v5760_v55 = vunpack.i.l.bf16 %v5759_v35  ;;  %v5881_v2 = vunpack.i.h.bf16 %v5879_v28  ;;  %v5880_v14 = vunpack.i.l.bf16 %v5879_v28  ;;  %vm7940_vm6 = vmmov %vm7935_vm14 }
 0xc49   :  { %4839 = vmatpush1.bf16.msk.msra.mxu0 %vm6891_vm9, %v4837_v15  ;;  %4900 = vmatprep.subr.msk.bf16.mxu1 %vm6880_vm3, %v4898_v33  ;;  %v3584_v8 = vsel %vm326_vm12, %v5870_v23, %v5871_v16  ;;  %v3582_v34 = vsel %vm326_vm12, %v5710_v0, %v5711_v12  ;;  %vm7941_vm7 = vmmov %vm7940_vm6  ;;  %vm7942_vm0 = vcmask 392192   ;;  %v5731_v52 = vunpack.i.h.bf16 %v7585_v26  ;;  %v4050_v12 = vld [vmem:[#allocation7 + $0x88] sm:$0xff] }
 0xc4a   :  { %v3429_v3 = vsel %vm7936_vm1, %v5760_v55, %v5690_v40  ;;  %v3431_v6 = vsel %vm7937_vm4, %v5761_v42, %v5840_v5  ;;  %v3621_v41 = vsel %vm7938_vm5, %v5880_v14, %v5715_v13  ;;  %v3623_v47 = vsel %vm7939_vm11, %v5881_v2, %v5875_v10  ;;  %4841 = vmatprep.subr.bf16.mxu0 %v4840_v37  ;;  %vm7943_vm14 = vmmov %vm7942_vm0 }
 0xc4b   :  { %v4842_v20 = vpack.c.bf16 %v3431_v6, %v3429_v3  ;;  %v4901_v36 = vpack.c.bf16 %v3623_v47, %v3621_v41  ;;  %v5764_v39 = vpop.permute.xlu0 %5763  ;;  %v5884_v17 = vpop.permute.xlu1 %5883  ;;  %v5721_v5 = vunpack.i.h.bf16 %v7575_v32  ;;  %v4850_v4 = vpack.c.bf16 %v3584_v8, %v3582_v34  ;;  %v4052_v34 = vld [vmem:[#allocation7 + $0x98] sm:$0xff] }
 0xc4c   :  { %v5766_v54 = vunpack.i.h.bf16 %v5764_v39  ;;  %v5765_v19 = vunpack.i.l.bf16 %v5764_v39  ;;  %v5886_v63 = vunpack.i.h.bf16 %v5884_v17  ;;  %v5885_v40 = vunpack.i.l.bf16 %v5884_v17  ;;  %v4033_v17 = vld [vmem:[#allocation7] sm:$0xff] }
 0xc4d   :  { %4843 = vmatpush1.bf16.msra.mxu0 %v4842_v20  ;;  %4903 = vmatpush1.bf16.msk.msra.mxu1 %vm6891_vm9, %v4901_v36  ;;  %v3662_v58 = vsel %vm366_vm13, %v5720_v9, %v5721_v5  ;;  %v3698_v61 = vsel %vm7942_vm0, %v5725_v27, %v5726_v49  ;;  %v5730_v16 = vunpack.i.l.bf16 %v7585_v26  ;;  %v5736_v3 = vunpack.i.h.bf16 %v7595_v11 }
 0xc4e   :  { %v3501_v62 = vsel %vm7940_vm6, %v5765_v19, %v5700_v18  ;;  %v3503_v13 = vsel %vm7941_vm7, %v5766_v54, %v5855_v43  ;;  %4846 = vmatprep.subr.msk.bf16.mxu0 %vm6916_vm10, %v4844_v57  ;;  %v3664_v32 = vsel %vm366_vm13, %v5885_v40, %v5886_v63  ;;  %v5735_v6 = vunpack.i.l.bf16 %v7595_v11  ;;  %v4034_v54 = vld [vmem:[#allocation7 + $0x8] sm:$0xff] }
 0xc4f   :  { %v4847_v30 = vpack.c.bf16 %v3503_v13, %v3501_v62  ;;  %v5769_v44 = vpop.permute.xlu0 %5768  ;;  %v5889_v31 = vpop.permute.xlu1 %5888  ;;  %v4856_v21 = vpack.c.bf16 %v3664_v32, %v3662_v58  ;;  %v4914_v39 = vpack.c.bf16 %v4050_v12, %v4049_v59  ;;  %v4916_v49 = vpack.c.bf16 %v4034_v54, %v4033_v17  ;;  %v4036_v62 = vld [vmem:[#allocation7 + $0x18] sm:$0xff]  ;;  %v4082_v32 = vld [vmem:[#allocation7 + $0x188] sm:$0xff]  ;;  %v3791_v58 = vld [vmem:[#allocation19 + $0x10] sm:$0xff] }
 0xc50   :  { %v5771_v56 = vunpack.i.h.bf16 %v5769_v44  ;;  %v5770_v1 = vunpack.i.l.bf16 %v5769_v44  ;;  %v5891_v51 = vunpack.i.h.bf16 %v5889_v31  ;;  %v5890_v25 = vunpack.i.l.bf16 %v5889_v31  ;;  %v4081_v31 = vld [vmem:[#allocation7 + $0x180] sm:$0xff]  ;;  %v4070_v12 = vld [vmem:[#allocation7 + $0x128] sm:$0xff]  ;;  %v4071_v17 = vld [vmem:[#allocation7 + $0x130] sm:$0xff] }
 0xc51   :  { %4849 = vmatpush1.bf16.msk.msra.mxu0 %vm6927_vm15, %v4847_v30  ;;  %v3792_v30 = vld [vmem:[#allocation19 + $0x18] sm:$0xff]  ;;  %v4069_v59 = vld [vmem:[#allocation7 + $0x120] sm:$0xff] }
 0xc52   :  { %v3581_v43 = vsel %vm326_vm12, %v5770_v1, %v5710_v0  ;;  %v3583_v60 = vsel %vm326_vm12, %v5771_v56, %v5870_v23  ;;  %4852 = vmatprep.subr.msk.bf16.mxu0 %vm6880_vm3, %v4850_v4  ;;  %v3700_v7 = vsel %vm7943_vm14, %v5890_v25, %v5891_v51  ;;  %vm7944_vm12 = vmmov %vm7942_vm0  ;;  %v3734_v0 = vsel %vm410_vm2, %v5730_v16, %v5731_v52  ;;  %v4053_v51 = vld [vmem:[#allocation7 + $0xa0] sm:$0xff]  ;;  %v4072_v54 = vld [vmem:[#allocation7 + $0x138] sm:$0xff] }
 0xc53   :  { %v4853_v50 = vpack.c.bf16 %v3583_v60, %v3581_v43  ;;  %v5774_v10 = vpop.permute.xlu0 %5773  ;;  %v5894_v29 = vpop.permute.xlu1 %5893  ;;  %v4904_v18 = vpack.c.bf16 %v3700_v7, %v3698_v61  ;;  %vm7945_vm3 = vmmov %vm7942_vm0  ;;  %v4946_v7 = vpack.c.bf16 %v4082_v32, %v4081_v31  ;;  %v4046_v31 = vld [vmem:[#allocation7 + $0x68] sm:$0xff] }
 0xc54   :  { %v5776_v37 = vunpack.i.h.bf16 %v5774_v10  ;;  %v5775_v48 = vunpack.i.l.bf16 %v5774_v10  ;;  %v5896_v22 = vunpack.i.h.bf16 %v5894_v29  ;;  %v5895_v38 = vunpack.i.l.bf16 %v5894_v29  ;;  %v4066_v10 = vld [vmem:[#allocation7 + $0x108] sm:$0xff]  ;;  %v4037_v29 = vld [vmem:[#allocation7 + $0x20] sm:$0xff] }
 0xc55   :  { %4855 = vmatpush1.bf16.msk.msra.mxu0 %vm6891_vm9, %v4853_v50  ;;  %4905 = vmatprep.subr.bf16.mxu1 %v4904_v18  ;;  %v4065_v50 = vld [vmem:[#allocation7 + $0x100] sm:$0xff] }
 0xc56   :  { %v3661_v53 = vsel %vm366_vm13, %v5775_v48, %v5720_v9  ;;  %v3663_v23 = vsel %vm366_vm13, %v5776_v37, %v5885_v40  ;;  %v3697_v15 = vsel %vm7944_vm12, %v5895_v38, %v5725_v27  ;;  %v3699_v33 = vsel %vm7945_vm3, %v5896_v22, %v5890_v25  ;;  %4857 = vmatprep.subr.bf16.mxu0 %v4856_v21  ;;  %v4051_v40 = vld [vmem:[#allocation7 + $0x90] sm:$0xff]  ;;  %v3789_v9 = vld [vmem:[#allocation19] sm:$0xff]  ;;  %v4054_v25 = vld [vmem:[#allocation7 + $0xa8] sm:$0xff] }
 0xc57   :  { %v4858_v35 = vpack.c.bf16 %v3663_v23, %v3661_v53  ;;  %v4906_v28 = vpack.c.bf16 %v3699_v33, %v3697_v15  ;;  %v5909_v42 = vpop.permute.xlu0 %5908  ;;  %v5899_v55 = vpop.permute.xlu1 %5898  ;;  %vm7946_vm13 = vcmask 384000   ;;  %v4035_v27 = vld [vmem:[#allocation7 + $0x10] sm:$0xff]  ;;  %v4918_v44 = vpack.c.bf16 %v4052_v34, %v4051_v40  ;;  %v4038_v37 = vld [vmem:[#allocation7 + $0x28] sm:$0xff]  ;;  %v4056_v38 = vld [vmem:[#allocation7 + $0xb8] sm:$0xff] }
 0xc58   :  { %v5911_v2 = vunpack.i.h.bf16 %v5909_v42  ;;  %v5910_v14 = vunpack.i.l.bf16 %v5909_v42  ;;  %v5901_v26 = vunpack.i.h.bf16 %v5899_v55  ;;  %v5900_v45 = vunpack.i.l.bf16 %v5899_v55  ;;  %vm7947_vm9 = vmmov %vm7946_vm13  ;;  %v4083_v48 = vld [vmem:[#allocation7 + $0x190] sm:$0xff]  ;;  %v4068_v15 = vld [vmem:[#allocation7 + $0x118] sm:$0xff] }
 0xc59   :  { %4859 = vmatpush1.bf16.msra.mxu0 %v4858_v35  ;;  %4907 = vmatpush1.bf16.msra.mxu1 %v4906_v28  ;;  %v3774_v11 = vsel %vm7946_vm13, %v5735_v6, %v5736_v3  ;;  %v4920_v43 = vpack.c.bf16 %v4036_v62, %v4035_v27  ;;  %v4922_v21 = vpack.c.bf16 %v4054_v25, %v4053_v51  ;;  %v4055_v22 = vld [vmem:[#allocation7 + $0xb0] sm:$0xff]  ;;  %v4040_v28 = vld [vmem:[#allocation7 + $0x38] sm:$0xff]  ;;  %v4085_v42 = vld [vmem:[#allocation7 + $0x1a0] sm:$0xff] }
 0xc5a   :  { %v3733_v41 = vsel %vm410_vm2, %v5910_v14, %v5730_v16  ;;  %v3735_v47 = vsel %vm410_vm2, %v5911_v2, %v5900_v45  ;;  %v3736_v57 = vsel %vm410_vm2, %v5900_v45, %v5901_v26  ;;  %vm7948_vm2 = vmmov %vm7947_vm9  ;;  %v4948_v52 = vpack.c.bf16 %v4066_v10, %v4065_v50  ;;  %v4067_v23 = vld [vmem:[#allocation7 + $0x110] sm:$0xff]  ;;  %v4086_v55 = vld [vmem:[#allocation7 + $0x1a8] sm:$0xff] }
 0xc5b   :  { %v4860_v8 = vpack.c.bf16 %v3736_v57, %v3734_v0  ;;  %v4863_v20 = vpack.c.bf16 %v3735_v47, %v3733_v41  ;;  %v5904_v36 = vpop.permute.xlu1 %5903  ;;  %vm7949_vm1 = vmmov %vm7948_vm2  ;;  %v4924_v16 = vpack.c.bf16 %v4038_v37, %v4037_v29  ;;  %v4950_v53 = vpack.c.bf16 %v4084_v24, %v4083_v48  ;;  %v4039_v33 = vld [vmem:[#allocation7 + $0x30] sm:$0xff]  ;;  %v4057_v2 = vld [vmem:[#allocation7 + $0xc0] sm:$0xff] }
 0xc5c   :  { %v5906_v19 = vunpack.i.h.bf16 %v5904_v36  ;;  %v5905_v63 = vunpack.i.l.bf16 %v5904_v36  ;;  %v4926_v35 = vpack.c.bf16 %v4056_v38, %v4055_v22  ;;  %v4058_v14 = vld [vmem:[#allocation7 + $0xc8] sm:$0xff]  ;;  %v4952_v46 = vpack.c.bf16 %v4068_v15, %v4067_v23  ;;  %v4041_v0 = vld [vmem:[#allocation7 + $0x40] sm:$0xff]  ;;  %v4087_v41 = vld [vmem:[#allocation7 + $0x1b0] sm:$0xff] }
 0xc5d   :  { %4862 = vmatprep.subr.msk.bf16.mxu0 %vm6916_vm10, %v4860_v8  ;;  %v4928_v26 = vpack.c.bf16 %v4040_v28, %v4039_v33  ;;  %v4954_v45 = vpack.c.bf16 %v4086_v55, %v4085_v42  ;;  %v4930_v3 = vpack.c.bf16 %v4058_v14, %v4057_v2  ;;  %v4088_v47 = vld [vmem:[#allocation7 + $0x1b8] sm:$0xff]  ;;  %v4059_v57 = vld [vmem:[#allocation7 + $0xd0] sm:$0xff]  ;;  %v4089_v34 = vld [vmem:[#allocation7 + $0x1c0] sm:$0xff] }
 0xc5e   :  { %v3776_v5 = vsel %vm7947_vm9, %v5905_v63, %v5906_v19  ;;  %4865 = vmatpush1.bf16.msk.msra.mxu0 %vm6927_vm15, %v4863_v20  ;;  %v4060_v8 = vld [vmem:[#allocation7 + $0xd8] sm:$0xff]  ;;  %v4956_v20 = vpack.c.bf16 %v4070_v12, %v4069_v59  ;;  %v4043_v19 = vld [vmem:[#allocation7 + $0x50] sm:$0xff]  ;;  %v4094_v37 = vld [vmem:[#allocation7 + $0x1e8] sm:$0xff] }
 0xc5f   :  { %v4908_v13 = vpack.c.bf16 %v3776_v5, %v3774_v11  ;;  %v5914_v4 = vpop.permute.xlu1 %5913  ;;  %4915 = vmatprep.subr.bf16.mxu0 %v4914_v39  ;;  %v4958_v39 = vpack.c.bf16 %v4088_v47, %v4087_v41  ;;  %v4044_v40 = vld [vmem:[#allocation7 + $0x58] sm:$0xff]  ;;  %v4090_v11 = vld [vmem:[#allocation7 + $0x1c8] sm:$0xff]  ;;  %v4061_v5 = vld [vmem:[#allocation7 + $0xe0] sm:$0xff] }
 0xc60   :  { %v5916_v56 = vunpack.i.h.bf16 %v5914_v4  ;;  %v5915_v1 = vunpack.i.l.bf16 %v5914_v4  ;;  %v4936_v27 = vpack.c.bf16 %v4044_v40, %v4043_v19  ;;  %v4962_v62 = vpack.c.bf16 %v4090_v11, %v4089_v34  ;;  %v4074_v4 = vld [vmem:[#allocation7 + $0x148] sm:$0xff]  ;;  %v4092_v51 = vld [vmem:[#allocation7 + $0x1d8] sm:$0xff]  ;;  %v4047_v50 = vld [vmem:[#allocation7 + $0x70] sm:$0xff] }
 0xc61   :  { %3936 = vmatmul.mubr.f32.vlgmr.msra.gmra.mrb[12].mxu0 %v3789_v9  ;;  %4910 = vmatprep.subr.msk.bf16.mxu1 %vm6916_vm10, %v4908_v13  ;;  %v4073_v13 = vld [vmem:[#allocation7 + $0x140] sm:$0xff]  ;;  %v4048_v10 = vld [vmem:[#allocation7 + $0x78] sm:$0xff]  ;;  %v4078_v22 = vld [vmem:[#allocation7 + $0x168] sm:$0xff] }
 0xc62   :  { %v3773_v60 = vsel %vm7948_vm2, %v5915_v1, %v5735_v6  ;;  %v3775_v61 = vsel %vm7949_vm1, %v5916_v56, %v5905_v63  ;;  %4331 = vmatprep.mubr.msk.f32.mxu0 %vm2824_vm8, %v3792_v30  ;;  %4917 = vmatpush3.bf16.msra.mxu0 %v4916_v49  ;;  %v4042_v6 = vld [vmem:[#allocation7 + $0x48] sm:$0xff]  ;;  %v4934_v63 = vpack.c.bf16 %v4060_v8, %v4059_v57  ;;  %v4091_v1 = vld [vmem:[#allocation7 + $0x1d0] sm:$0xff]  ;;  %v4077_v24 = vld [vmem:[#allocation7 + $0x160] sm:$0xff] }
 0xc63   :  { %v4911_v18 = vpack.c.bf16 %v3775_v61, %v3773_v60  ;;  %4919 = vmatprep.subr.bf16.mxu0 %v4918_v44  ;;  %v4932_v36 = vpack.c.bf16 %v4042_v6, %v4041_v0  ;;  %v4960_v49 = vpack.c.bf16 %v4072_v54, %v4071_v17  ;;  %v4045_v44 = vld [vmem:[#allocation7 + $0x60] sm:$0xff]  ;;  %v4964_v32 = vpack.c.bf16 %v4074_v4, %v4073_v13  ;;  %v4075_v60 = vld [vmem:[#allocation7 + $0x150] sm:$0xff]  ;;  %v4080_v15 = vld [vmem:[#allocation7 + $0x178] sm:$0xff] }
 0xc64   :  { %v4940_v56 = vpack.c.bf16 %v4046_v31, %v4045_v44  ;;  %v4966_v25 = vpack.c.bf16 %v4092_v51, %v4091_v1  ;;  %v4972_v38 = vpack.c.bf16 %v4078_v22, %v4077_v24  ;;  %v4079_v23 = vld [vmem:[#allocation7 + $0x170] sm:$0xff]  ;;  %v5991_v28 = vld [vmem:[#allocation21] sm:$0xff]  ;;  %v5992_v2 = vld [vmem:[#allocation21 + $0x8] sm:$0xff] }
 0xc65   :  { %3942 = vmatmul.mubr.f32.gmra.mrb[14].mxu0 %v3791_v58  ;;  %4913 = vmatpush1.bf16.msk.msra.mxu1 %vm6927_vm15, %v4911_v18  ;;  %v4944_v18 = vpack.c.bf16 %v4048_v10, %v4047_v50  ;;  %v4976_v33 = vpack.c.bf16 %v4080_v15, %v4079_v23  ;;  %v5994_v12 = vld [vmem:[#allocation21 + $0x28] sm:$0xff]  ;;  %v5995_v6 = vld [vmem:[#allocation21 + $0x10] sm:$0xff]  ;;  %v5996_v57 = vld [vmem:[#allocation21 + $0x18] sm:$0xff] }
 0xc66   :  { %4921 = vmatpush3.bf16.msra.mxu0 %v4920_v43  ;;  %4947 = vmatprep.subr.bf16.mxu1 %v4946_v7  ;;  %v4064_v43 = vld [vmem:[#allocation7 + $0xf8] sm:$0xff] }
 0xc67   :  { %4923 = vmatprep.subr.bf16.mxu0 %v4922_v21  ;;  %v4076_v7 = vld [vmem:[#allocation7 + $0x158] sm:$0xff]  ;;  %v4093_v21 = vld [vmem:[#allocation7 + $0x1e0] sm:$0xff] }
 0xc68   :  { %4013 = vmatmul.mubr.f32.vlgmr.msra.gmra.mrb[12].mxu1 %v3789_v9  ;;  %v4062_v9 = vld [vmem:[#allocation7 + $0xe8] sm:$0xff]  ;;  %v4968_v29 = vpack.c.bf16 %v4076_v7, %v4075_v60  ;;  %v4970_v48 = vpack.c.bf16 %v4094_v37, %v4093_v21  ;;  %v5998_v54 = vld [vmem:[#allocation21 + $0x38] sm:$0xff] }
 0xc69   :  { %4333 = vmatprep.mubr.msk.f32.mxu1 %vm2824_vm8, %v3792_v30  ;;  %4949 = vmatpush3.bf16.msra.mxu1 %v4948_v52  ;;  %v4938_v30 = vpack.c.bf16 %v4062_v9, %v4061_v5  ;;  %v4095_v52 = vld [vmem:[#allocation7 + $0x1f0] sm:$0xff] }
 0xc6a   :  { %4925 = vmatpush3.bf16.msra.mxu0 %v4924_v16  ;;  %4951 = vmatprep.subr.bf16.mxu1 %v4950_v53  ;;  %v4096_v16 = vld [vmem:[#allocation7 + $0x1f8] sm:$0xff] }
 0xc6b   :  { %4927 = vmatprep.subr.bf16.mxu0 %v4926_v35  ;;  %v4974_v53 = vpack.c.bf16 %v4096_v16, %v4095_v52 }
 0xc6c   :  { %4019 = vmatmul.mubr.f32.gmra.mrb[14].mxu1 %v3791_v58  ;;  %v4063_v58 = vld [vmem:[#allocation7 + $0xf0] sm:$0xff] }
 0xc6d   :  { %4953 = vmatpush3.bf16.msra.mxu1 %v4952_v46  ;;  %v4942_v61 = vpack.c.bf16 %v4064_v43, %v4063_v58 }
 0xc6e   :  { %4929 = vmatpush3.bf16.msra.mxu0 %v4928_v26  ;;  %4955 = vmatprep.subr.bf16.mxu1 %v4954_v45  ;;  %v5993_v26 = vld [vmem:[#allocation21 + $0x20] sm:$0xff] }
 0xc6f   :  { %4931 = vmatprep.subr.bf16.mxu0 %v4930_v3 }
 0xc71   :  { %4957 = vmatpush3.bf16.msra.mxu1 %v4956_v20 }
 0xc72   :  { %4933 = vmatpush3.bf16.msra.mxu0 %v4932_v36  ;;  %4959 = vmatprep.subr.bf16.mxu1 %v4958_v39  ;;  %v5997_v36 = vld [vmem:[#allocation21 + $0x30] sm:$0xff] }
 0xc73   :  { %4935 = vmatprep.subr.bf16.mxu0 %v4934_v63 }
 0xc75   :  { %4961 = vmatpush3.bf16.msra.mxu1 %v4960_v49 }
 0xc76   :  { %4937 = vmatpush3.bf16.msra.mxu0 %v4936_v27  ;;  %4963 = vmatprep.subr.bf16.mxu1 %v4962_v62 }
 0xc77   :  { %4939 = vmatprep.subr.bf16.mxu0 %v4938_v30 }
 0xc79   :  { %4965 = vmatpush3.bf16.msra.mxu1 %v4964_v32 }
 0xc7a   :  { %4941 = vmatpush3.bf16.msra.mxu0 %v4940_v56  ;;  %4967 = vmatprep.subr.bf16.mxu1 %v4966_v25 }
 0xc7b   :  { %4943 = vmatprep.subr.bf16.mxu0 %v4942_v61 }
 0xc7d   :  { %4969 = vmatpush3.bf16.msra.mxu1 %v4968_v29 }
 0xc7e   :  { %4945 = vmatpush3.bf16.msra.mxu0 %v4944_v18  ;;  %4971 = vmatprep.subr.bf16.mxu1 %v4970_v48 }
 0xc81   :  { %4973 = vmatpush3.bf16.msra.mxu1 %v4972_v38 }
 0xc82   :  { %4975 = vmatprep.subr.bf16.mxu1 %v4974_v53 }
 0xc85   :  { %4977 = vmatpush3.bf16.msra.mxu1 %v4976_v33 }
 0xd34   :  { %v3937_v35 = vpop.f32.mrb[12].mxu0 }
 0xd35   :  { %v3938_v42 = vadd.f32 %v5991_v28, %v3937_v35  ;;  %v3939_v55 = vpop.f32.mrb[13].mxu0 }
 0xd36   :  { %v3940_v14 = vadd.f32 %v5992_v2, %v3939_v55 }
 0xd37   :  { %4025 = vst [vmem:[#allocation22] sm:$0xff] %v3938_v42 }
 0xd38   :  { %4026 = vst [vmem:[#allocation22 + $0x8] sm:$0xff] %v3940_v14  ;;  %v3943_v46 = vpop.f32.mrb[14].mxu0  ;;  %4161 = vmatprep.mubr.f32.mxu0 %v3940_v14 }
 0xd39   :  { %v3944_v45 = vadd.f32 %v5993_v26, %v3943_v46  ;;  %v3945_v59 = vpop.f32.mrb[15].mxu0  ;;  %4162 = vmatmul.mubr.f32.vlgmr.msra.gmra.mrb[16].mxu0 %v3938_v42 }
 0xd3a   :  { %v3946_v0 = vadd.f32 %v5994_v12, %v3945_v59 }
 0xd3b   :  { %4029 = vst [vmem:[#allocation22 + $0x20] sm:$0xff] %v3944_v45  ;;  %v4014_v3 = vpop.f32.mrb[12].mxu1 }
 0xd3c   :  { %4030 = vst [vmem:[#allocation22 + $0x28] sm:$0xff] %v3946_v0  ;;  %v4015_v41 = vadd.f32 %v5995_v6, %v4014_v3  ;;  %v4016_v47 = vpop.f32.mrb[13].mxu1  ;;  %4166 = vmatprep.mubr.f32.mxu0 %v3946_v0 }
 0xd3d   :  { %v4017_v8 = vadd.f32 %v5996_v57, %v4016_v47  ;;  %4167 = vmatmul.mubr.f32.gmra.mrb[18].mxu0 %v3944_v45 }
 0xd3e   :  { %4027 = vst [vmem:[#allocation22 + $0x10] sm:$0xff] %v4015_v41 }
 0xd3f   :  { %4028 = vst [vmem:[#allocation22 + $0x18] sm:$0xff] %v4017_v8  ;;  %v4020_v20 = vpop.f32.mrb[14].mxu1  ;;  %4236 = vmatprep.mubr.f32.mxu1 %v4017_v8 }
 0xd40   :  { %v4021_v39 = vadd.f32 %v5997_v36, %v4020_v20  ;;  %v4022_v17 = vpop.f32.mrb[15].mxu1  ;;  %4237 = vmatmul.mubr.f32.vlgmr.msra.gmra.mrb[16].mxu1 %v4015_v41 }
 0xd41   :  { %v4023_v19 = vadd.f32 %v5998_v54, %v4022_v17 }
 0xd42   :  { %4031 = vst [vmem:[#allocation22 + $0x30] sm:$0xff] %v4021_v39 }
 0xd43   :  { %4032 = vst [vmem:[#allocation22 + $0x38] sm:$0xff] %v4023_v19  ;;  %4241 = vmatprep.mubr.f32.mxu1 %v4023_v19 }
 0xd44   :  { %4242 = vmatmul.mubr.f32.gmra.mrb[18].mxu1 %v4021_v39 }
 0xd45   :  { %6230 = shalt.err (!%p6227_p0)
}
 0xd46   :  { %s6231_s30 = scalar_lea.hbm %s7781_s11, 1024 }
 0xd47   :  { %p6232_p1 = scmp.ne.s32.totalorder %s7781_s11, %s6231_s30  ;;  %p6235_p2 = scmp.lt.u32.totalorder %s6231_s30, %s7781_s11 }
 0xd49   :  { %p6237_p3 = pnand %p6235_p2, %p6232_p1 }
 0xd4b   :  { %6240 = shalt.err (!%p6237_p3)
}
 0xd4c   :  { %s6335_s3 = smov 512   ;;  %s6336_s7 = smov [#allocation21]  }
 0xd4d   :  { %4272 = dma.vmem_to_hbm [thread:$0]  %s4267_s0, 1024, %s7781_s11, [#allocation23], %s6335_s3, %s6335_s3, %s6317_s9  }
 0xd4e   :  { %s4254_s28 = sshll.u32 %s6336_s7, 4  ;;  %s4255_s28 = int_to_ptr.vmem [resolvable:$true] %s4254_s28 }
 0xd4f   :  { %s6241_s16 = scalar_lea.vmem %s4255_s28, 1024  ;;  %p6246_p5 = scmp.lt.s32.totalorder %s4255_s28, %s4255_s28 }
 0xd50   :  { %p6242_p4 = scmp.ne.s32.totalorder %s4255_s28, %s6241_s16  ;;  %p6247_p6 = scmp.lt.s32.totalorder %s6241_s16, %s6241_s16 }
 0xd52   :  { %p6248_p7 = por %p6247_p6, %p6246_p5 }
 0xd54   :  { %p6249_p8 = pnand %p6248_p7, %p6242_p4 }
 0xd56   :  { %6252 = shalt.err (!%p6249_p8)
}
 0xd57   :  { %s6253_s2 = scalar_lea.hbm %s7780_s10, 1024 }
 0xd58   :  { %p6254_p9 = scmp.ne.s32.totalorder %s7780_s10, %s6253_s2  ;;  %p6257_p10 = scmp.lt.u32.totalorder %s6253_s2, %s7780_s10 }
 0xd5a   :  { %p6259_p11 = pnand %p6257_p10, %p6254_p9 }
 0xd5c   :  { %6262 = shalt.err (!%p6259_p11)
}
 0xd5d   :  { %4260 = dma.vmem_to_hbm [thread:$0]  %s4255_s28, 1024, %s7780_s10, [#allocation6], %s6335_s3, %s6335_s3, %s6317_s9  }
 0xd5e   :  { %s6337_s26 = smov [#allocation24]  }
 0xd5f   :  { %s4278_s27 = sshll.u32 %s6337_s26, 4  ;;  %s4279_s27 = int_to_ptr.vmem [resolvable:$true] %s4278_s27 }
 0xd60   :  { %s6263_s10 = scalar_lea.vmem %s4279_s27, 256  ;;  %p6268_p13 = scmp.lt.s32.totalorder %s4279_s27, %s4279_s27 }
 0xd61   :  { %p6264_p12 = scmp.ne.s32.totalorder %s4279_s27, %s6263_s10  ;;  %p6269_p0 = scmp.lt.s32.totalorder %s6263_s10, %s6263_s10 }
 0xd63   :  { %p6270_p1 = por %p6269_p0, %p6268_p13 }
 0xd65   :  { %p6271_p2 = pnand %p6270_p1, %p6264_p12 }
 0xe0c   :  { %v4534_v63 = vpop.f32.mrb[16].mxu0 }
 0xe0d   :  { %v4535_v40 = vpop.f32.mrb[17].mxu0 }
 0xe0e   :  { %v4536_v34 = vadd.f32 %v4535_v40, %v4534_v63 }
 0xe10   :  { %v4537_v11 = vpop.f32.mrb[18].mxu0 }
 0xe11   :  { %v4538_v5 = vpop.f32.mrb[19].mxu0 }
 0xe12   :  { %v4539_v9 = vadd.f32 %v4538_v5, %v4537_v11 }
 0xe13   :  { %v4572_v49 = vpop.f32.mrb[16].mxu1 }
 0xe14   :  { %v4573_v27 = vpop.f32.mrb[17].mxu1 }
 0xe15   :  { %v4574_v62 = vadd.f32 %v4573_v27, %v4572_v49 }
 0xe17   :  { %v4239_v13 = vadd.f32 %v4574_v62, %v4536_v34  ;;  %v4575_v4 = vpop.f32.mrb[18].mxu1 }
 0xe18   :  { %v4576_v30 = vpop.f32.mrb[19].mxu1 }
 0xe19   :  { %4247 = vst [vmem:[#allocation24] sm:$0xff] %v4239_v13  ;;  %v4577_v44 = vadd.f32 %v4576_v30, %v4575_v4 }
 0xe1b   :  { %v4244_v31 = vadd.f32 %v4577_v44, %v4539_v9 }
 0xe1d   :  { %4248 = vst [vmem:[#allocation24 + $0x8] sm:$0xff] %v4244_v31 }
 0xe1e   :  { %6274 = shalt.err (!%p6271_p2)
}
 0xe1f   :  { %s6275_s22 = scalar_lea.hbm %s7782_s12, 256 }
 0xe20   :  { %p6276_p3 = scmp.ne.s32.totalorder %s7782_s12, %s6275_s22  ;;  %p6279_p4 = scmp.lt.u32.totalorder %s6275_s22, %s7782_s12 }
 0xe22   :  { %p6281_p5 = pnand %p6279_p4, %p6276_p3 }
 0xe24   :  { %6284 = shalt.err (!%p6281_p5)
}
 0xe25   :  { %4284 = dma.vmem_to_hbm [thread:$0]  %s4279_s27, 256, %s7782_s12, [#allocation23], %s6302_s13, %s6302_s13, %s6303_s14  }
 0xe26   :  { %6297 = dma.done.wait [#allocation6], 1024  }
 0xe27   :  { %6298 = vsyncadd [#allocation6], 4294966272 }
 0xe28   :  { %6299 = dma.done.wait [#allocation23], 1280  }
 0xe29   :  { %6300 = vsyncadd [#allocation23], 4294966016 }
 0xe2a   :  { %4294 = vsyncpa [#allocation5], 1 }
 0xe2b   :  { %4295 = vsyncpa [#allocation8], 1 }
 0xe2c   :  { %4296 = vsyncpa [#allocation11], 1 }
 0xe2d   :  { %4297 = vsyncpa [#allocation14], 1 }
 0xe2e   :  { %4298 = vsyncpa [#allocation17], 1 }
 0xe2f   :  { %4299 = vsyncpa [#allocation20], 1 }
 0xe30   :  { %4300 = vsyncpa [#allocation6], 1 }
 0xe31   :  { %4301 = vsyncpa [#allocation23], 1 }

</bundles_post_ra>
